<compile_context>
chip_gen: v6e
topology: v6e:2x2x1
jax: 0.10.0
libtpu: 0.0.40
codegen_flags: <defaults>
</compile_context>

<pallas_src>
import jax
import jax.numpy as jnp
from jax import lax
from jax.experimental import pallas as pl
from jax.experimental.pallas import tpu as pltpu

# ----------------------------- configuration -----------------------------
B = 2            # batch
C = 3            # input channels
IMG_H = 16       # image height
IMG_W = 32       # image width
PATCH = 8        # patch size (square)
HP = IMG_H // PATCH           # 2  (feat_height)
WP = IMG_W // PATCH           # 4  (feat_width)
NUM_PATCHES = HP * WP         # 8
SEQ = NUM_PATCHES + 1         # 9  (CLS token + patches)
PATCH_DIM = C * PATCH * PATCH # 192
D = 32           # hidden dim
HEADS = 2
DH = D // HEADS  # 16
MLP = 64
LAYERS = 2
T = 5            # text length
NUM_CLASSES = 10
OUT_LANES = 128  # lane-dense fused output width

# ----- packed row-vector slab layout ([N_VEC_ROWS, VEC_W] f32) -----
VEC_W = 3 * D                 # 96 lanes (widest row vector: qkv_b)
ROWS_PER_LAYER = 8            # ln1_g, ln1_b, qkv_b, proj_b, ln2_g, ln2_b, fc1_b, fc2_b
R_CLS = 0                                     # cls + pos[0]
R_PATCH = 1                                   # patch_b + pos[1:]   (NUM_PATCHES rows)
R_LAYERS = R_PATCH + NUM_PATCHES              # per-layer blocks
R_LNF = R_LAYERS + ROWS_PER_LAYER * LAYERS    # final LN gamma, beta
R_TOK = R_LNF + 2                             # decoder token embedding (NUM_CLASSES rows)
R_DPOS = R_TOK + NUM_CLASSES                  # decoder positional embedding (T rows)
R_DB = R_DPOS + T                             # decoder bq, bk, bv
R_CLSB = R_DB + 3                             # classifier bias
N_VEC_ROWS = R_CLSB + 1                       # 46

_VMEM = pl.BlockSpec(memory_space=pltpu.MemorySpace.VMEM)
_QKT_DNUMS = (((1,), (1,)), ((), ()))   # q @ k.T (contract last dims)


# ----------------------------- in-kernel helpers -----------------------------
def _bf(x):
    return x.astype(jnp.bfloat16)


def _ln(x, g, b):
    mu = jnp.mean(x, axis=-1, keepdims=True)
    xc = x - mu
    var = jnp.mean(xc * xc, axis=-1, keepdims=True)
    return xc * lax.rsqrt(var + 1e-5) * g + b


def _gelu(x):
    # TODO(synk): PyTorch nn.GELU defaults to exact erf; tanh approximation used.
    return 0.5 * x * (1.0 + jnp.tanh(0.7978845608028654 * (x + 0.044715 * x * x * x)))


def _softmax_rows(x):
    m = jnp.max(x, axis=-1, keepdims=True)
    e = jnp.exp(x - m)
    return e * pl.reciprocal(jnp.sum(e, axis=-1, keepdims=True), approx=True)


# ----------------------------- fused model kernel -----------------------------
def _fused_kernel(xp_ref, txt_ref, patch_w_ref, qkv_w_ref, proj_w_ref,
                  f1w_ref, f2w_ref, dec_w_ref, cls_w_ref, vecs_ref, out_ref):
    f32 = jnp.float32
    head_scale = 1.0 / float(DH) ** 0.5
    dec_scale = 1.0 / float(D) ** 0.5

    # ============================ encoder ============================
    # Patch embedding, batch-folded: [B*NP, PD] @ [PD, D]
    pe = jnp.dot(_bf(xp_ref[...]), _bf(patch_w_ref[...]),
                 preferred_element_type=f32)                       # [B*NP, D]
    cls_row = vecs_ref[R_CLS:R_CLS + 1, :D]                        # cls + pos[0]
    patch_bias = vecs_ref[R_PATCH:R_PATCH + NUM_PATCHES, :D]       # patch_b + pos[1:]
    rows = []
    for b in range(B):
        rows.append(cls_row)
        rows.append(pe[b * NUM_PATCHES:(b + 1) * NUM_PATCHES] + patch_bias)
    t = jnp.concatenate(rows, axis=0)                              # [B*SEQ, D]

    for l in range(LAYERS):
        base = R_LAYERS + ROWS_PER_LAYER * l
        ln1g = vecs_ref[base + 0:base + 1, :D]
        ln1b = vecs_ref[base + 1:base + 2, :D]
        qkvb = vecs_ref[base + 2:base + 3, :3 * D]
        projb = vecs_ref[base + 3:base + 4, :D]
        ln2g = vecs_ref[base + 4:base + 5, :D]
        ln2b = vecs_ref[base + 5:base + 6, :D]
        f1b = vecs_ref[base + 6:base + 7, :MLP]
        f2b = vecs_ref[base + 7:base + 8, :D]

        # --- self-attention sublayer (pre-LN); ONE fused QKV projection ---
        h = _ln(t, ln1g, ln1b)
        qkv = jnp.dot(_bf(h), _bf(qkv_w_ref[l]),
                      preferred_element_type=f32) + qkvb           # [B*SEQ, 3D]
        per_batch = []
        for b in range(B):
            r0 = b * SEQ
            heads = []
            for hh in range(HEADS):
                q = qkv[r0:r0 + SEQ, hh * DH:(hh + 1) * DH]
                k = qkv[r0:r0 + SEQ, D + hh * DH:D + (hh + 1) * DH]
                v = qkv[r0:r0 + SEQ, 2 * D + hh * DH:2 * D + (hh + 1) * DH]
                s = lax.dot_general(_bf(q), _bf(k), _QKT_DNUMS,
                                    preferred_element_type=f32) * head_scale
                p = _softmax_rows(s)           # encoder attn probs never stored
                heads.append(jnp.dot(_bf(p), _bf(v), preferred_element_type=f32))
            per_batch.append(jnp.concatenate(heads, axis=-1))      # [SEQ, D]
        attn_cat = jnp.concatenate(per_batch, axis=0)              # [B*SEQ, D]
        t = t + jnp.dot(_bf(attn_cat), _bf(proj_w_ref[l]),
                        preferred_element_type=f32) + projb

        # --- MLP sublayer (pre-LN), batch-folded ---
        h2 = _ln(t, ln2g, ln2b)
        m1 = _gelu(jnp.dot(_bf(h2), _bf(f1w_ref[l]),
                           preferred_element_type=f32) + f1b)
        t = t + jnp.dot(_bf(m1), _bf(f2w_ref[l]),
                        preferred_element_type=f32) + f2b

    ctx = _ln(t, vecs_ref[R_LNF:R_LNF + 1, :D],
              vecs_ref[R_LNF + 1:R_LNF + 2, :D])                   # [B*SEQ, D]

    # ============================ decoder ============================
    tok_emb = vecs_ref[R_TOK:R_TOK + NUM_CLASSES, :D]
    dec_pos = vecs_ref[R_DPOS:R_DPOS + T, :D]
    bq = vecs_ref[R_DB + 0:R_DB + 1, :D]
    bk = vecs_ref[R_DB + 1:R_DB + 2, :D]
    bv = vecs_ref[R_DB + 2:R_DB + 3, :D]
    cls_b = vecs_ref[R_CLSB:R_CLSB + 1, :NUM_CLASSES]

    # Token-embedding gather on the MXU (exact f32): one_hot(text) @ tok_emb.
    txt = txt_ref[...]                                             # [B*T, 1] int32
    cls_iota = lax.broadcasted_iota(jnp.int32, (B * T, NUM_CLASSES), 1)
    onehot = (cls_iota == txt).astype(f32)
    emb = jnp.dot(onehot, tok_emb, preferred_element_type=f32)
    emb = emb + jnp.concatenate([dec_pos] * B, axis=0)             # [B*T, D]

    dec_w = dec_w_ref[...]                                         # wq | wk | wv
    q = jnp.dot(_bf(emb), _bf(dec_w[:, :D]), preferred_element_type=f32) + bq
    kv = jnp.dot(_bf(ctx), _bf(dec_w[:, D:]), preferred_element_type=f32)
    k_all = kv[:, :D] + bk
    v_all = kv[:, D:] + bv

    attn_rows, ctxv_rows = [], []
    for b in range(B):
        qb = q[b * T:(b + 1) * T]
        kb = k_all[b * SEQ:(b + 1) * SEQ]
        vb = v_all[b * SEQ:(b + 1) * SEQ]
        s = lax.dot_general(_bf(qb), _bf(kb), _QKT_DNUMS,
                            preferred_element_type=f32) * dec_scale
        p = _softmax_rows(s)                                       # [T, SEQ]
        attn_rows.append(p)
        ctxv_rows.append(jnp.dot(_bf(p), _bf(vb), preferred_element_type=f32))
    attn = jnp.concatenate(attn_rows, axis=0)                      # [B*T, SEQ]
    hdec = emb + jnp.concatenate(ctxv_rows, axis=0)                # [B*T, D]

    logits = jnp.dot(_bf(hdec), _bf(cls_w_ref[...]),
                     preferred_element_type=f32) + cls_b           # [B*T, NC]
    # Exact softmax for the prediction output (parity with torch.softmax).
    m = jnp.max(logits, axis=-1, keepdims=True)
    e = jnp.exp(logits - m)
    probs = e / jnp.sum(e, axis=-1, keepdims=True)

    # ONE lane-dense store: [B*T, 128] slab = logits | probs | attn | zeros.
    pad = jnp.zeros((B * T, OUT_LANES - (2 * NUM_CLASSES + SEQ)), f32)
    out_ref[...] = jnp.concatenate([logits, probs, attn, pad], axis=-1)


def run_fused(packed, patches, txt):
    out = pl.pallas_call(
        _fused_kernel,
        out_shape=jax.ShapeDtypeStruct((B * T, OUT_LANES), jnp.float32),
        in_specs=[_VMEM] * 10,
        out_specs=_VMEM,
        cost_estimate=pl.CostEstimate(
            flops=1_000_000, transcendentals=4_000, bytes_accessed=150_000),
    )(patches, txt, packed["patch_w"], packed["qkv_w"], packed["proj_w"],
      packed["fc1_w"], packed["fc2_w"], packed["dec_w"], packed["cls_w"],
      packed["vecs"])
    logits = out[:, :NUM_CLASSES].reshape(B, T, NUM_CLASSES)
    probs = out[:, NUM_CLASSES:2 * NUM_CLASSES].reshape(B, T, NUM_CLASSES)
    attn = out[:, 2 * NUM_CLASSES:2 * NUM_CLASSES + SEQ]           # [B*T, SEQ]
    return logits, probs, attn


# ----------------------------- parameter packing (one-time, outside jit) -----------------------------
def pack_params(params):
    enc, dec = params["encoder"], params["decoder"]

    def row(v):
        v = v.reshape(1, -1) if v.ndim == 1 else v.reshape(-1, v.shape[-1])
        return jnp.pad(v, ((0, 0), (0, VEC_W - v.shape[-1])))

    rows = [row(enc["cls"][0, 0] + enc["pos"][0, 0]),
            row(enc["patch_b"][None, :] + enc["pos"][0, 1:])]
    for blk in enc["blocks"]:
        rows += [row(blk["ln1_g"]), row(blk["ln1_b"]), row(blk["qkv_b"]),
                 row(blk["proj_b"]), row(blk["ln2_g"]), row(blk["ln2_b"]),
                 row(blk["fc1_b"]), row(blk["fc2_b"])]
    rows += [row(enc["ln_g"]), row(enc["ln_b"]),
             row(dec["tok_emb"]), row(dec["dec_pos"]),
             row(dec["bq"]), row(dec["bk"]), row(dec["bv"]), row(dec["cls_b"])]
    vecs = jnp.concatenate(rows, axis=0)
    assert vecs.shape == (N_VEC_ROWS, VEC_W)

    return {
        "patch_w": enc["patch_w"],
        "qkv_w": jnp.stack([blk["qkv_w"] for blk in enc["blocks"]]),
        "proj_w": jnp.stack([blk["proj_w"] for blk in enc["blocks"]]),
        "fc1_w": jnp.stack([blk["fc1_w"] for blk in enc["blocks"]]),
        "fc2_w": jnp.stack([blk["fc2_w"] for blk in enc["blocks"]]),
        "dec_w": jnp.concatenate([dec["wq"], dec["wk"], dec["wv"]], axis=1),
        "cls_w": dec["cls_w"],
        "vecs": vecs,
    }


# ----------------------------- Model.forward -----------------------------
STAGES = {"Feat": "None", "Seq": "ViT", "Pred": "Attn"}


def model_forward(packed, x, text, is_train=True, is_test=False, rtl_text=None):
    # ---- forward_encoder ----
    visual_feature = x                      # stages['Feat'] == 'None' -> identity
    Bn = visual_feature.shape[0]
    # Patchify, width-major sequence order so decoder_attn.reshape(-1, W, H)
    # is spatially consistent with the patch sequence.
    patches = visual_feature.reshape(Bn, C, HP, PATCH, WP, PATCH)
    patches = patches.transpose(0, 4, 2, 1, 3, 5).reshape(Bn * NUM_PATCHES, PATCH_DIM)
    output_shape = (WP, HP)                 # (feat_width, feat_height)
    feat_pad = 0

    # ---- forward_decoder (fused with the encoder in one pallas_call) ----
    # TODO(synk): autoregressive greedy decoding for is_test=True not implemented;
    #             the decoder always runs teacher-forced in parallel.
    txt = text.reshape(Bn * T, 1).astype(jnp.int32)
    logits, probs, attn = run_fused(packed, patches, txt)
    prediction = probs                      # [B, T, NUM_CLASSES]
    decoder_attn = attn                     # [B*T, 1 + num_patches]
    addition_outputs = {}

    if decoder_attn is not None and output_shape is not None:
        if STAGES["Pred"] == "Attn" and STAGES["Seq"] == "ViT":
            decoder_attn = decoder_attn[:, 1:]          # drop CLS attention column
        decoder_attn = decoder_attn.reshape(-1, output_shape[0], output_shape[1])
        addition_outputs.update(
            {
                "decoder_attn": decoder_attn,
                "feat_width": output_shape[0],
                "feat_height": output_shape[1],
                "feat_pad": feat_pad,
            }
        )
    return prediction, logits, addition_outputs


# ----------------------------- parameter init -----------------------------
def init_params(key):
    def nrm(k, shape, scale=0.02):
        return scale * jax.random.normal(k, shape, dtype=jnp.float32)

    keys = iter(jax.random.split(key, 64))

    enc = {
        "patch_w": nrm(next(keys), (PATCH_DIM, D)),
        "patch_b": jnp.zeros((D,), jnp.float32),
        "cls": nrm(next(keys), (1, 1, D)),
        "pos": nrm(next(keys), (1, SEQ, D)),
        "ln_g": jnp.ones((D,), jnp.float32),
        "ln_b": jnp.zeros((D,), jnp.float32),
        "blocks": [],
    }
    for _ in range(LAYERS):
        enc["blocks"].append(
            {
                "ln1_g": jnp.ones((D,), jnp.float32),
                "ln1_b": jnp.zeros((D,), jnp.float32),
                "qkv_w": nrm(next(keys), (D, 3 * D)),
                "qkv_b": jnp.zeros((3 * D,), jnp.float32),
                "proj_w": nrm(next(keys), (D, D)),
                "proj_b": jnp.zeros((D,), jnp.float32),
                "ln2_g": jnp.ones((D,), jnp.float32),
                "ln2_b": jnp.zeros((D,), jnp.float32),
                "fc1_w": nrm(next(keys), (D, MLP)),
                "fc1_b": jnp.zeros((MLP,), jnp.float32),
                "fc2_w": nrm(next(keys), (MLP, D)),
                "fc2_b": jnp.zeros((D,), jnp.float32),
            }
        )

    dec = {
        "tok_emb": nrm(next(keys), (NUM_CLASSES, D)),
        "dec_pos": nrm(next(keys), (T, D)),
        "wq": nrm(next(keys), (D, D)),
        "bq": jnp.zeros((D,), jnp.float32),
        "wk": nrm(next(keys), (D, D)),
        "bk": jnp.zeros((D,), jnp.float32),
        "wv": nrm(next(keys), (D, D)),
        "bv": jnp.zeros((D,), jnp.float32),
        "cls_w": nrm(next(keys), (D, NUM_CLASSES)),
        "cls_b": jnp.zeros((NUM_CLASSES,), jnp.float32),
    }
    return {"encoder": enc, "decoder": dec}


# ----------------------------- main -----------------------------
if __name__ == "__main__":
    k_in, k_txt = jax.random.split(jax.random.PRNGKey(0))
    x = jax.random.normal(k_in, (B, C, IMG_H, IMG_W), dtype=jnp.float32)   # NCHW
    text = jax.random.randint(k_txt, (B, T), 0, NUM_CLASSES, dtype=jnp.int32)
    params = init_params(jax.random.PRNGKey(42))
    packed = pack_params(params)            # one-time weight packing (outside jit)

    fwd = jax.jit(model_forward)
    prediction, logits, addition_outputs = fwd(packed, x, text)
    jax.block_until_ready((prediction, logits, addition_outputs))

    assert prediction.shape == (B, T, NUM_CLASSES)
    assert logits.shape == (B, T, NUM_CLASSES)
    assert addition_outputs["decoder_attn"].shape == (B * T, WP, HP)
    print("KERNEL_OK")
</pallas_src>

<mosaic_0001>
module attributes {stable_mosaic.version = 11 : i64} {
  func.func @_fused_kernel(%arg0: memref<16x192xf32, #tpu.memory_space<vmem>>, %arg1: memref<10x1xi32, #tpu.memory_space<vmem>>, %arg2: memref<192x32xf32, #tpu.memory_space<vmem>>, %arg3: memref<2x32x96xf32, #tpu.memory_space<vmem>>, %arg4: memref<2x32x32xf32, #tpu.memory_space<vmem>>, %arg5: memref<2x32x64xf32, #tpu.memory_space<vmem>>, %arg6: memref<2x64x32xf32, #tpu.memory_space<vmem>>, %arg7: memref<32x96xf32, #tpu.memory_space<vmem>>, %arg8: memref<32x10xf32, #tpu.memory_space<vmem>>, %arg9: memref<46x96xf32, #tpu.memory_space<vmem>>, %arg10: memref<10x128xf32, #tpu.memory_space<vmem>>) attributes {dimension_semantics = [], scalar_prefetch = 0 : i64, scratch_operands = 0 : i64, tpu.core_type = #tpu.core_type<tc>} {
    %c0 = arith.constant 0 : index
    %c0_0 = arith.constant 0 : index
    %0 = vector.load %arg0[%c0, %c0_0] : memref<16x192xf32, #tpu.memory_space<vmem>>, vector<16x192xf32>
    %1 = arith.truncf %0 : vector<16x192xf32> to vector<16x192xbf16>
    %c0_1 = arith.constant 0 : index
    %c0_2 = arith.constant 0 : index
    %2 = vector.load %arg2[%c0_1, %c0_2] : memref<192x32xf32, #tpu.memory_space<vmem>>, vector<192x32xf32>
    %3 = arith.truncf %2 : vector<192x32xf32> to vector<192x32xbf16>
    %cst = arith.constant dense<0.000000e+00> : vector<16x32xf32>
    %4 = tpu.matmul %1, %3, %cst {dimension_numbers = #tpu.dot_dimension_numbers<[1], [0], [0], [1], [0, 0, 1, 1], [], []>} : vector<16x192xbf16>, vector<192x32xbf16>, vector<16x32xf32> -> vector<16x32xf32>
    %c0_3 = arith.constant 0 : index
    %c0_4 = arith.constant 0 : index
    %5 = vector.load %arg9[%c0_3, %c0_4] : memref<46x96xf32, #tpu.memory_space<vmem>>, vector<1x32xf32>
    %c1 = arith.constant 1 : index
    %c0_5 = arith.constant 0 : index
    %6 = vector.load %arg9[%c1, %c0_5] : memref<46x96xf32, #tpu.memory_space<vmem>>, vector<8x32xf32>
    %7 = vector.extract_strided_slice %4 {offsets = [0, 0], sizes = [8, 32], strides = [1, 1]} : vector<16x32xf32> to vector<8x32xf32>
    %8 = arith.addf %7, %6 : vector<8x32xf32>
    %9 = vector.extract_strided_slice %4 {offsets = [8, 0], sizes = [8, 32], strides = [1, 1]} : vector<16x32xf32> to vector<8x32xf32>
    %10 = arith.addf %9, %6 : vector<8x32xf32>
    %11 = tpu.concatenate %5, %8, %5, %10 in 0 : vector<1x32xf32>, vector<8x32xf32>, vector<1x32xf32>, vector<8x32xf32> -> vector<18x32xf32>
    %c9 = arith.constant 9 : index
    %c0_6 = arith.constant 0 : index
    %12 = vector.load %arg9[%c9, %c0_6] : memref<46x96xf32, #tpu.memory_space<vmem>>, vector<1x32xf32>
    %c10 = arith.constant 10 : index
    %c0_7 = arith.constant 0 : index
    %13 = vector.load %arg9[%c10, %c0_7] : memref<46x96xf32, #tpu.memory_space<vmem>>, vector<1x32xf32>
    %c11 = arith.constant 11 : index
    %c0_8 = arith.constant 0 : index
    %14 = vector.load %arg9[%c11, %c0_8] : memref<46x96xf32, #tpu.memory_space<vmem>>, vector<1x96xf32>
    %c12 = arith.constant 12 : index
    %c0_9 = arith.constant 0 : index
    %15 = vector.load %arg9[%c12, %c0_9] : memref<46x96xf32, #tpu.memory_space<vmem>>, vector<1x32xf32>
    %c13 = arith.constant 13 : index
    %c0_10 = arith.constant 0 : index
    %16 = vector.load %arg9[%c13, %c0_10] : memref<46x96xf32, #tpu.memory_space<vmem>>, vector<1x32xf32>
    %c14 = arith.constant 14 : index
    %c0_11 = arith.constant 0 : index
    %17 = vector.load %arg9[%c14, %c0_11] : memref<46x96xf32, #tpu.memory_space<vmem>>, vector<1x32xf32>
    %c15 = arith.constant 15 : index
    %c0_12 = arith.constant 0 : index
    %18 = vector.load %arg9[%c15, %c0_12] : memref<46x96xf32, #tpu.memory_space<vmem>>, vector<1x64xf32>
    %c16 = arith.constant 16 : index
    %c0_13 = arith.constant 0 : index
    %19 = vector.load %arg9[%c16, %c0_13] : memref<46x96xf32, #tpu.memory_space<vmem>>, vector<1x32xf32>
    %cst_14 = arith.constant dense<0.000000e+00> : vector<18xf32>
    %20 = vector.multi_reduction <add>, %11, %cst_14 [1] : vector<18x32xf32> to vector<18xf32>
    %21 = vector.shape_cast %20 : vector<18xf32> to vector<18x1xf32>
    %cst_15 = arith.constant 3.200000e+01 : f32
    %22 = vector.broadcast %cst_15 : f32 to vector<18x1xf32>
    %23 = arith.divf %21, %22 : vector<18x1xf32>
    %24 = vector.broadcast %23 : vector<18x1xf32> to vector<18x32xf32>
    %25 = arith.subf %11, %24 : vector<18x32xf32>
    %26 = arith.mulf %25, %25 : vector<18x32xf32>
    %cst_16 = arith.constant dense<0.000000e+00> : vector<18xf32>
    %27 = vector.multi_reduction <add>, %26, %cst_16 [1] : vector<18x32xf32> to vector<18xf32>
    %28 = vector.shape_cast %27 : vector<18xf32> to vector<18x1xf32>
    %cst_17 = arith.constant 3.200000e+01 : f32
    %29 = vector.broadcast %cst_17 : f32 to vector<18x1xf32>
    %30 = arith.divf %28, %29 : vector<18x1xf32>
    %cst_18 = arith.constant 9.99999974E-6 : f32
    %31 = vector.broadcast %cst_18 : f32 to vector<18x1xf32>
    %32 = arith.addf %30, %31 : vector<18x1xf32>
    %33 = math.rsqrt %32 : vector<18x1xf32>
    %34 = vector.broadcast %33 : vector<18x1xf32> to vector<18x32xf32>
    %35 = arith.mulf %25, %34 : vector<18x32xf32>
    %36 = vector.broadcast %12 : vector<1x32xf32> to vector<18x32xf32>
    %37 = arith.mulf %35, %36 : vector<18x32xf32>
    %38 = vector.broadcast %13 : vector<1x32xf32> to vector<18x32xf32>
    %39 = arith.addf %37, %38 : vector<18x32xf32>
    %40 = arith.truncf %39 : vector<18x32xf32> to vector<18x32xbf16>
    %c0_19 = arith.constant 0 : index
    %c0_20 = arith.constant 0 : index
    %c0_21 = arith.constant 0 : index
    %41 = vector.load %arg3[%c0_19, %c0_20, %c0_21] : memref<2x32x96xf32, #tpu.memory_space<vmem>>, vector<1x32x96xf32>
    %42 = vector.shape_cast %41 : vector<1x32x96xf32> to vector<32x96xf32>
    %43 = arith.truncf %42 : vector<32x96xf32> to vector<32x96xbf16>
    %cst_22 = arith.constant dense<0.000000e+00> : vector<18x96xf32>
    %44 = tpu.matmul %40, %43, %cst_22 {dimension_numbers = #tpu.dot_dimension_numbers<[1], [0], [0], [1], [0, 0, 1, 1], [], []>} : vector<18x32xbf16>, vector<32x96xbf16>, vector<18x96xf32> -> vector<18x96xf32>
    %45 = vector.broadcast %14 : vector<1x96xf32> to vector<18x96xf32>
    %46 = arith.addf %44, %45 : vector<18x96xf32>
    %47 = vector.extract_strided_slice %46 {offsets = [0, 0], sizes = [9, 16], strides = [1, 1]} : vector<18x96xf32> to vector<9x16xf32>
    %48 = vector.extract_strided_slice %46 {offsets = [0, 32], sizes = [9, 16], strides = [1, 1]} : vector<18x96xf32> to vector<9x16xf32>
    %49 = vector.extract_strided_slice %46 {offsets = [0, 64], sizes = [9, 16], strides = [1, 1]} : vector<18x96xf32> to vector<9x16xf32>
    %50 = arith.truncf %47 : vector<9x16xf32> to vector<9x16xbf16>
    %51 = arith.truncf %48 : vector<9x16xf32> to vector<9x16xbf16>
    %cst_23 = arith.constant dense<0.000000e+00> : vector<9x9xf32>
    %52 = tpu.matmul %50, %51, %cst_23 {dimension_numbers = #tpu.dot_dimension_numbers<[1], [1], [0], [0], [0, 0, 1, 0], [], []>} : vector<9x16xbf16>, vector<9x16xbf16>, vector<9x9xf32> -> vector<9x9xf32>
    %cst_24 = arith.constant 2.500000e-01 : f32
    %53 = vector.broadcast %cst_24 : f32 to vector<9x9xf32>
    %54 = arith.mulf %52, %53 : vector<9x9xf32>
    %cst_25 = arith.constant dense<0xFF800000> : vector<9xf32>
    %55 = vector.multi_reduction <maximumf>, %54, %cst_25 [1] : vector<9x9xf32> to vector<9xf32>
    %56 = vector.shape_cast %55 : vector<9xf32> to vector<9x1xf32>
    %57 = vector.broadcast %56 : vector<9x1xf32> to vector<9x9xf32>
    %58 = arith.subf %54, %57 : vector<9x9xf32>
    %59 = math.exp %58 : vector<9x9xf32>
    %cst_26 = arith.constant dense<0.000000e+00> : vector<9xf32>
    %60 = vector.multi_reduction <add>, %59, %cst_26 [1] : vector<9x9xf32> to vector<9xf32>
    %61 = vector.shape_cast %60 : vector<9xf32> to vector<9x1xf32>
    %62 = tpu.reciprocal %61 {approx = true} : vector<9x1xf32> -> vector<9x1xf32>
    %63 = vector.broadcast %62 : vector<9x1xf32> to vector<9x9xf32>
    %64 = arith.mulf %59, %63 : vector<9x9xf32>
    %65 = arith.truncf %64 : vector<9x9xf32> to vector<9x9xbf16>
    %66 = arith.truncf %49 : vector<9x16xf32> to vector<9x16xbf16>
    %cst_27 = arith.constant dense<0.000000e+00> : vector<9x16xf32>
    %67 = tpu.matmul %65, %66, %cst_27 {dimension_numbers = #tpu.dot_dimension_numbers<[1], [0], [0], [1], [0, 0, 1, 1], [], []>} : vector<9x9xbf16>, vector<9x16xbf16>, vector<9x16xf32> -> vector<9x16xf32>
    %68 = vector.extract_strided_slice %46 {offsets = [0, 16], sizes = [9, 16], strides = [1, 1]} : vector<18x96xf32> to vector<9x16xf32>
    %69 = vector.extract_strided_slice %46 {offsets = [0, 48], sizes = [9, 16], strides = [1, 1]} : vector<18x96xf32> to vector<9x16xf32>
    %70 = vector.extract_strided_slice %46 {offsets = [0, 80], sizes = [9, 16], strides = [1, 1]} : vector<18x96xf32> to vector<9x16xf32>
    %71 = arith.truncf %68 : vector<9x16xf32> to vector<9x16xbf16>
    %72 = arith.truncf %69 : vector<9x16xf32> to vector<9x16xbf16>
    %cst_28 = arith.constant dense<0.000000e+00> : vector<9x9xf32>
    %73 = tpu.matmul %71, %72, %cst_28 {dimension_numbers = #tpu.dot_dimension_numbers<[1], [1], [0], [0], [0, 0, 1, 0], [], []>} : vector<9x16xbf16>, vector<9x16xbf16>, vector<9x9xf32> -> vector<9x9xf32>
    %cst_29 = arith.constant 2.500000e-01 : f32
    %74 = vector.broadcast %cst_29 : f32 to vector<9x9xf32>
    %75 = arith.mulf %73, %74 : vector<9x9xf32>
    %cst_30 = arith.constant dense<0xFF800000> : vector<9xf32>
    %76 = vector.multi_reduction <maximumf>, %75, %cst_30 [1] : vector<9x9xf32> to vector<9xf32>
    %77 = vector.shape_cast %76 : vector<9xf32> to vector<9x1xf32>
    %78 = vector.broadcast %77 : vector<9x1xf32> to vector<9x9xf32>
    %79 = arith.subf %75, %78 : vector<9x9xf32>
    %80 = math.exp %79 : vector<9x9xf32>
    %cst_31 = arith.constant dense<0.000000e+00> : vector<9xf32>
    %81 = vector.multi_reduction <add>, %80, %cst_31 [1] : vector<9x9xf32> to vector<9xf32>
    %82 = vector.shape_cast %81 : vector<9xf32> to vector<9x1xf32>
    %83 = tpu.reciprocal %82 {approx = true} : vector<9x1xf32> -> vector<9x1xf32>
    %84 = vector.broadcast %83 : vector<9x1xf32> to vector<9x9xf32>
    %85 = arith.mulf %80, %84 : vector<9x9xf32>
    %86 = arith.truncf %85 : vector<9x9xf32> to vector<9x9xbf16>
    %87 = arith.truncf %70 : vector<9x16xf32> to vector<9x16xbf16>
    %cst_32 = arith.constant dense<0.000000e+00> : vector<9x16xf32>
    %88 = tpu.matmul %86, %87, %cst_32 {dimension_numbers = #tpu.dot_dimension_numbers<[1], [0], [0], [1], [0, 0, 1, 1], [], []>} : vector<9x9xbf16>, vector<9x16xbf16>, vector<9x16xf32> -> vector<9x16xf32>
    %89 = tpu.concatenate %67, %88 in 1 : vector<9x16xf32>, vector<9x16xf32> -> vector<9x32xf32>
    %90 = vector.extract_strided_slice %46 {offsets = [9, 0], sizes = [9, 16], strides = [1, 1]} : vector<18x96xf32> to vector<9x16xf32>
    %91 = vector.extract_strided_slice %46 {offsets = [9, 32], sizes = [9, 16], strides = [1, 1]} : vector<18x96xf32> to vector<9x16xf32>
    %92 = vector.extract_strided_slice %46 {offsets = [9, 64], sizes = [9, 16], strides = [1, 1]} : vector<18x96xf32> to vector<9x16xf32>
    %93 = arith.truncf %90 : vector<9x16xf32> to vector<9x16xbf16>
    %94 = arith.truncf %91 : vector<9x16xf32> to vector<9x16xbf16>
    %cst_33 = arith.constant dense<0.000000e+00> : vector<9x9xf32>
    %95 = tpu.matmul %93, %94, %cst_33 {dimension_numbers = #tpu.dot_dimension_numbers<[1], [1], [0], [0], [0, 0, 1, 0], [], []>} : vector<9x16xbf16>, vector<9x16xbf16>, vector<9x9xf32> -> vector<9x9xf32>
    %cst_34 = arith.constant 2.500000e-01 : f32
    %96 = vector.broadcast %cst_34 : f32 to vector<9x9xf32>
    %97 = arith.mulf %95, %96 : vector<9x9xf32>
    %cst_35 = arith.constant dense<0xFF800000> : vector<9xf32>
    %98 = vector.multi_reduction <maximumf>, %97, %cst_35 [1] : vector<9x9xf32> to vector<9xf32>
    %99 = vector.shape_cast %98 : vector<9xf32> to vector<9x1xf32>
    %100 = vector.broadcast %99 : vector<9x1xf32> to vector<9x9xf32>
    %101 = arith.subf %97, %100 : vector<9x9xf32>
    %102 = math.exp %101 : vector<9x9xf32>
    %cst_36 = arith.constant dense<0.000000e+00> : vector<9xf32>
    %103 = vector.multi_reduction <add>, %102, %cst_36 [1] : vector<9x9xf32> to vector<9xf32>
    %104 = vector.shape_cast %103 : vector<9xf32> to vector<9x1xf32>
    %105 = tpu.reciprocal %104 {approx = true} : vector<9x1xf32> -> vector<9x1xf32>
    %106 = vector.broadcast %105 : vector<9x1xf32> to vector<9x9xf32>
    %107 = arith.mulf %102, %106 : vector<9x9xf32>
    %108 = arith.truncf %107 : vector<9x9xf32> to vector<9x9xbf16>
    %109 = arith.truncf %92 : vector<9x16xf32> to vector<9x16xbf16>
    %cst_37 = arith.constant dense<0.000000e+00> : vector<9x16xf32>
    %110 = tpu.matmul %108, %109, %cst_37 {dimension_numbers = #tpu.dot_dimension_numbers<[1], [0], [0], [1], [0, 0, 1, 1], [], []>} : vector<9x9xbf16>, vector<9x16xbf16>, vector<9x16xf32> -> vector<9x16xf32>
    %111 = vector.extract_strided_slice %46 {offsets = [9, 16], sizes = [9, 16], strides = [1, 1]} : vector<18x96xf32> to vector<9x16xf32>
    %112 = vector.extract_strided_slice %46 {offsets = [9, 48], sizes = [9, 16], strides = [1, 1]} : vector<18x96xf32> to vector<9x16xf32>
    %113 = vector.extract_strided_slice %46 {offsets = [9, 80], sizes = [9, 16], strides = [1, 1]} : vector<18x96xf32> to vector<9x16xf32>
    %114 = arith.truncf %111 : vector<9x16xf32> to vector<9x16xbf16>
    %115 = arith.truncf %112 : vector<9x16xf32> to vector<9x16xbf16>
    %cst_38 = arith.constant dense<0.000000e+00> : vector<9x9xf32>
    %116 = tpu.matmul %114, %115, %cst_38 {dimension_numbers = #tpu.dot_dimension_numbers<[1], [1], [0], [0], [0, 0, 1, 0], [], []>} : vector<9x16xbf16>, vector<9x16xbf16>, vector<9x9xf32> -> vector<9x9xf32>
    %cst_39 = arith.constant 2.500000e-01 : f32
    %117 = vector.broadcast %cst_39 : f32 to vector<9x9xf32>
    %118 = arith.mulf %116, %117 : vector<9x9xf32>
    %cst_40 = arith.constant dense<0xFF800000> : vector<9xf32>
    %119 = vector.multi_reduction <maximumf>, %118, %cst_40 [1] : vector<9x9xf32> to vector<9xf32>
    %120 = vector.shape_cast %119 : vector<9xf32> to vector<9x1xf32>
    %121 = vector.broadcast %120 : vector<9x1xf32> to vector<9x9xf32>
    %122 = arith.subf %118, %121 : vector<9x9xf32>
    %123 = math.exp %122 : vector<9x9xf32>
    %cst_41 = arith.constant dense<0.000000e+00> : vector<9xf32>
    %124 = vector.multi_reduction <add>, %123, %cst_41 [1] : vector<9x9xf32> to vector<9xf32>
    %125 = vector.shape_cast %124 : vector<9xf32> to vector<9x1xf32>
    %126 = tpu.reciprocal %125 {approx = true} : vector<9x1xf32> -> vector<9x1xf32>
    %127 = vector.broadcast %126 : vector<9x1xf32> to vector<9x9xf32>
    %128 = arith.mulf %123, %127 : vector<9x9xf32>
    %129 = arith.truncf %128 : vector<9x9xf32> to vector<9x9xbf16>
    %130 = arith.truncf %113 : vector<9x16xf32> to vector<9x16xbf16>
    %cst_42 = arith.constant dense<0.000000e+00> : vector<9x16xf32>
    %131 = tpu.matmul %129, %130, %cst_42 {dimension_numbers = #tpu.dot_dimension_numbers<[1], [0], [0], [1], [0, 0, 1, 1], [], []>} : vector<9x9xbf16>, vector<9x16xbf16>, vector<9x16xf32> -> vector<9x16xf32>
    %132 = tpu.concatenate %110, %131 in 1 : vector<9x16xf32>, vector<9x16xf32> -> vector<9x32xf32>
    %133 = tpu.concatenate %89, %132 in 0 : vector<9x32xf32>, vector<9x32xf32> -> vector<18x32xf32>
    %134 = arith.truncf %133 : vector<18x32xf32> to vector<18x32xbf16>
    %c0_43 = arith.constant 0 : index
    %c0_44 = arith.constant 0 : index
    %c0_45 = arith.constant 0 : index
    %135 = vector.load %arg4[%c0_43, %c0_44, %c0_45] : memref<2x32x32xf32, #tpu.memory_space<vmem>>, vector<1x32x32xf32>
    %136 = vector.shape_cast %135 : vector<1x32x32xf32> to vector<32x32xf32>
    %137 = arith.truncf %136 : vector<32x32xf32> to vector<32x32xbf16>
    %cst_46 = arith.constant dense<0.000000e+00> : vector<18x32xf32>
    %138 = tpu.matmul %134, %137, %cst_46 {dimension_numbers = #tpu.dot_dimension_numbers<[1], [0], [0], [1], [0, 0, 1, 1], [], []>} : vector<18x32xbf16>, vector<32x32xbf16>, vector<18x32xf32> -> vector<18x32xf32>
    %139 = arith.addf %11, %138 : vector<18x32xf32>
    %140 = vector.broadcast %15 : vector<1x32xf32> to vector<18x32xf32>
    %141 = arith.addf %139, %140 : vector<18x32xf32>
    %cst_47 = arith.constant dense<0.000000e+00> : vector<18xf32>
    %142 = vector.multi_reduction <add>, %141, %cst_47 [1] : vector<18x32xf32> to vector<18xf32>
    %143 = vector.shape_cast %142 : vector<18xf32> to vector<18x1xf32>
    %cst_48 = arith.constant 3.200000e+01 : f32
    %144 = vector.broadcast %cst_48 : f32 to vector<18x1xf32>
    %145 = arith.divf %143, %144 : vector<18x1xf32>
    %146 = vector.broadcast %145 : vector<18x1xf32> to vector<18x32xf32>
    %147 = arith.subf %141, %146 : vector<18x32xf32>
    %148 = arith.mulf %147, %147 : vector<18x32xf32>
    %cst_49 = arith.constant dense<0.000000e+00> : vector<18xf32>
    %149 = vector.multi_reduction <add>, %148, %cst_49 [1] : vector<18x32xf32> to vector<18xf32>
    %150 = vector.shape_cast %149 : vector<18xf32> to vector<18x1xf32>
    %cst_50 = arith.constant 3.200000e+01 : f32
    %151 = vector.broadcast %cst_50 : f32 to vector<18x1xf32>
    %152 = arith.divf %150, %151 : vector<18x1xf32>
    %cst_51 = arith.constant 9.99999974E-6 : f32
    %153 = vector.broadcast %cst_51 : f32 to vector<18x1xf32>
    %154 = arith.addf %152, %153 : vector<18x1xf32>
    %155 = math.rsqrt %154 : vector<18x1xf32>
    %156 = vector.broadcast %155 : vector<18x1xf32> to vector<18x32xf32>
    %157 = arith.mulf %147, %156 : vector<18x32xf32>
    %158 = vector.broadcast %16 : vector<1x32xf32> to vector<18x32xf32>
    %159 = arith.mulf %157, %158 : vector<18x32xf32>
    %160 = vector.broadcast %17 : vector<1x32xf32> to vector<18x32xf32>
    %161 = arith.addf %159, %160 : vector<18x32xf32>
    %162 = arith.truncf %161 : vector<18x32xf32> to vector<18x32xbf16>
    %c0_52 = arith.constant 0 : index
    %c0_53 = arith.constant 0 : index
    %c0_54 = arith.constant 0 : index
    %163 = vector.load %arg5[%c0_52, %c0_53, %c0_54] : memref<2x32x64xf32, #tpu.memory_space<vmem>>, vector<1x32x64xf32>
    %164 = vector.shape_cast %163 : vector<1x32x64xf32> to vector<32x64xf32>
    %165 = arith.truncf %164 : vector<32x64xf32> to vector<32x64xbf16>
    %cst_55 = arith.constant dense<0.000000e+00> : vector<18x64xf32>
    %166 = tpu.matmul %162, %165, %cst_55 {dimension_numbers = #tpu.dot_dimension_numbers<[1], [0], [0], [1], [0, 0, 1, 1], [], []>} : vector<18x32xbf16>, vector<32x64xbf16>, vector<18x64xf32> -> vector<18x64xf32>
    %167 = vector.broadcast %18 : vector<1x64xf32> to vector<18x64xf32>
    %168 = arith.addf %166, %167 : vector<18x64xf32>
    %cst_56 = arith.constant 5.000000e-01 : f32
    %169 = vector.broadcast %cst_56 : f32 to vector<18x64xf32>
    %170 = arith.mulf %169, %168 : vector<18x64xf32>
    %cst_57 = arith.constant 4.471500e-02 : f32
    %171 = vector.broadcast %cst_57 : f32 to vector<18x64xf32>
    %172 = arith.mulf %171, %168 : vector<18x64xf32>
    %173 = arith.mulf %172, %168 : vector<18x64xf32>
    %174 = arith.mulf %173, %168 : vector<18x64xf32>
    %175 = arith.addf %168, %174 : vector<18x64xf32>
    %cst_58 = arith.constant 0.797884583 : f32
    %176 = vector.broadcast %cst_58 : f32 to vector<18x64xf32>
    %177 = arith.mulf %176, %175 : vector<18x64xf32>
    %178 = math.tanh %177 : vector<18x64xf32>
    %cst_59 = arith.constant 1.000000e+00 : f32
    %179 = vector.broadcast %cst_59 : f32 to vector<18x64xf32>
    %180 = arith.addf %179, %178 : vector<18x64xf32>
    %181 = arith.mulf %170, %180 : vector<18x64xf32>
    %182 = arith.truncf %181 : vector<18x64xf32> to vector<18x64xbf16>
    %c0_60 = arith.constant 0 : index
    %c0_61 = arith.constant 0 : index
    %c0_62 = arith.constant 0 : index
    %183 = vector.load %arg6[%c0_60, %c0_61, %c0_62] : memref<2x64x32xf32, #tpu.memory_space<vmem>>, vector<1x64x32xf32>
    %184 = vector.shape_cast %183 : vector<1x64x32xf32> to vector<64x32xf32>
    %185 = arith.truncf %184 : vector<64x32xf32> to vector<64x32xbf16>
    %cst_63 = arith.constant dense<0.000000e+00> : vector<18x32xf32>
    %186 = tpu.matmul %182, %185, %cst_63 {dimension_numbers = #tpu.dot_dimension_numbers<[1], [0], [0], [1], [0, 0, 1, 1], [], []>} : vector<18x64xbf16>, vector<64x32xbf16>, vector<18x32xf32> -> vector<18x32xf32>
    %187 = arith.addf %141, %186 : vector<18x32xf32>
    %188 = vector.broadcast %19 : vector<1x32xf32> to vector<18x32xf32>
    %189 = arith.addf %187, %188 : vector<18x32xf32>
    %c17 = arith.constant 17 : index
    %c0_64 = arith.constant 0 : index
    %190 = vector.load %arg9[%c17, %c0_64] : memref<46x96xf32, #tpu.memory_space<vmem>>, vector<1x32xf32>
    %c18 = arith.constant 18 : index
    %c0_65 = arith.constant 0 : index
    %191 = vector.load %arg9[%c18, %c0_65] : memref<46x96xf32, #tpu.memory_space<vmem>>, vector<1x32xf32>
    %c19 = arith.constant 19 : index
    %c0_66 = arith.constant 0 : index
    %192 = vector.load %arg9[%c19, %c0_66] : memref<46x96xf32, #tpu.memory_space<vmem>>, vector<1x96xf32>
    %c20 = arith.constant 20 : index
    %c0_67 = arith.constant 0 : index
    %193 = vector.load %arg9[%c20, %c0_67] : memref<46x96xf32, #tpu.memory_space<vmem>>, vector<1x32xf32>
    %c21 = arith.constant 21 : index
    %c0_68 = arith.constant 0 : index
    %194 = vector.load %arg9[%c21, %c0_68] : memref<46x96xf32, #tpu.memory_space<vmem>>, vector<1x32xf32>
    %c22 = arith.constant 22 : index
    %c0_69 = arith.constant 0 : index
    %195 = vector.load %arg9[%c22, %c0_69] : memref<46x96xf32, #tpu.memory_space<vmem>>, vector<1x32xf32>
    %c23 = arith.constant 23 : index
    %c0_70 = arith.constant 0 : index
    %196 = vector.load %arg9[%c23, %c0_70] : memref<46x96xf32, #tpu.memory_space<vmem>>, vector<1x64xf32>
    %c24 = arith.constant 24 : index
    %c0_71 = arith.constant 0 : index
    %197 = vector.load %arg9[%c24, %c0_71] : memref<46x96xf32, #tpu.memory_space<vmem>>, vector<1x32xf32>
    %cst_72 = arith.constant dense<0.000000e+00> : vector<18xf32>
    %198 = vector.multi_reduction <add>, %189, %cst_72 [1] : vector<18x32xf32> to vector<18xf32>
    %199 = vector.shape_cast %198 : vector<18xf32> to vector<18x1xf32>
    %cst_73 = arith.constant 3.200000e+01 : f32
    %200 = vector.broadcast %cst_73 : f32 to vector<18x1xf32>
    %201 = arith.divf %199, %200 : vector<18x1xf32>
    %202 = vector.broadcast %201 : vector<18x1xf32> to vector<18x32xf32>
    %203 = arith.subf %189, %202 : vector<18x32xf32>
    %204 = arith.mulf %203, %203 : vector<18x32xf32>
    %cst_74 = arith.constant dense<0.000000e+00> : vector<18xf32>
    %205 = vector.multi_reduction <add>, %204, %cst_74 [1] : vector<18x32xf32> to vector<18xf32>
    %206 = vector.shape_cast %205 : vector<18xf32> to vector<18x1xf32>
    %cst_75 = arith.constant 3.200000e+01 : f32
    %207 = vector.broadcast %cst_75 : f32 to vector<18x1xf32>
    %208 = arith.divf %206, %207 : vector<18x1xf32>
    %cst_76 = arith.constant 9.99999974E-6 : f32
    %209 = vector.broadcast %cst_76 : f32 to vector<18x1xf32>
    %210 = arith.addf %208, %209 : vector<18x1xf32>
    %211 = math.rsqrt %210 : vector<18x1xf32>
    %212 = vector.broadcast %211 : vector<18x1xf32> to vector<18x32xf32>
    %213 = arith.mulf %203, %212 : vector<18x32xf32>
    %214 = vector.broadcast %190 : vector<1x32xf32> to vector<18x32xf32>
    %215 = arith.mulf %213, %214 : vector<18x32xf32>
    %216 = vector.broadcast %191 : vector<1x32xf32> to vector<18x32xf32>
    %217 = arith.addf %215, %216 : vector<18x32xf32>
    %218 = arith.truncf %217 : vector<18x32xf32> to vector<18x32xbf16>
    %c1_77 = arith.constant 1 : index
    %c0_78 = arith.constant 0 : index
    %c0_79 = arith.constant 0 : index
    %219 = vector.load %arg3[%c1_77, %c0_78, %c0_79] : memref<2x32x96xf32, #tpu.memory_space<vmem>>, vector<1x32x96xf32>
    %220 = vector.shape_cast %219 : vector<1x32x96xf32> to vector<32x96xf32>
    %221 = arith.truncf %220 : vector<32x96xf32> to vector<32x96xbf16>
    %cst_80 = arith.constant dense<0.000000e+00> : vector<18x96xf32>
    %222 = tpu.matmul %218, %221, %cst_80 {dimension_numbers = #tpu.dot_dimension_numbers<[1], [0], [0], [1], [0, 0, 1, 1], [], []>} : vector<18x32xbf16>, vector<32x96xbf16>, vector<18x96xf32> -> vector<18x96xf32>
    %223 = vector.broadcast %192 : vector<1x96xf32> to vector<18x96xf32>
    %224 = arith.addf %222, %223 : vector<18x96xf32>
    %225 = vector.extract_strided_slice %224 {offsets = [0, 0], sizes = [9, 16], strides = [1, 1]} : vector<18x96xf32> to vector<9x16xf32>
    %226 = vector.extract_strided_slice %224 {offsets = [0, 32], sizes = [9, 16], strides = [1, 1]} : vector<18x96xf32> to vector<9x16xf32>
    %227 = vector.extract_strided_slice %224 {offsets = [0, 64], sizes = [9, 16], strides = [1, 1]} : vector<18x96xf32> to vector<9x16xf32>
    %228 = arith.truncf %225 : vector<9x16xf32> to vector<9x16xbf16>
    %229 = arith.truncf %226 : vector<9x16xf32> to vector<9x16xbf16>
    %cst_81 = arith.constant dense<0.000000e+00> : vector<9x9xf32>
    %230 = tpu.matmul %228, %229, %cst_81 {dimension_numbers = #tpu.dot_dimension_numbers<[1], [1], [0], [0], [0, 0, 1, 0], [], []>} : vector<9x16xbf16>, vector<9x16xbf16>, vector<9x9xf32> -> vector<9x9xf32>
    %cst_82 = arith.constant 2.500000e-01 : f32
    %231 = vector.broadcast %cst_82 : f32 to vector<9x9xf32>
    %232 = arith.mulf %230, %231 : vector<9x9xf32>
    %cst_83 = arith.constant dense<0xFF800000> : vector<9xf32>
    %233 = vector.multi_reduction <maximumf>, %232, %cst_83 [1] : vector<9x9xf32> to vector<9xf32>
    %234 = vector.shape_cast %233 : vector<9xf32> to vector<9x1xf32>
    %235 = vector.broadcast %234 : vector<9x1xf32> to vector<9x9xf32>
    %236 = arith.subf %232, %235 : vector<9x9xf32>
    %237 = math.exp %236 : vector<9x9xf32>
    %cst_84 = arith.constant dense<0.000000e+00> : vector<9xf32>
    %238 = vector.multi_reduction <add>, %237, %cst_84 [1] : vector<9x9xf32> to vector<9xf32>
    %239 = vector.shape_cast %238 : vector<9xf32> to vector<9x1xf32>
    %240 = tpu.reciprocal %239 {approx = true} : vector<9x1xf32> -> vector<9x1xf32>
    %241 = vector.broadcast %240 : vector<9x1xf32> to vector<9x9xf32>
    %242 = arith.mulf %237, %241 : vector<9x9xf32>
    %243 = arith.truncf %242 : vector<9x9xf32> to vector<9x9xbf16>
    %244 = arith.truncf %227 : vector<9x16xf32> to vector<9x16xbf16>
    %cst_85 = arith.constant dense<0.000000e+00> : vector<9x16xf32>
    %245 = tpu.matmul %243, %244, %cst_85 {dimension_numbers = #tpu.dot_dimension_numbers<[1], [0], [0], [1], [0, 0, 1, 1], [], []>} : vector<9x9xbf16>, vector<9x16xbf16>, vector<9x16xf32> -> vector<9x16xf32>
    %246 = vector.extract_strided_slice %224 {offsets = [0, 16], sizes = [9, 16], strides = [1, 1]} : vector<18x96xf32> to vector<9x16xf32>
    %247 = vector.extract_strided_slice %224 {offsets = [0, 48], sizes = [9, 16], strides = [1, 1]} : vector<18x96xf32> to vector<9x16xf32>
    %248 = vector.extract_strided_slice %224 {offsets = [0, 80], sizes = [9, 16], strides = [1, 1]} : vector<18x96xf32> to vector<9x16xf32>
    %249 = arith.truncf %246 : vector<9x16xf32> to vector<9x16xbf16>
    %250 = arith.truncf %247 : vector<9x16xf32> to vector<9x16xbf16>
    %cst_86 = arith.constant dense<0.000000e+00> : vector<9x9xf32>
    %251 = tpu.matmul %249, %250, %cst_86 {dimension_numbers = #tpu.dot_dimension_numbers<[1], [1], [0], [0], [0, 0, 1, 0], [], []>} : vector<9x16xbf16>, vector<9x16xbf16>, vector<9x9xf32> -> vector<9x9xf32>
    %cst_87 = arith.constant 2.500000e-01 : f32
    %252 = vector.broadcast %cst_87 : f32 to vector<9x9xf32>
    %253 = arith.mulf %251, %252 : vector<9x9xf32>
    %cst_88 = arith.constant dense<0xFF800000> : vector<9xf32>
    %254 = vector.multi_reduction <maximumf>, %253, %cst_88 [1] : vector<9x9xf32> to vector<9xf32>
    %255 = vector.shape_cast %254 : vector<9xf32> to vector<9x1xf32>
    %256 = vector.broadcast %255 : vector<9x1xf32> to vector<9x9xf32>
    %257 = arith.subf %253, %256 : vector<9x9xf32>
    %258 = math.exp %257 : vector<9x9xf32>
    %cst_89 = arith.constant dense<0.000000e+00> : vector<9xf32>
    %259 = vector.multi_reduction <add>, %258, %cst_89 [1] : vector<9x9xf32> to vector<9xf32>
    %260 = vector.shape_cast %259 : vector<9xf32> to vector<9x1xf32>
    %261 = tpu.reciprocal %260 {approx = true} : vector<9x1xf32> -> vector<9x1xf32>
    %262 = vector.broadcast %261 : vector<9x1xf32> to vector<9x9xf32>
    %263 = arith.mulf %258, %262 : vector<9x9xf32>
    %264 = arith.truncf %263 : vector<9x9xf32> to vector<9x9xbf16>
    %265 = arith.truncf %248 : vector<9x16xf32> to vector<9x16xbf16>
    %cst_90 = arith.constant dense<0.000000e+00> : vector<9x16xf32>
    %266 = tpu.matmul %264, %265, %cst_90 {dimension_numbers = #tpu.dot_dimension_numbers<[1], [0], [0], [1], [0, 0, 1, 1], [], []>} : vector<9x9xbf16>, vector<9x16xbf16>, vector<9x16xf32> -> vector<9x16xf32>
    %267 = tpu.concatenate %245, %266 in 1 : vector<9x16xf32>, vector<9x16xf32> -> vector<9x32xf32>
    %268 = vector.extract_strided_slice %224 {offsets = [9, 0], sizes = [9, 16], strides = [1, 1]} : vector<18x96xf32> to vector<9x16xf32>
    %269 = vector.extract_strided_slice %224 {offsets = [9, 32], sizes = [9, 16], strides = [1, 1]} : vector<18x96xf32> to vector<9x16xf32>
    %270 = vector.extract_strided_slice %224 {offsets = [9, 64], sizes = [9, 16], strides = [1, 1]} : vector<18x96xf32> to vector<9x16xf32>
    %271 = arith.truncf %268 : vector<9x16xf32> to vector<9x16xbf16>
    %272 = arith.truncf %269 : vector<9x16xf32> to vector<9x16xbf16>
    %cst_91 = arith.constant dense<0.000000e+00> : vector<9x9xf32>
    %273 = tpu.matmul %271, %272, %cst_91 {dimension_numbers = #tpu.dot_dimension_numbers<[1], [1], [0], [0], [0, 0, 1, 0], [], []>} : vector<9x16xbf16>, vector<9x16xbf16>, vector<9x9xf32> -> vector<9x9xf32>
    %cst_92 = arith.constant 2.500000e-01 : f32
    %274 = vector.broadcast %cst_92 : f32 to vector<9x9xf32>
    %275 = arith.mulf %273, %274 : vector<9x9xf32>
    %cst_93 = arith.constant dense<0xFF800000> : vector<9xf32>
    %276 = vector.multi_reduction <maximumf>, %275, %cst_93 [1] : vector<9x9xf32> to vector<9xf32>
    %277 = vector.shape_cast %276 : vector<9xf32> to vector<9x1xf32>
    %278 = vector.broadcast %277 : vector<9x1xf32> to vector<9x9xf32>
    %279 = arith.subf %275, %278 : vector<9x9xf32>
    %280 = math.exp %279 : vector<9x9xf32>
    %cst_94 = arith.constant dense<0.000000e+00> : vector<9xf32>
    %281 = vector.multi_reduction <add>, %280, %cst_94 [1] : vector<9x9xf32> to vector<9xf32>
    %282 = vector.shape_cast %281 : vector<9xf32> to vector<9x1xf32>
    %283 = tpu.reciprocal %282 {approx = true} : vector<9x1xf32> -> vector<9x1xf32>
    %284 = vector.broadcast %283 : vector<9x1xf32> to vector<9x9xf32>
    %285 = arith.mulf %280, %284 : vector<9x9xf32>
    %286 = arith.truncf %285 : vector<9x9xf32> to vector<9x9xbf16>
    %287 = arith.truncf %270 : vector<9x16xf32> to vector<9x16xbf16>
    %cst_95 = arith.constant dense<0.000000e+00> : vector<9x16xf32>
    %288 = tpu.matmul %286, %287, %cst_95 {dimension_numbers = #tpu.dot_dimension_numbers<[1], [0], [0], [1], [0, 0, 1, 1], [], []>} : vector<9x9xbf16>, vector<9x16xbf16>, vector<9x16xf32> -> vector<9x16xf32>
    %289 = vector.extract_strided_slice %224 {offsets = [9, 16], sizes = [9, 16], strides = [1, 1]} : vector<18x96xf32> to vector<9x16xf32>
    %290 = vector.extract_strided_slice %224 {offsets = [9, 48], sizes = [9, 16], strides = [1, 1]} : vector<18x96xf32> to vector<9x16xf32>
    %291 = vector.extract_strided_slice %224 {offsets = [9, 80], sizes = [9, 16], strides = [1, 1]} : vector<18x96xf32> to vector<9x16xf32>
    %292 = arith.truncf %289 : vector<9x16xf32> to vector<9x16xbf16>
    %293 = arith.truncf %290 : vector<9x16xf32> to vector<9x16xbf16>
    %cst_96 = arith.constant dense<0.000000e+00> : vector<9x9xf32>
    %294 = tpu.matmul %292, %293, %cst_96 {dimension_numbers = #tpu.dot_dimension_numbers<[1], [1], [0], [0], [0, 0, 1, 0], [], []>} : vector<9x16xbf16>, vector<9x16xbf16>, vector<9x9xf32> -> vector<9x9xf32>
    %cst_97 = arith.constant 2.500000e-01 : f32
    %295 = vector.broadcast %cst_97 : f32 to vector<9x9xf32>
    %296 = arith.mulf %294, %295 : vector<9x9xf32>
    %cst_98 = arith.constant dense<0xFF800000> : vector<9xf32>
    %297 = vector.multi_reduction <maximumf>, %296, %cst_98 [1] : vector<9x9xf32> to vector<9xf32>
    %298 = vector.shape_cast %297 : vector<9xf32> to vector<9x1xf32>
    %299 = vector.broadcast %298 : vector<9x1xf32> to vector<9x9xf32>
    %300 = arith.subf %296, %299 : vector<9x9xf32>
    %301 = math.exp %300 : vector<9x9xf32>
    %cst_99 = arith.constant dense<0.000000e+00> : vector<9xf32>
    %302 = vector.multi_reduction <add>, %301, %cst_99 [1] : vector<9x9xf32> to vector<9xf32>
    %303 = vector.shape_cast %302 : vector<9xf32> to vector<9x1xf32>
    %304 = tpu.reciprocal %303 {approx = true} : vector<9x1xf32> -> vector<9x1xf32>
    %305 = vector.broadcast %304 : vector<9x1xf32> to vector<9x9xf32>
    %306 = arith.mulf %301, %305 : vector<9x9xf32>
    %307 = arith.truncf %306 : vector<9x9xf32> to vector<9x9xbf16>
    %308 = arith.truncf %291 : vector<9x16xf32> to vector<9x16xbf16>
    %cst_100 = arith.constant dense<0.000000e+00> : vector<9x16xf32>
    %309 = tpu.matmul %307, %308, %cst_100 {dimension_numbers = #tpu.dot_dimension_numbers<[1], [0], [0], [1], [0, 0, 1, 1], [], []>} : vector<9x9xbf16>, vector<9x16xbf16>, vector<9x16xf32> -> vector<9x16xf32>
    %310 = tpu.concatenate %288, %309 in 1 : vector<9x16xf32>, vector<9x16xf32> -> vector<9x32xf32>
    %311 = tpu.concatenate %267, %310 in 0 : vector<9x32xf32>, vector<9x32xf32> -> vector<18x32xf32>
    %312 = arith.truncf %311 : vector<18x32xf32> to vector<18x32xbf16>
    %c1_101 = arith.constant 1 : index
    %c0_102 = arith.constant 0 : index
    %c0_103 = arith.constant 0 : index
    %313 = vector.load %arg4[%c1_101, %c0_102, %c0_103] : memref<2x32x32xf32, #tpu.memory_space<vmem>>, vector<1x32x32xf32>
    %314 = vector.shape_cast %313 : vector<1x32x32xf32> to vector<32x32xf32>
    %315 = arith.truncf %314 : vector<32x32xf32> to vector<32x32xbf16>
    %cst_104 = arith.constant dense<0.000000e+00> : vector<18x32xf32>
    %316 = tpu.matmul %312, %315, %cst_104 {dimension_numbers = #tpu.dot_dimension_numbers<[1], [0], [0], [1], [0, 0, 1, 1], [], []>} : vector<18x32xbf16>, vector<32x32xbf16>, vector<18x32xf32> -> vector<18x32xf32>
    %317 = arith.addf %189, %316 : vector<18x32xf32>
    %318 = vector.broadcast %193 : vector<1x32xf32> to vector<18x32xf32>
    %319 = arith.addf %317, %318 : vector<18x32xf32>
    %cst_105 = arith.constant dense<0.000000e+00> : vector<18xf32>
    %320 = vector.multi_reduction <add>, %319, %cst_105 [1] : vector<18x32xf32> to vector<18xf32>
    %321 = vector.shape_cast %320 : vector<18xf32> to vector<18x1xf32>
    %cst_106 = arith.constant 3.200000e+01 : f32
    %322 = vector.broadcast %cst_106 : f32 to vector<18x1xf32>
    %323 = arith.divf %321, %322 : vector<18x1xf32>
    %324 = vector.broadcast %323 : vector<18x1xf32> to vector<18x32xf32>
    %325 = arith.subf %319, %324 : vector<18x32xf32>
    %326 = arith.mulf %325, %325 : vector<18x32xf32>
    %cst_107 = arith.constant dense<0.000000e+00> : vector<18xf32>
    %327 = vector.multi_reduction <add>, %326, %cst_107 [1] : vector<18x32xf32> to vector<18xf32>
    %328 = vector.shape_cast %327 : vector<18xf32> to vector<18x1xf32>
    %cst_108 = arith.constant 3.200000e+01 : f32
    %329 = vector.broadcast %cst_108 : f32 to vector<18x1xf32>
    %330 = arith.divf %328, %329 : vector<18x1xf32>
    %cst_109 = arith.constant 9.99999974E-6 : f32
    %331 = vector.broadcast %cst_109 : f32 to vector<18x1xf32>
    %332 = arith.addf %330, %331 : vector<18x1xf32>
    %333 = math.rsqrt %332 : vector<18x1xf32>
    %334 = vector.broadcast %333 : vector<18x1xf32> to vector<18x32xf32>
    %335 = arith.mulf %325, %334 : vector<18x32xf32>
    %336 = vector.broadcast %194 : vector<1x32xf32> to vector<18x32xf32>
    %337 = arith.mulf %335, %336 : vector<18x32xf32>
    %338 = vector.broadcast %195 : vector<1x32xf32> to vector<18x32xf32>
    %339 = arith.addf %337, %338 : vector<18x32xf32>
    %340 = arith.truncf %339 : vector<18x32xf32> to vector<18x32xbf16>
    %c1_110 = arith.constant 1 : index
    %c0_111 = arith.constant 0 : index
    %c0_112 = arith.constant 0 : index
    %341 = vector.load %arg5[%c1_110, %c0_111, %c0_112] : memref<2x32x64xf32, #tpu.memory_space<vmem>>, vector<1x32x64xf32>
    %342 = vector.shape_cast %341 : vector<1x32x64xf32> to vector<32x64xf32>
    %343 = arith.truncf %342 : vector<32x64xf32> to vector<32x64xbf16>
    %cst_113 = arith.constant dense<0.000000e+00> : vector<18x64xf32>
    %344 = tpu.matmul %340, %343, %cst_113 {dimension_numbers = #tpu.dot_dimension_numbers<[1], [0], [0], [1], [0, 0, 1, 1], [], []>} : vector<18x32xbf16>, vector<32x64xbf16>, vector<18x64xf32> -> vector<18x64xf32>
    %345 = vector.broadcast %196 : vector<1x64xf32> to vector<18x64xf32>
    %346 = arith.addf %344, %345 : vector<18x64xf32>
    %cst_114 = arith.constant 5.000000e-01 : f32
    %347 = vector.broadcast %cst_114 : f32 to vector<18x64xf32>
    %348 = arith.mulf %347, %346 : vector<18x64xf32>
    %cst_115 = arith.constant 4.471500e-02 : f32
    %349 = vector.broadcast %cst_115 : f32 to vector<18x64xf32>
    %350 = arith.mulf %349, %346 : vector<18x64xf32>
    %351 = arith.mulf %350, %346 : vector<18x64xf32>
    %352 = arith.mulf %351, %346 : vector<18x64xf32>
    %353 = arith.addf %346, %352 : vector<18x64xf32>
    %cst_116 = arith.constant 0.797884583 : f32
    %354 = vector.broadcast %cst_116 : f32 to vector<18x64xf32>
    %355 = arith.mulf %354, %353 : vector<18x64xf32>
    %356 = math.tanh %355 : vector<18x64xf32>
    %cst_117 = arith.constant 1.000000e+00 : f32
    %357 = vector.broadcast %cst_117 : f32 to vector<18x64xf32>
    %358 = arith.addf %357, %356 : vector<18x64xf32>
    %359 = arith.mulf %348, %358 : vector<18x64xf32>
    %360 = arith.truncf %359 : vector<18x64xf32> to vector<18x64xbf16>
    %c1_118 = arith.constant 1 : index
    %c0_119 = arith.constant 0 : index
    %c0_120 = arith.constant 0 : index
    %361 = vector.load %arg6[%c1_118, %c0_119, %c0_120] : memref<2x64x32xf32, #tpu.memory_space<vmem>>, vector<1x64x32xf32>
    %362 = vector.shape_cast %361 : vector<1x64x32xf32> to vector<64x32xf32>
    %363 = arith.truncf %362 : vector<64x32xf32> to vector<64x32xbf16>
    %cst_121 = arith.constant dense<0.000000e+00> : vector<18x32xf32>
    %364 = tpu.matmul %360, %363, %cst_121 {dimension_numbers = #tpu.dot_dimension_numbers<[1], [0], [0], [1], [0, 0, 1, 1], [], []>} : vector<18x64xbf16>, vector<64x32xbf16>, vector<18x32xf32> -> vector<18x32xf32>
    %365 = arith.addf %319, %364 : vector<18x32xf32>
    %366 = vector.broadcast %197 : vector<1x32xf32> to vector<18x32xf32>
    %367 = arith.addf %365, %366 : vector<18x32xf32>
    %c25 = arith.constant 25 : index
    %c0_122 = arith.constant 0 : index
    %368 = vector.load %arg9[%c25, %c0_122] : memref<46x96xf32, #tpu.memory_space<vmem>>, vector<1x32xf32>
    %c26 = arith.constant 26 : index
    %c0_123 = arith.constant 0 : index
    %369 = vector.load %arg9[%c26, %c0_123] : memref<46x96xf32, #tpu.memory_space<vmem>>, vector<1x32xf32>
    %cst_124 = arith.constant dense<0.000000e+00> : vector<18xf32>
    %370 = vector.multi_reduction <add>, %367, %cst_124 [1] : vector<18x32xf32> to vector<18xf32>
    %371 = vector.shape_cast %370 : vector<18xf32> to vector<18x1xf32>
    %cst_125 = arith.constant 3.200000e+01 : f32
    %372 = vector.broadcast %cst_125 : f32 to vector<18x1xf32>
    %373 = arith.divf %371, %372 : vector<18x1xf32>
    %374 = vector.broadcast %373 : vector<18x1xf32> to vector<18x32xf32>
    %375 = arith.subf %367, %374 : vector<18x32xf32>
    %376 = arith.mulf %375, %375 : vector<18x32xf32>
    %cst_126 = arith.constant dense<0.000000e+00> : vector<18xf32>
    %377 = vector.multi_reduction <add>, %376, %cst_126 [1] : vector<18x32xf32> to vector<18xf32>
    %378 = vector.shape_cast %377 : vector<18xf32> to vector<18x1xf32>
    %cst_127 = arith.constant 3.200000e+01 : f32
    %379 = vector.broadcast %cst_127 : f32 to vector<18x1xf32>
    %380 = arith.divf %378, %379 : vector<18x1xf32>
    %cst_128 = arith.constant 9.99999974E-6 : f32
    %381 = vector.broadcast %cst_128 : f32 to vector<18x1xf32>
    %382 = arith.addf %380, %381 : vector<18x1xf32>
    %383 = math.rsqrt %382 : vector<18x1xf32>
    %384 = vector.broadcast %383 : vector<18x1xf32> to vector<18x32xf32>
    %385 = arith.mulf %375, %384 : vector<18x32xf32>
    %386 = vector.broadcast %368 : vector<1x32xf32> to vector<18x32xf32>
    %387 = arith.mulf %385, %386 : vector<18x32xf32>
    %388 = vector.broadcast %369 : vector<1x32xf32> to vector<18x32xf32>
    %389 = arith.addf %387, %388 : vector<18x32xf32>
    %c27 = arith.constant 27 : index
    %c0_129 = arith.constant 0 : index
    %390 = vector.load %arg9[%c27, %c0_129] : memref<46x96xf32, #tpu.memory_space<vmem>>, vector<10x32xf32>
    %c37 = arith.constant 37 : index
    %c0_130 = arith.constant 0 : index
    %391 = vector.load %arg9[%c37, %c0_130] : memref<46x96xf32, #tpu.memory_space<vmem>>, vector<5x32xf32>
    %c42 = arith.constant 42 : index
    %c0_131 = arith.constant 0 : index
    %392 = vector.load %arg9[%c42, %c0_131] : memref<46x96xf32, #tpu.memory_space<vmem>>, vector<1x32xf32>
    %c43 = arith.constant 43 : index
    %c0_132 = arith.constant 0 : index
    %393 = vector.load %arg9[%c43, %c0_132] : memref<46x96xf32, #tpu.memory_space<vmem>>, vector<1x32xf32>
    %c44 = arith.constant 44 : index
    %c0_133 = arith.constant 0 : index
    %394 = vector.load %arg9[%c44, %c0_133] : memref<46x96xf32, #tpu.memory_space<vmem>>, vector<1x32xf32>
    %c45 = arith.constant 45 : index
    %c0_134 = arith.constant 0 : index
    %395 = vector.load %arg9[%c45, %c0_134] : memref<46x96xf32, #tpu.memory_space<vmem>>, vector<1x10xf32>
    %c0_135 = arith.constant 0 : index
    %c0_136 = arith.constant 0 : index
    %396 = vector.load %arg1[%c0_135, %c0_136] : memref<10x1xi32, #tpu.memory_space<vmem>>, vector<10x1xi32>
    %397 = tpu.iota {dimensions = array<i32: 1>} : vector<10x10xi32>
    %398 = vector.broadcast %396 : vector<10x1xi32> to vector<10x10xi32>
    %399 = arith.cmpi eq, %397, %398 : vector<10x10xi32>
    %400 = arith.extui %399 : vector<10x10xi1> to vector<10x10xi32>
    %401 = arith.sitofp %400 : vector<10x10xi32> to vector<10x10xf32>
    %cst_137 = arith.constant dense<0.000000e+00> : vector<10x32xf32>
    %402 = tpu.matmul %401, %390, %cst_137 {dimension_numbers = #tpu.dot_dimension_numbers<[1], [0], [0], [1], [0, 0, 1, 1], [], []>} : vector<10x10xf32>, vector<10x32xf32>, vector<10x32xf32> -> vector<10x32xf32>
    %403 = tpu.concatenate %391, %391 in 0 : vector<5x32xf32>, vector<5x32xf32> -> vector<10x32xf32>
    %404 = arith.addf %402, %403 : vector<10x32xf32>
    %c0_138 = arith.constant 0 : index
    %c0_139 = arith.constant 0 : index
    %405 = vector.load %arg7[%c0_138, %c0_139] : memref<32x96xf32, #tpu.memory_space<vmem>>, vector<32x96xf32>
    %406 = arith.truncf %404 : vector<10x32xf32> to vector<10x32xbf16>
    %407 = vector.extract_strided_slice %405 {offsets = [0, 0], sizes = [32, 32], strides = [1, 1]} : vector<32x96xf32> to vector<32x32xf32>
    %408 = arith.truncf %407 : vector<32x32xf32> to vector<32x32xbf16>
    %cst_140 = arith.constant dense<0.000000e+00> : vector<10x32xf32>
    %409 = tpu.matmul %406, %408, %cst_140 {dimension_numbers = #tpu.dot_dimension_numbers<[1], [0], [0], [1], [0, 0, 1, 1], [], []>} : vector<10x32xbf16>, vector<32x32xbf16>, vector<10x32xf32> -> vector<10x32xf32>
    %410 = vector.broadcast %392 : vector<1x32xf32> to vector<10x32xf32>
    %411 = arith.addf %409, %410 : vector<10x32xf32>
    %412 = arith.truncf %389 : vector<18x32xf32> to vector<18x32xbf16>
    %413 = vector.extract_strided_slice %405 {offsets = [0, 32], sizes = [32, 64], strides = [1, 1]} : vector<32x96xf32> to vector<32x64xf32>
    %414 = arith.truncf %413 : vector<32x64xf32> to vector<32x64xbf16>
    %cst_141 = arith.constant dense<0.000000e+00> : vector<18x64xf32>
    %415 = tpu.matmul %412, %414, %cst_141 {dimension_numbers = #tpu.dot_dimension_numbers<[1], [0], [0], [1], [0, 0, 1, 1], [], []>} : vector<18x32xbf16>, vector<32x64xbf16>, vector<18x64xf32> -> vector<18x64xf32>
    %416 = vector.extract_strided_slice %415 {offsets = [0, 0], sizes = [18, 32], strides = [1, 1]} : vector<18x64xf32> to vector<18x32xf32>
    %417 = vector.broadcast %393 : vector<1x32xf32> to vector<18x32xf32>
    %418 = arith.addf %416, %417 : vector<18x32xf32>
    %419 = vector.extract_strided_slice %415 {offsets = [0, 32], sizes = [18, 32], strides = [1, 1]} : vector<18x64xf32> to vector<18x32xf32>
    %420 = vector.broadcast %394 : vector<1x32xf32> to vector<18x32xf32>
    %421 = arith.addf %419, %420 : vector<18x32xf32>
    %422 = vector.extract_strided_slice %411 {offsets = [0, 0], sizes = [5, 32], strides = [1, 1]} : vector<10x32xf32> to vector<5x32xf32>
    %423 = vector.extract_strided_slice %418 {offsets = [0, 0], sizes = [9, 32], strides = [1, 1]} : vector<18x32xf32> to vector<9x32xf32>
    %424 = vector.extract_strided_slice %421 {offsets = [0, 0], sizes = [9, 32], strides = [1, 1]} : vector<18x32xf32> to vector<9x32xf32>
    %425 = arith.truncf %422 : vector<5x32xf32> to vector<5x32xbf16>
    %426 = arith.truncf %423 : vector<9x32xf32> to vector<9x32xbf16>
    %cst_142 = arith.constant dense<0.000000e+00> : vector<5x9xf32>
    %427 = tpu.matmul %425, %426, %cst_142 {dimension_numbers = #tpu.dot_dimension_numbers<[1], [1], [0], [0], [0, 0, 1, 0], [], []>} : vector<5x32xbf16>, vector<9x32xbf16>, vector<5x9xf32> -> vector<5x9xf32>
    %cst_143 = arith.constant 0.176776692 : f32
    %428 = vector.broadcast %cst_143 : f32 to vector<5x9xf32>
    %429 = arith.mulf %427, %428 : vector<5x9xf32>
    %cst_144 = arith.constant dense<0xFF800000> : vector<5xf32>
    %430 = vector.multi_reduction <maximumf>, %429, %cst_144 [1] : vector<5x9xf32> to vector<5xf32>
    %431 = vector.shape_cast %430 : vector<5xf32> to vector<5x1xf32>
    %432 = vector.broadcast %431 : vector<5x1xf32> to vector<5x9xf32>
    %433 = arith.subf %429, %432 : vector<5x9xf32>
    %434 = math.exp %433 : vector<5x9xf32>
    %cst_145 = arith.constant dense<0.000000e+00> : vector<5xf32>
    %435 = vector.multi_reduction <add>, %434, %cst_145 [1] : vector<5x9xf32> to vector<5xf32>
    %436 = vector.shape_cast %435 : vector<5xf32> to vector<5x1xf32>
    %437 = tpu.reciprocal %436 {approx = true} : vector<5x1xf32> -> vector<5x1xf32>
    %438 = vector.broadcast %437 : vector<5x1xf32> to vector<5x9xf32>
    %439 = arith.mulf %434, %438 : vector<5x9xf32>
    %440 = arith.truncf %439 : vector<5x9xf32> to vector<5x9xbf16>
    %441 = arith.truncf %424 : vector<9x32xf32> to vector<9x32xbf16>
    %cst_146 = arith.constant dense<0.000000e+00> : vector<5x32xf32>
    %442 = tpu.matmul %440, %441, %cst_146 {dimension_numbers = #tpu.dot_dimension_numbers<[1], [0], [0], [1], [0, 0, 1, 1], [], []>} : vector<5x9xbf16>, vector<9x32xbf16>, vector<5x32xf32> -> vector<5x32xf32>
    %443 = vector.extract_strided_slice %411 {offsets = [5, 0], sizes = [5, 32], strides = [1, 1]} : vector<10x32xf32> to vector<5x32xf32>
    %444 = vector.extract_strided_slice %418 {offsets = [9, 0], sizes = [9, 32], strides = [1, 1]} : vector<18x32xf32> to vector<9x32xf32>
    %445 = vector.extract_strided_slice %421 {offsets = [9, 0], sizes = [9, 32], strides = [1, 1]} : vector<18x32xf32> to vector<9x32xf32>
    %446 = arith.truncf %443 : vector<5x32xf32> to vector<5x32xbf16>
    %447 = arith.truncf %444 : vector<9x32xf32> to vector<9x32xbf16>
    %cst_147 = arith.constant dense<0.000000e+00> : vector<5x9xf32>
    %448 = tpu.matmul %446, %447, %cst_147 {dimension_numbers = #tpu.dot_dimension_numbers<[1], [1], [0], [0], [0, 0, 1, 0], [], []>} : vector<5x32xbf16>, vector<9x32xbf16>, vector<5x9xf32> -> vector<5x9xf32>
    %cst_148 = arith.constant 0.176776692 : f32
    %449 = vector.broadcast %cst_148 : f32 to vector<5x9xf32>
    %450 = arith.mulf %448, %449 : vector<5x9xf32>
    %cst_149 = arith.constant dense<0xFF800000> : vector<5xf32>
    %451 = vector.multi_reduction <maximumf>, %450, %cst_149 [1] : vector<5x9xf32> to vector<5xf32>
    %452 = vector.shape_cast %451 : vector<5xf32> to vector<5x1xf32>
    %453 = vector.broadcast %452 : vector<5x1xf32> to vector<5x9xf32>
    %454 = arith.subf %450, %453 : vector<5x9xf32>
    %455 = math.exp %454 : vector<5x9xf32>
    %cst_150 = arith.constant dense<0.000000e+00> : vector<5xf32>
    %456 = vector.multi_reduction <add>, %455, %cst_150 [1] : vector<5x9xf32> to vector<5xf32>
    %457 = vector.shape_cast %456 : vector<5xf32> to vector<5x1xf32>
    %458 = tpu.reciprocal %457 {approx = true} : vector<5x1xf32> -> vector<5x1xf32>
    %459 = vector.broadcast %458 : vector<5x1xf32> to vector<5x9xf32>
    %460 = arith.mulf %455, %459 : vector<5x9xf32>
    %461 = arith.truncf %460 : vector<5x9xf32> to vector<5x9xbf16>
    %462 = arith.truncf %445 : vector<9x32xf32> to vector<9x32xbf16>
    %cst_151 = arith.constant dense<0.000000e+00> : vector<5x32xf32>
    %463 = tpu.matmul %461, %462, %cst_151 {dimension_numbers = #tpu.dot_dimension_numbers<[1], [0], [0], [1], [0, 0, 1, 1], [], []>} : vector<5x9xbf16>, vector<9x32xbf16>, vector<5x32xf32> -> vector<5x32xf32>
    %464 = tpu.concatenate %439, %460 in 0 : vector<5x9xf32>, vector<5x9xf32> -> vector<10x9xf32>
    %465 = tpu.concatenate %442, %463 in 0 : vector<5x32xf32>, vector<5x32xf32> -> vector<10x32xf32>
    %466 = arith.addf %404, %465 : vector<10x32xf32>
    %467 = arith.truncf %466 : vector<10x32xf32> to vector<10x32xbf16>
    %c0_152 = arith.constant 0 : index
    %c0_153 = arith.constant 0 : index
    %468 = vector.load %arg8[%c0_152, %c0_153] : memref<32x10xf32, #tpu.memory_space<vmem>>, vector<32x10xf32>
    %469 = arith.truncf %468 : vector<32x10xf32> to vector<32x10xbf16>
    %cst_154 = arith.constant dense<0.000000e+00> : vector<10x10xf32>
    %470 = tpu.matmul %467, %469, %cst_154 {dimension_numbers = #tpu.dot_dimension_numbers<[1], [0], [0], [1], [0, 0, 1, 1], [], []>} : vector<10x32xbf16>, vector<32x10xbf16>, vector<10x10xf32> -> vector<10x10xf32>
    %471 = vector.broadcast %395 : vector<1x10xf32> to vector<10x10xf32>
    %472 = arith.addf %470, %471 : vector<10x10xf32>
    %cst_155 = arith.constant dense<0xFF800000> : vector<10xf32>
    %473 = vector.multi_reduction <maximumf>, %472, %cst_155 [1] : vector<10x10xf32> to vector<10xf32>
    %474 = vector.shape_cast %473 : vector<10xf32> to vector<10x1xf32>
    %475 = vector.broadcast %474 : vector<10x1xf32> to vector<10x10xf32>
    %476 = arith.subf %472, %475 : vector<10x10xf32>
    %477 = math.exp %476 : vector<10x10xf32>
    %cst_156 = arith.constant dense<0.000000e+00> : vector<10xf32>
    %478 = vector.multi_reduction <add>, %477, %cst_156 [1] : vector<10x10xf32> to vector<10xf32>
    %479 = vector.shape_cast %478 : vector<10xf32> to vector<10x1xf32>
    %480 = vector.broadcast %479 : vector<10x1xf32> to vector<10x10xf32>
    %481 = arith.divf %477, %480 : vector<10x10xf32>
    %cst_157 = arith.constant 0.000000e+00 : f32
    %482 = vector.broadcast %cst_157 : f32 to vector<10x99xf32>
    %483 = tpu.concatenate %472, %481, %464, %482 in 1 : vector<10x10xf32>, vector<10x10xf32>, vector<10x9xf32>, vector<10x99xf32> -> vector<10x128xf32>
    %c0_158 = arith.constant 0 : index
    %c0_159 = arith.constant 0 : index
    %484 = vector.load %arg10[%c0_158, %c0_159] : memref<10x128xf32, #tpu.memory_space<vmem>>, vector<10x128xf32>
    tpu.vector_store %arg10[%c0_158, %c0_159], %483 {strides = array<i32>} : memref<10x128xf32, #tpu.memory_space<vmem>>, vector<10x128xf32>,
    return
  }
}

</mosaic_0001>

<bundles_post_ra>
// kernel: model_forward.1
= control target key start
LH: loop header
LB: loop body
LE: loop exit
PB: predicated region body
PF: predicated region fallthrough
CT: control target
= control target key end

     0   :  { %v3292_v0 = vmov 0   ;;  %vm78_vm0 = vcmask 523264   ;;  %vm136_vm1 = vcmask 1040384   ;;  %vm149_vm2 = vcmask 261120   ;;  %s3295_s25 = smov 96   ;;  %s3296_s26 = smov 80   ;;  %s4097_s2 = inlined_call_operand.vmem [shape: f32[192,32], index: 2, kind: input, shape index: {}]   ;;  %s4098_s0 = inlined_call_operand.vmem [shape: f32[16,192], index: 0, kind: input, shape index: {}]   ;;  %s4099_s9 = inlined_call_operand.vmem [shape: f32[46,96], index: 9, kind: input, shape index: {}]   ;;  %s4100_s3 = inlined_call_operand.vmem [shape: f32[2,32,96], index: 3, kind: input, shape index: {}]   ;;  %s4101_s4 = inlined_call_operand.vmem [shape: f32[2,32,32], index: 4, kind: input, shape index: {}]   ;;  %s4102_s5 = inlined_call_operand.vmem [shape: f32[2,32,64], index: 5, kind: input, shape index: {}]   ;;  %s4103_s6 = inlined_call_operand.vmem [shape: f32[2,64,32], index: 6, kind: input, shape index: {}]   ;;  %s4104_s1 = inlined_call_operand.vmem [shape: s32[10,1], index: 1, kind: input, shape index: {}]   ;;  %s4105_s7 = inlined_call_operand.vmem [shape: f32[32,96], index: 7, kind: input, shape index: {}]   ;;  %s4106_s8 = inlined_call_operand.vmem [shape: f32[32,10], index: 8, kind: input, shape index: {}]   ;;  %s4107_s10 = inlined_call_operand.vmem [shape: f32[10,128], index: 10, kind: output, shape index: {}]  }
   0x1   :  { %82 = vmatprep.subr.bf16.mxu0 %v3292_v0  ;;  %v56_v1 = vld [vmem:[%s4097_s2 + $0x70] sm:$0xff]  ;;  %v57_v2 = vld [vmem:[%s4097_s2 + $0x78] sm:$0xff]  ;;  %v54_v3 = vld [vmem:[%s4097_s2 + $0x60] sm:$0xff]  ;;  %3168 = vset.pattern.permute.xlu0 %v3292_v0  ;;  %vm156_vm3 = vcmask 254976   ;;  %vm139_vm4 = vcmask 1041408   ;;  %vm3294_vm5 = vmmov 0  }
   0x2   :  { %v73_v4 = vpack.c.bf16 %v57_v2, %v56_v1  ;;  %v55_v5 = vld [vmem:[%s4097_s2 + $0x68] sm:$0xff]  ;;  %3169 = vset.pattern.permute.xlu1 %v3292_v0  ;;  %v52_v7 = vld [vmem:[%s4097_s2 + $0x50] sm:$0xff]  ;;  %v53_v8 = vld [vmem:[%s4097_s2 + $0x58] sm:$0xff]  ;;  %s3297_s27 = smov 112   ;;  %vm275_vm6 = vcmask 130048   ;;  %vm325_vm7 = vcmask 72704  }
   0x3   :  { %v72_v6 = vpack.c.bf16 %v55_v5, %v54_v3  ;;  %v71_v9 = vpack.c.bf16 %v53_v8, %v52_v7  ;;  %v50_v10 = vld [vmem:[%s4097_s2 + $0x40] sm:$0xff]  ;;  %v51_v11 = vld [vmem:[%s4097_s2 + $0x48] sm:$0xff]  ;;  %v39_v13 = vld [vmem:[%s4098_s0 + $0x18] sm:$0xff]  ;;  %vm329_vm8 = vcmask 65536   ;;  %s3298_s28 = smov 64   ;;  %vm355_vm9 = vcmask 1043456  }
   0x4   :  { %83 = vmatpush1.bf16.msra.mxu0 %v73_v4  ;;  %v37_v12 = vld [vmem:[%s4098_s0 + $0x8] sm:$0xff]  ;;  %v70_v15 = vpack.c.bf16 %v51_v11, %v50_v10  ;;  %v48_v16 = vld [vmem:[%s4097_s2 + $0x30] sm:$0xff]  ;;  %v49_v17 = vld [vmem:[%s4097_s2 + $0x38] sm:$0xff]  ;;  %vm356_vm10 = vcmask 1044480   ;;  %s3300_s29 = smov 48   ;;  %s3301_s16 = smov 16  }
   0x5   :  { %84 = vmatprep.subr.bf16.mxu0 %v3292_v0  ;;  %v41_v14 = vpack.c.bf16 %v39_v13, %v37_v12  ;;  %v69_v18 = vpack.c.bf16 %v49_v17, %v48_v16  ;;  %v46_v19 = vld [vmem:[%s4097_s2 + $0x20] sm:$0xff]  ;;  %v47_v20 = vld [vmem:[%s4097_s2 + $0x28] sm:$0xff]  ;;  %v44_v22 = vld [vmem:[%s4097_s2 + $0x10] sm:$0xff]  ;;  %vm2151_vm11 = vcmask 80896   ;;  %vm2422_vm14 = vcmask 69632   ;;  %s3302_s11 = smov 32  }
   0x6   :  { %v68_v21 = vpack.c.bf16 %v47_v20, %v46_v19  ;;  %v45_v23 = vld [vmem:[%s4097_s2 + $0x18] sm:$0xff]  ;;  %v42_v25 = vld [vmem:[%s4097_s2] sm:$0xff]  ;;  %v43_v26 = vld [vmem:[%s4097_s2 + $0x8] sm:$0xff]  ;;  %vm2685_vm15 = vcmask 74752  }
   0x7   :  { %2734 = vmatprep.mubr.msk.bf16.mxu0 %vm78_vm0, %v41_v14  ;;  %v67_v24 = vpack.c.bf16 %v45_v23, %v44_v22  ;;  %v66_v27 = vpack.c.bf16 %v43_v26, %v42_v25  ;;  %v64_v28 = vld [vmem:[%s4097_s2 + $0xb0] sm:$0xff]  ;;  %v65_v29 = vld [vmem:[%s4097_s2 + $0xb8] sm:$0xff]  ;;  %v62_v31 = vld [vmem:[%s4097_s2 + $0xa0] sm:$0xff] }
   0x8   :  { %85 = vmatpush1.bf16.msra.mxu0 %v72_v6  ;;  %v77_v30 = vpack.c.bf16 %v65_v29, %v64_v28  ;;  %v63_v32 = vld [vmem:[%s4097_s2 + $0xa8] sm:$0xff]  ;;  %v60_v34 = vld [vmem:[%s4097_s2 + $0x90] sm:$0xff]  ;;  %v61_v35 = vld [vmem:[%s4097_s2 + $0x98] sm:$0xff] }
   0x9   :  { %86 = vmatprep.subr.bf16.mxu0 %v3292_v0  ;;  %v76_v33 = vpack.c.bf16 %v63_v32, %v62_v31  ;;  %v75_v36 = vpack.c.bf16 %v61_v35, %v60_v34  ;;  %v58_v37 = vld [vmem:[%s4097_s2 + $0x80] sm:$0xff]  ;;  %v59_v38 = vld [vmem:[%s4097_s2 + $0x88] sm:$0xff]  ;;  %v38_v41 = vld [vmem:[%s4098_s0 + $0x10] sm:$0xff] }
   0xa   :  { %v74_v39 = vpack.c.bf16 %v59_v38, %v58_v37  ;;  %v36_v40 = vld [vmem:[%s4098_s0] sm:$0xff]  ;;  %v209_v11 = vld [vmem:[%s4100_s3 + $0x10] sm:$0xff]  ;;  %v210_v12 = vld [vmem:[%s4100_s3 + $0x18] sm:$0xff] }
   0xb   :  { %v40_v42 = vpack.c.bf16 %v38_v41, %v36_v40  ;;  %v124_v43 = vld [vmem:[%s4099_s9 + $0x1] sm:$0xff]  ;;  %v123_v46 = vld [vmem:[%s4099_s9] sm:$0x1]  ;;  %v212_v14 = vpack.c.bf16 %v210_v12, %v209_v11  ;;  %v2735_v28 = vld [vmem:[%s4099_s9 + $0x9] ss:$0 sm:$0xff] }
   0xc   :  { %87 = vmatpush1.bf16.msra.mxu0 %v71_v9  ;;  %v131_v50 = vrot.slane %v123_v46, 7  ;;  %v207_v13 = vld [vmem:[%s4100_s3] sm:$0xff]  ;;  %v2736_v34 = vld [vmem:[%s4099_s9 + $0xa] ss:$0 sm:$0xff] }
   0xd   :  { %88 = vmatprep.subr.bf16.mxu0 %v3292_v0  ;;  %2912 = vmatprep.subr.bf16.mxu1 %v212_v14 }
   0xe   :  { %2913 = vmatpush3.bf16.msra.mxu1 %v212_v14 }
  0x10   :  { %89 = vmatpush1.bf16.msra.mxu0 %v70_v15  ;;  %v208_v15 = vld [vmem:[%s4100_s3 + $0x8] sm:$0xff] }
  0x11   :  { %90 = vmatprep.subr.bf16.mxu0 %v3292_v0  ;;  %v211_v16 = vpack.c.bf16 %v208_v15, %v207_v13  ;;  %v3299_v13 = vmov 65535  }
  0x12   :  { %v357_v14 = vsel %vm355_vm9, 4294967295, %v3299_v13 }
  0x13   :  { %2914 = vmatprep.subr.bf16.mxu1 %v211_v16 }
  0x14   :  { %91 = vmatpush1.bf16.msra.mxu0 %v69_v18  ;;  %2915 = vmatpush3.bf16.msra.mxu1 %v211_v16  ;;  %v3539_v16 = vsel %vm356_vm10, %v357_v14, 0 }
  0x15   :  { %92 = vmatprep.subr.bf16.mxu0 %v3292_v0 }
  0x18   :  { %93 = vmatpush1.bf16.msra.mxu0 %v68_v21 }
  0x19   :  { %94 = vmatprep.subr.bf16.mxu0 %v3292_v0 }
  0x1c   :  { %95 = vmatpush1.bf16.msra.mxu0 %v67_v24 }
  0x1d   :  { %96 = vmatprep.subr.bf16.mxu0 %v3292_v0 }
  0x20   :  { %97 = vmatpush1.bf16.msra.mxu0 %v66_v27 }
  0x21   :  { %106 = vmatprep.subr.bf16.mxu0 %v3292_v0 }
  0x24   :  { %107 = vmatpush2.bf16.msra.mxu0 %v77_v30 }
  0x25   :  { %108 = vmatprep.subr.bf16.mxu0 %v3292_v0 }
  0x28   :  { %109 = vmatpush2.bf16.msra.mxu0 %v76_v33 }
  0x29   :  { %110 = vmatprep.subr.bf16.mxu0 %v3292_v0 }
  0x2c   :  { %111 = vmatpush2.bf16.msra.mxu0 %v75_v36 }
  0x2d   :  { %112 = vmatprep.subr.bf16.mxu0 %v3292_v0 }
  0x30   :  { %113 = vmatpush2.bf16.msra.mxu0 %v74_v39 }
  0x33   :  { %115 = vmatmul.mubr.bf16.vlgmr.msra.gmra.mxu0 %v40_v42  ;;  %v2737_v42 = vld [vmem:[%s4099_s9 + $0xb] ss:$0 sm:$0xff] }
  0xf3   :  { %v116_v44 = vpop.f32.mrf.mxu0 }
  0xf4   :  { %v125_v45 = vadd.f32 %v124_v43, %v116_v44 }
  0xf5   :  { %v118_v47 = vpop.f32.mrf.mxu0 }
  0xf6   :  { %v128_v48 = vrot.slane %v125_v45, 7 }
  0xf7   :  { %v119_v49 = vpop.f32.mrf.mxu0 }
  0xf8   :  { %v126_v51 = vadd.f32 %v124_v43, %v119_v49  ;;  %v3466_v52 = vsel %vm136_vm1, %v123_v46, %v128_v48  ;;  %v138_v56 = vsel %vm136_vm1, %v128_v48, %v131_v50  ;;  %v3293_v43 = vmov 0.0  }
  0xf9   :  { %v121_v53 = vpop.f32.mrf.mxu0  ;;  %v150_v54 = vsel %vm149_vm2, %v3466_v52, 0.0  ;;  %2920 = vmatprep.subr.bf16.mxu1 %v3293_v43  ;;  %2950 = vmatprep.subr.bf16.mxu0 %v3293_v43 }
  0xfa   :  { %v3470_v55 = vrot.slane %v126_v51, 6  ;;  %151 = vadd.xlane.f32.xlu0 %v150_v54  ;;  %2952 = vmatprep.mubr.msk.bf16.mxu0 %vm3294_vm5, %v3293_v43 }
  0xfc   :  { %v157_v57 = vsel %vm156_vm3, %v3470_v55, 0.0  ;;  %v3477_v58 = vsel %vm139_vm4, %v138_v56, %v3470_v55 }
  0xfd   :  { %158 = vadd.xlane.f32.xlu1 %v157_v57  ;;  %v153_v59 = vsel %vm149_vm2, %v3477_v58, 0.0 }
  0xfe   :  { %154 = vadd.xlane.f32.xlu0 %v153_v59 }
 0x183   :  { %v152_v60 = vpop.xlane.xlu0 %151 }
 0x184   :  { %v161_v61 = vmul.f32 0.03125, %v152_v60 }
 0x186   :  { %v164_v62 = vsub.f32 %v3466_v52, %v161_v61  ;;  %v159_v63 = vpop.xlane.xlu1 %158 }
 0x187   :  { %v163_v0 = vmul.f32 0.03125, %v159_v63  ;;  %v155_v1 = vpop.xlane.xlu0 %154 }
 0x188   :  { %v162_v2 = vmul.f32 0.03125, %v155_v1  ;;  %v167_v3 = vmul.f32 %v164_v62, %v164_v62 }
 0x189   :  { %v166_v4 = vsub.f32 %v3470_v55, %v163_v0 }
 0x18a   :  { %v165_v5 = vsub.f32 %v3477_v58, %v162_v2  ;;  %v170_v6 = vsel %vm149_vm2, %v167_v3, 0.0 }
 0x18b   :  { %171 = vadd.xlane.f32.xlu1 %v170_v6  ;;  %v169_v7 = vmul.f32 %v166_v4, %v166_v4 }
 0x18c   :  { %v168_v8 = vmul.f32 %v165_v5, %v165_v5 }
 0x18d   :  { %v176_v9 = vsel %vm156_vm3, %v169_v7, 0.0 }
 0x18e   :  { %v173_v10 = vsel %vm149_vm2, %v168_v8, 0.0 }
 0x18f   :  { %177 = vadd.xlane.f32.xlu1 %v176_v9  ;;  %174 = vadd.xlane.f32.xlu0 %v173_v10 }
 0x214   :  { %v172_v17 = vpop.xlane.xlu1 %171 }
 0x215   :  { %v179_v18 = vmul.f32 0.03125, %v172_v17 }
 0x217   :  { %v182_v19 = vadd.f32 1e-05, %v179_v18 }
 0x218   :  { %v178_v20 = vpop.xlane.xlu1 %177  ;;  %v175_v21 = vpop.xlane.xlu0 %174 }
 0x219   :  { %3170 = vrsqrt.f32 %v182_v19  ;;  %v181_v22 = vmul.f32 0.03125, %v178_v20  ;;  %v180_v23 = vmul.f32 0.03125, %v175_v21 }
 0x21b   :  { %v184_v24 = vadd.f32 1e-05, %v181_v22  ;;  %v183_v25 = vadd.f32 1e-05, %v180_v23 }
 0x21d   :  { %3172 = vrsqrt.f32 %v184_v24 }
 0x21e   :  { %3174 = vrsqrt.f32 %v183_v25 }
 0x226   :  { %v3171_v26 = vpop.eup %3170 }
 0x227   :  { %v188_v27 = vmul.f32 %v3171_v26, %v164_v62 }
 0x229   :  { %v195_v33 = vmul.f32 %v2735_v28, %v188_v27 }
 0x22a   :  { %v3173_v29 = vpop.eup %3172 }
 0x22b   :  { %v3175_v30 = vpop.eup %3174  ;;  %v190_v31 = vmul.f32 %v3173_v29, %v166_v4  ;;  %v202_v38 = vadd.f32 %v2736_v34, %v195_v33 }
 0x22c   :  { %v189_v32 = vmul.f32 %v3175_v30, %v165_v5 }
 0x22d   :  { %v197_v35 = vmul.f32 %v2735_v28, %v190_v31 }
 0x22e   :  { %v196_v36 = vmul.f32 %v2735_v28, %v189_v32 }
 0x22f   :  { %v204_v37 = vadd.f32 %v2736_v34, %v197_v35 }
 0x230   :  { %v203_v39 = vadd.f32 %v2736_v34, %v196_v36 }
 0x231   :  { %v206_v40 = vpack.c.bf16 %v204_v37, %v204_v37 }
 0x232   :  { %v205_v41 = vpack.c.bf16 %v203_v39, %v202_v38 }
 0x234   :  { %2916 = vmatprep.mubr.msk.bf16.mxu1 %vm149_vm2, %v205_v41 }
 0x235   :  { %2917 = vmatmul.mubr.msk.bf16.vlgmr.msra.gmra.mxu1 %vm149_vm2, %v206_v40 }
 0x236   :  { %2922 = vmatprep.mubr.msk.bf16.mxu1 %vm3294_vm5, %v3293_v43 }
 0x2f5   :  { %v2918_v44 = vpop.f32.mrf.mxu1 }
 0x2f6   :  { %v266_v45 = vadd.f32 %v2918_v44, %v2737_v42 }
 0x2f7   :  { %v257_v46 = vpop.f32.mrf.mxu1 }
 0x2f8   :  { %v258_v49 = vadd.f32 %v2737_v42, %v257_v46 }
 0x2f9   :  { %v2919_v47 = vpop.f32.mrf.mxu1 }
 0x2fb   :  { %v260_v48 = vpop.f32.mrf.mxu1 }
 0x2fc   :  { %v261_v50 = vadd.f32 %v2737_v42, %v260_v48 }
 0x2fe   :  { %v3516_v51 = vpack.c.bf16 %v261_v50, %v258_v49  ;;  %v3518_v53 = vpack.c.bf16 %v266_v45, %v261_v50 }
 0x300   :  { %273 = vrot.lane.b32.xlu0 %v3516_v51, %s3295_s25  ;;  %v542_v39 = vshll.u32 %v3518_v53, 16  ;;  %v540_v41 = vshrl.u32 %v3518_v53, 16 }
 0x302   :  { %v544_v40 = vrot.slane %v542_v39, 1 }
 0x304   :  { %405 = vrot.lane.b32.xlu0 %v3516_v51, %s3296_s26  ;;  %v3559_v42 = vor.u32 %v544_v40, %v540_v41 }
 0x308   :  { %403 = vrot.lane.b32.xlu0 %v3516_v51, %s3297_s27 }
 0x372   :  { %v274_v54 = vpop.permute.xlu0 %273 }
 0x373   :  { %v280_v56 = vsel %vm275_vm6, %v274_v54, 0 }
 0x374   :  { %2921 = vmatpush3.bf16.xpose.msra.mxu1 %v280_v56 }
 0x375   :  { %2926 = vmatprep.subr.bf16.mxu1 %v3293_v43 }
 0x376   :  { %v406_v23 = vpop.permute.xlu0 %405 }
 0x377   :  { %v411_v25 = vsel %vm275_vm6, %v406_v23, 0 }
 0x37a   :  { %v404_v26 = vpop.permute.xlu0 %403 }
 0x37b   :  { %2923 = vmatmul.mubr.msk.bf16.vlgmr.msra.gmra.mxu1 %vm275_vm6, %v3516_v51 }
 0x37c   :  { %2928 = vmatprep.mubr.msk.bf16.mxu1 %vm3294_vm5, %v3293_v43 }
 0x43b   :  { %v316_v57 = vpop.f32.mrf.mxu1 }
 0x43c   :  { %v323_v59 = vmul.f32 0.25, %v316_v57 }
 0x43d   :  { %v2924_v60 = vpop.f32.mrf.mxu1 }
 0x43e   :  { %v326_v61 = vsel %vm325_vm7, %v323_v59, -inf }
 0x43f   :  { %327 = vmax.xlane.f32.xlu1 %v326_v61  ;;  %v319_v62 = vpop.f32.mrf.mxu1 }
 0x440   :  { %v324_v63 = vmul.f32 0.25, %v319_v62 }
 0x441   :  { %v2925_v0 = vpop.f32.mrf.mxu1 }
 0x442   :  { %v330_v1 = vsel %vm329_vm8, %v324_v63, -inf }
 0x443   :  { %331 = vmax.xlane.f32.xlu1 %v330_v1 }
 0x4c8   :  { %v328_v2 = vpop.xlane.xlu1 %327 }
 0x4c9   :  { %v333_v3 = vsub.f32 %v323_v59, %v328_v2 }
 0x4cb   :  { %v335_v4 = vmul.f32 1.442695, %v333_v3 }
 0x4cc   :  { %v332_v5 = vpop.xlane.xlu1 %331 }
 0x4cd   :  { %3176 = vpow2.f32 %v335_v4  ;;  %v334_v6 = vsub.f32 %v324_v63, %v332_v5 }
 0x4cf   :  { %v337_v7 = vmul.f32 1.442695, %v334_v6 }
 0x4d1   :  { %3178 = vpow2.f32 %v337_v7 }
 0x4da   :  { %v3177_v8 = vpop.eup %3176 }
 0x4db   :  { %v339_v9 = vsel %vm325_vm7, %v3177_v8, 0.0 }
 0x4dc   :  { %340 = vadd.xlane.f32.xlu1 %v339_v9 }
 0x4de   :  { %v3179_v10 = vpop.eup %3178 }
 0x4df   :  { %v342_v11 = vsel %vm329_vm8, %v3179_v10, 0.0 }
 0x4e0   :  { %343 = vadd.xlane.f32.xlu1 %v342_v11 }
 0x4f1   :  { %350 = vrot.lane.b32.xlu1 %v3516_v51, %s3298_s28 }
 0x565   :  { %v341_v12 = vpop.xlane.xlu1 %340 }
 0x566   :  { %3180 = vrcp.f32 %v341_v12 }
 0x569   :  { %v344_v15 = vpop.xlane.xlu1 %343 }
 0x56a   :  { %3182 = vrcp.f32 %v344_v15 }
 0x56d   :  { %v351_v17 = vpop.permute.xlu1 %350 }
 0x56e   :  { %v360_v18 = vand.u32 %v3539_v16, %v351_v17 }
 0x570   :  { %2927 = vmatpush3.bf16.msra.mxu1 %v360_v18 }
 0x571   :  { %2932 = vmatprep.subr.bf16.mxu1 %v3293_v43 }
 0x573   :  { %v3181_v19 = vpop.eup %3180 }
 0x574   :  { %v347_v21 = vmul.f32 %v3181_v19, %v3177_v8 }
 0x577   :  { %v3183_v20 = vpop.eup %3182 }
 0x578   :  { %v348_v22 = vmul.f32 %v3183_v20, %v3179_v10 }
 0x57a   :  { %v349_v24 = vpack.c.bf16 %v348_v22, %v347_v21 }
 0x57c   :  { %2929 = vmatmul.mubr.msk.bf16.vlgmr.msra.gmra.mxu1 %vm325_vm7, %v349_v24 }
 0x57d   :  { %2933 = vmatpush3.bf16.xpose.msra.mxu1 %v411_v25  ;;  %2934 = vmatprep.mubr.msk.bf16.mxu1 %vm3294_vm5, %v3293_v43 }
 0x57e   :  { %2938 = vmatprep.subr.bf16.mxu1 %v3293_v43 }
 0x584   :  { %2935 = vmatmul.mubr.msk.bf16.vlgmr.msra.gmra.mxu1 %vm275_vm6, %v404_v26 }
 0x585   :  { %2940 = vmatprep.mubr.msk.bf16.mxu1 %vm3294_vm5, %v3293_v43 }
 0x63c   :  { %v3551_v27 = vpop.f32.mrf.mxu1 }
 0x63e   :  { %v2930_v28 = vpop.f32.mrf.mxu1 }
 0x640   :  { %v3553_v29 = vpop.f32.mrf.mxu1 }
 0x642   :  { %v2931_v30 = vpop.f32.mrf.mxu1 }
 0x644   :  { %v447_v31 = vpop.f32.mrf.mxu1 }
 0x645   :  { %v454_v32 = vmul.f32 0.25, %v447_v31 }
 0x646   :  { %v2936_v33 = vpop.f32.mrf.mxu1 }
 0x647   :  { %v456_v34 = vsel %vm325_vm7, %v454_v32, -inf }
 0x648   :  { %457 = vmax.xlane.f32.xlu0 %v456_v34  ;;  %v450_v35 = vpop.f32.mrf.mxu1 }
 0x649   :  { %v455_v36 = vmul.f32 0.25, %v450_v35 }
 0x64a   :  { %v2937_v37 = vpop.f32.mrf.mxu1 }
 0x64b   :  { %v459_v38 = vsel %vm329_vm8, %v455_v36, -inf }
 0x64c   :  { %460 = vmax.xlane.f32.xlu1 %v459_v38 }
 0x65d   :  { %546 = vrot.lane.b32.xlu1 %v3559_v42, %s3295_s25 }
 0x661   :  { %671 = vrot.lane.b32.xlu1 %v3559_v42, %s3296_s26 }
 0x665   :  { %669 = vrot.lane.b32.xlu1 %v3559_v42, %s3297_s27 }
 0x6d1   :  { %v458_v44 = vpop.xlane.xlu0 %457 }
 0x6d2   :  { %v462_v45 = vsub.f32 %v454_v32, %v458_v44 }
 0x6d4   :  { %v464_v46 = vmul.f32 1.442695, %v462_v45 }
 0x6d5   :  { %v461_v47 = vpop.xlane.xlu1 %460 }
 0x6d6   :  { %3184 = vpow2.f32 %v464_v46  ;;  %v463_v48 = vsub.f32 %v455_v36, %v461_v47 }
 0x6d8   :  { %v466_v49 = vmul.f32 1.442695, %v463_v48 }
 0x6d9   :  { %v547_v2 = vpop.permute.xlu1 %546 }
 0x6da   :  { %3186 = vpow2.f32 %v466_v49  ;;  %v552_v4 = vsel %vm275_vm6, %v547_v2, 0 }
 0x6e3   :  { %v3185_v50 = vpop.eup %3184 }
 0x6e4   :  { %v468_v53 = vsel %vm325_vm7, %v3185_v50, 0.0 }
 0x6e5   :  { %469 = vadd.xlane.f32.xlu0 %v468_v53 }
 0x6e7   :  { %v3187_v54 = vpop.eup %3186 }
 0x6e8   :  { %v471_v56 = vsel %vm329_vm8, %v3187_v54, 0.0 }
 0x6e9   :  { %472 = vadd.xlane.f32.xlu0 %v471_v56 }
 0x6ff   :  { %479 = vrot.lane.b32.xlu0 %v3516_v51, %s3300_s29  ;;  %v672_v51 = vpop.permute.xlu1 %671 }
 0x700   :  { %v677_v5 = vsel %vm275_vm6, %v672_v51, 0 }
 0x703   :  { %v670_v6 = vpop.permute.xlu1 %669 }
 0x76e   :  { %v470_v57 = vpop.xlane.xlu0 %469 }
 0x76f   :  { %3188 = vrcp.f32 %v470_v57 }
 0x772   :  { %v473_v59 = vpop.xlane.xlu0 %472 }
 0x773   :  { %3190 = vrcp.f32 %v473_v59 }
 0x776   :  { %v480_v60 = vpop.permute.xlu0 %479 }
 0x777   :  { %v485_v61 = vand.u32 %v480_v60, %v3539_v16 }
 0x779   :  { %2939 = vmatpush3.bf16.msra.mxu1 %v485_v61 }
 0x77a   :  { %2944 = vmatprep.subr.bf16.mxu1 %v3293_v43 }
 0x77c   :  { %v3189_v62 = vpop.eup %3188 }
 0x77d   :  { %v476_v0 = vmul.f32 %v3189_v62, %v3185_v50 }
 0x780   :  { %v3191_v63 = vpop.eup %3190 }
 0x781   :  { %v477_v1 = vmul.f32 %v3191_v63, %v3187_v54 }
 0x783   :  { %v478_v3 = vpack.c.bf16 %v477_v1, %v476_v0 }
 0x785   :  { %2941 = vmatmul.mubr.msk.bf16.vlgmr.msra.gmra.mxu1 %vm325_vm7, %v478_v3 }
 0x786   :  { %2945 = vmatpush3.bf16.xpose.msra.mxu1 %v552_v4  ;;  %2946 = vmatprep.mubr.msk.bf16.mxu1 %vm3294_vm5, %v3293_v43 }
 0x787   :  { %2956 = vmatprep.subr.bf16.mxu1 %v3293_v43 }
 0x78d   :  { %2947 = vmatmul.mubr.msk.bf16.vlgmr.msra.gmra.mxu1 %vm275_vm6, %v3559_v42 }
 0x78e   :  { %2957 = vmatpush3.bf16.xpose.msra.mxu1 %v677_v5  ;;  %2958 = vmatprep.mubr.msk.bf16.mxu1 %vm3294_vm5, %v3293_v43 }
 0x795   :  { %2959 = vmatmul.mubr.msk.bf16.vlgmr.msra.gmra.mxu1 %vm275_vm6, %v670_v6 }
 0x845   :  { %v3584_v7 = vpop.f32.mrf.mxu1 }
 0x847   :  { %v2942_v8 = vpop.f32.mrf.mxu1 }
 0x849   :  { %v3586_v9 = vpop.f32.mrf.mxu1 }
 0x84a   :  { %v3153_v10 = vpack.i.bf16 %v3584_v7, %v3586_v9 }
 0x84b   :  { %v2943_v11 = vpop.f32.mrf.mxu1 }
 0x84d   :  { %v588_v12 = vpop.f32.mrf.mxu1 }
 0x84e   :  { %v595_v13 = vmul.f32 0.25, %v588_v12 }
 0x84f   :  { %v2948_v14 = vpop.f32.mrf.mxu1 }
 0x850   :  { %v597_v15 = vsel %vm325_vm7, %v595_v13, -inf  ;;  %v816_v14 = vld [vmem:[%s4101_s4 + $0x10] sm:$0xff] }
 0x851   :  { %598 = vmax.xlane.f32.xlu0 %v597_v15  ;;  %v591_v17 = vpop.f32.mrf.mxu1  ;;  %v817_v15 = vld [vmem:[%s4101_s4 + $0x18] sm:$0xff] }
 0x852   :  { %v596_v18 = vmul.f32 0.25, %v591_v17 }
 0x853   :  { %v2949_v19 = vpop.f32.mrf.mxu1 }
 0x854   :  { %v600_v20 = vsel %vm329_vm8, %v596_v18, -inf }
 0x855   :  { %601 = vmax.xlane.f32.xlu1 %v600_v20  ;;  %v713_v21 = vpop.f32.mrf.mxu1  ;;  %v814_v20 = vld [vmem:[%s4101_s4] sm:$0xff] }
 0x856   :  { %v720_v22 = vmul.f32 0.25, %v713_v21  ;;  %v815_v21 = vld [vmem:[%s4101_s4 + $0x8] sm:$0xff] }
 0x857   :  { %v2960_v23 = vpop.f32.mrf.mxu1 }
 0x858   :  { %v722_v24 = vsel %vm325_vm7, %v720_v22, -inf  ;;  %v818_v23 = vpack.c.bf16 %v815_v21, %v814_v20 }
 0x859   :  { %723 = vmax.xlane.f32.xlu0 %v722_v24  ;;  %v716_v25 = vpop.f32.mrf.mxu1 }
 0x85a   :  { %v721_v26 = vmul.f32 0.25, %v716_v25 }
 0x85b   :  { %v2961_v28 = vpop.f32.mrf.mxu1 }
 0x85c   :  { %v725_v30 = vsel %vm329_vm8, %v721_v26, -inf }
 0x85d   :  { %726 = vmax.xlane.f32.xlu0 %v725_v30 }
 0x8da   :  { %v599_v31 = vpop.xlane.xlu0 %598 }
 0x8db   :  { %v603_v32 = vsub.f32 %v595_v13, %v599_v31 }
 0x8dd   :  { %v605_v33 = vmul.f32 1.442695, %v603_v32 }
 0x8de   :  { %v602_v34 = vpop.xlane.xlu1 %601 }
 0x8df   :  { %3192 = vpow2.f32 %v605_v33  ;;  %v604_v35 = vsub.f32 %v596_v18, %v602_v34  ;;  %v819_v18 = vpack.c.bf16 %v817_v15, %v816_v14  ;;  %v940_v14 = vld [vmem:[%s4102_s5 + $0x8] sm:$0xff] }
 0x8e1   :  { %v607_v36 = vmul.f32 1.442695, %v604_v35  ;;  %2968 = vmatprep.subr.bf16.mxu1 %v819_v18 }
 0x8e2   :  { %v724_v37 = vpop.xlane.xlu0 %723  ;;  %2969 = vmatpush3.bf16.msra.mxu1 %v819_v18 }
 0x8e3   :  { %3194 = vpow2.f32 %v607_v36  ;;  %v728_v38 = vsub.f32 %v720_v22, %v724_v37  ;;  %2970 = vmatprep.subr.bf16.mxu1 %v818_v23 }
 0x8e5   :  { %v730_v39 = vmul.f32 1.442695, %v728_v38 }
 0x8e6   :  { %v727_v40 = vpop.xlane.xlu0 %726  ;;  %2971 = vmatpush3.bf16.msra.mxu1 %v818_v23 }
 0x8e7   :  { %3196 = vpow2.f32 %v730_v39  ;;  %v729_v41 = vsub.f32 %v721_v26, %v727_v40 }
 0x8e9   :  { %v732_v44 = vmul.f32 1.442695, %v729_v41 }
 0x8eb   :  { %3198 = vpow2.f32 %v732_v44 }
 0x8ec   :  { %v3193_v45 = vpop.eup %3192 }
 0x8ed   :  { %v609_v46 = vsel %vm325_vm7, %v3193_v45, 0.0 }
 0x8ee   :  { %610 = vadd.xlane.f32.xlu0 %v609_v46 }
 0x8f0   :  { %v3195_v47 = vpop.eup %3194 }
 0x8f1   :  { %v612_v48 = vsel %vm329_vm8, %v3195_v47, 0.0 }
 0x8f2   :  { %613 = vadd.xlane.f32.xlu1 %v612_v48 }
 0x8f4   :  { %v3197_v49 = vpop.eup %3196 }
 0x8f5   :  { %v734_v50 = vsel %vm325_vm7, %v3197_v49, 0.0 }
 0x8f6   :  { %735 = vadd.xlane.f32.xlu0 %v734_v50 }
 0x8f8   :  { %v3199_v53 = vpop.eup %3198 }
 0x8f9   :  { %v737_v54 = vsel %vm329_vm8, %v3199_v53, 0.0 }
 0x8fa   :  { %738 = vadd.xlane.f32.xlu1 %v737_v54 }
 0x90b   :  { %745 = vrot.lane.b32.xlu1 %v3559_v42, %s3300_s29 }
 0x90c   :  { %620 = vrot.lane.b32.xlu0 %v3559_v42, %s3298_s28 }
 0x977   :  { %v611_v56 = vpop.xlane.xlu0 %610 }
 0x978   :  { %3200 = vrcp.f32 %v611_v56 }
 0x97b   :  { %v614_v57 = vpop.xlane.xlu1 %613 }
 0x97c   :  { %3202 = vrcp.f32 %v614_v57 }
 0x97f   :  { %v736_v59 = vpop.xlane.xlu0 %735 }
 0x980   :  { %3204 = vrcp.f32 %v736_v59 }
 0x983   :  { %v739_v60 = vpop.xlane.xlu1 %738  ;;  %v621_v61 = vpop.permute.xlu0 %620 }
 0x984   :  { %3206 = vrcp.f32 %v739_v60  ;;  %v626_v62 = vand.u32 %v621_v61, %v3539_v16 }
 0x985   :  { %v3201_v63 = vpop.eup %3200 }
 0x986   :  { %2951 = vmatpush3.bf16.msra.mxu0 %v626_v62  ;;  %v617_v2 = vmul.f32 %v3201_v63, %v3193_v45 }
 0x987   :  { %2962 = vmatprep.subr.bf16.mxu0 %v3293_v43  ;;  %v746_v1 = vpop.permute.xlu1 %745 }
 0x988   :  { %v751_v4 = vand.u32 %v746_v1, %v3539_v16 }
 0x989   :  { %v3203_v0 = vpop.eup %3202 }
 0x98a   :  { %v618_v3 = vmul.f32 %v3203_v0, %v3195_v47 }
 0x98c   :  { %v619_v42 = vpack.c.bf16 %v618_v3, %v617_v2 }
 0x98d   :  { %v3205_v51 = vpop.eup %3204 }
 0x98e   :  { %2953 = vmatmul.mubr.msk.bf16.vlgmr.msra.gmra.mxu0 %vm325_vm7, %v619_v42  ;;  %v742_v6 = vmul.f32 %v3205_v51, %v3197_v49 }
 0x98f   :  { %2963 = vmatpush3.bf16.msra.mxu0 %v751_v4  ;;  %2964 = vmatprep.mubr.msk.bf16.mxu0 %vm3294_vm5, %v3293_v43 }
 0x991   :  { %v3207_v5 = vpop.eup %3206 }
 0x992   :  { %v743_v8 = vmul.f32 %v3207_v5, %v3199_v53 }
 0x994   :  { %v744_v11 = vpack.c.bf16 %v743_v8, %v742_v6  ;;  %v941_v8 = vld [vmem:[%s4102_s5 + $0x10] sm:$0xff] }
 0x996   :  { %2965 = vmatmul.mubr.msk.bf16.vlgmr.msra.gmra.mxu0 %vm325_vm7, %v744_v11  ;;  %v942_v11 = vld [vmem:[%s4102_s5 + $0x18] sm:$0xff] }
 0xa4e   :  { %v662_v12 = vpop.f32.mrf.mxu0 }
 0xa50   :  { %v2954_v13 = vpop.f32.mrf.mxu0 }
 0xa51   :  { %v939_v13 = vld [vmem:[%s4102_s5] sm:$0xff] }
 0xa52   :  { %v665_v17 = vpop.f32.mrf.mxu0  ;;  %v943_v15 = vpack.c.bf16 %v940_v14, %v939_v13 }
 0xa54   :  { %v2955_v19 = vpop.f32.mrf.mxu0 }
 0xa56   :  { %v787_v22 = vpop.f32.mrf.mxu0 }
 0xa58   :  { %v2966_v24 = vpop.f32.mrf.mxu0 }
 0xa5a   :  { %v790_v25 = vpop.f32.mrf.mxu0 }
 0xa5b   :  { %v3148_v26 = vpack.i.bf16 %v790_v25, %v787_v22 }
 0xa5c   :  { %v2967_v28 = vpop.f32.mrf.mxu0 }
 0xa5d   :  { %3149 = vrot.lane.b32.xlu1 %v3148_v26, %s3301_s16 }
 0xa61   :  { %3154 = vrot.lane.b32.xlu1 %v3153_v10, %s3301_s16 }
 0xacf   :  { %v3150_v30 = vpop.permute.xlu1 %3149 }
 0xad0   :  { %v3152_v31 = vunpack.i.h.bf16 %v3150_v30  ;;  %v3151_v32 = vunpack.i.l.bf16 %v3150_v30  ;;  %v2751_v30 = vld [vmem:[%s4099_s9 + $0xd] ss:$0 sm:$0xff] }
 0xad2   :  { %v803_v33 = vsel %vm275_vm6, %v665_v17, %v3152_v31  ;;  %v802_v34 = vsel %vm275_vm6, %v662_v12, %v3151_v32  ;;  %v944_v12 = vpack.c.bf16 %v942_v11, %v941_v8 }
 0xad3   :  { %v807_v35 = vrot.slane %v803_v33, 7  ;;  %v806_v36 = vrot.slane %v802_v34, 7  ;;  %v3155_v37 = vpop.permute.xlu1 %3154 }
 0xad4   :  { %v3157_v38 = vunpack.i.h.bf16 %v3155_v37  ;;  %v3156_v39 = vunpack.i.l.bf16 %v3155_v37  ;;  %2976 = vmatprep.subr.bf16.mxu0 %v944_v12 }
 0xad5   :  { %v808_v40 = vsel %vm136_vm1, %v806_v36, %v807_v35  ;;  %2977 = vmatpush3.bf16.msra.mxu0 %v944_v12 }
 0xad6   :  { %v536_v41 = vsel %vm275_vm6, %v3551_v27, %v3157_v38  ;;  %v537_v7 = vsel %vm275_vm6, %v3553_v29, %v3156_v39  ;;  %v813_v44 = vpack.c.bf16 %v808_v40, %v808_v40  ;;  %v2750_v27 = vld [vmem:[%s4099_s9 + $0xc] ss:$0 sm:$0xff]  ;;  %2978 = vmatprep.subr.bf16.mxu0 %v943_v15 }
 0xad7   :  { %v811_v9 = vsel %vm136_vm1, %v537_v7, %v806_v36  ;;  %v2752_v36 = vld [vmem:[%s4099_s9 + $0xe] ss:$0 sm:$0xff] }
 0xad8   :  { %v812_v10 = vpack.c.bf16 %v811_v9, %v536_v41 }
 0xad9   :  { %2979 = vmatpush3.bf16.msra.mxu0 %v943_v15 }
 0xada   :  { %2972 = vmatprep.mubr.msk.bf16.mxu1 %vm149_vm2, %v812_v10  ;;  %v1038_v10 = vld [vmem:[%s4103_s6 + $0x30] sm:$0xff] }
 0xadb   :  { %2973 = vmatmul.mubr.msk.bf16.vlgmr.msra.gmra.mxu1 %vm149_vm2, %v813_v44  ;;  %v1039_v44 = vld [vmem:[%s4103_s6 + $0x38] sm:$0xff] }
 0xb9b   :  { %v2974_v45 = vpop.f32.mrf.mxu1 }
 0xb9c   :  { %v876_v47 = vadd.f32 %v2974_v45, %v3470_v55  ;;  %v1036_v45 = vld [vmem:[%s4103_s6 + $0x20] sm:$0xff] }
 0xb9d   :  { %v860_v46 = vpop.f32.mrf.mxu1 }
 0xb9e   :  { %v874_v48 = vadd.f32 %v860_v46, %v3466_v52  ;;  %v3643_v53 = vadd.f32 %v2750_v27, %v876_v47  ;;  %v1043_v46 = vpack.c.bf16 %v1039_v44, %v1038_v10  ;;  %v1037_v47 = vld [vmem:[%s4103_s6 + $0x28] sm:$0xff] }
 0xb9f   :  { %v2975_v49 = vpop.f32.mrf.mxu1 }
 0xba0   :  { %v3641_v29 = vadd.f32 %v2750_v27, %v874_v48  ;;  %v890_v52 = vsel %vm156_vm3, %v3643_v53, 0.0  ;;  %v1042_v48 = vpack.c.bf16 %v1037_v47, %v1036_v45  ;;  %v1035_v49 = vld [vmem:[%s4103_s6 + $0x18] sm:$0xff]  ;;  %2984 = vmatprep.subr.bf16.mxu1 %v1043_v46 }
 0xba1   :  { %v863_v50 = vpop.f32.mrf.mxu1  ;;  %2985 = vmatpush3.bf16.msra.mxu1 %v1043_v46 }
 0xba2   :  { %v875_v54 = vadd.f32 %v863_v50, %v3477_v58  ;;  %v884_v56 = vsel %vm149_vm2, %v3641_v29, 0.0  ;;  %2986 = vmatprep.subr.bf16.mxu1 %v1042_v48 }
 0xba3   :  { %885 = vadd.xlane.f32.xlu0 %v884_v56  ;;  %v1033_v56 = vld [vmem:[%s4103_s6 + $0x8] sm:$0xff] }
 0xba4   :  { %v3648_v57 = vadd.f32 %v2750_v27, %v875_v54  ;;  %v1034_v27 = vld [vmem:[%s4103_s6 + $0x10] sm:$0xff]  ;;  %v1032_v54 = vld [vmem:[%s4103_s6] sm:$0xff] }
 0xba5   :  { %v1041_v50 = vpack.c.bf16 %v1035_v49, %v1034_v27  ;;  %2987 = vmatpush3.bf16.msra.mxu1 %v1042_v48 }
 0xba6   :  { %v887_v55 = vsel %vm149_vm2, %v3648_v57, 0.0 }
 0xba7   :  { %891 = vadd.xlane.f32.xlu0 %v890_v52  ;;  %888 = vadd.xlane.f32.xlu1 %v887_v55  ;;  %v1040_v52 = vpack.c.bf16 %v1033_v56, %v1032_v54  ;;  %v2753_v55 = vld [vmem:[%s4099_s9 + $0xf] ss:$0 sm:$0xff] }
 0xba8   :  { %2988 = vmatprep.subr.bf16.mxu1 %v1041_v50 }
 0xba9   :  { %2989 = vmatpush3.bf16.msra.mxu1 %v1041_v50 }
 0xbaa   :  { %2990 = vmatprep.subr.bf16.mxu1 %v1040_v52 }
 0xbad   :  { %2991 = vmatpush3.bf16.msra.mxu1 %v1040_v52 }
 0xbae   :  { %3010 = vmatprep.subr.bf16.mxu1 %v3293_v43 }
 0xc2c   :  { %v886_v59 = vpop.xlane.xlu0 %885 }
 0xc2d   :  { %v893_v60 = vmul.f32 0.03125, %v886_v59 }
 0xc2f   :  { %v896_v61 = vsub.f32 %v3641_v29, %v893_v60 }
 0xc30   :  { %v892_v62 = vpop.xlane.xlu0 %891  ;;  %v889_v58 = vpop.xlane.xlu1 %888 }
 0xc31   :  { %v895_v63 = vmul.f32 0.03125, %v892_v62  ;;  %v894_v0 = vmul.f32 0.03125, %v889_v58  ;;  %v899_v1 = vmul.f32 %v896_v61, %v896_v61 }
 0xc33   :  { %v898_v2 = vsub.f32 %v3643_v53, %v895_v63  ;;  %v897_v3 = vsub.f32 %v3648_v57, %v894_v0  ;;  %v902_v42 = vsel %vm149_vm2, %v899_v1, 0.0 }
 0xc34   :  { %903 = vadd.xlane.f32.xlu0 %v902_v42 }
 0xc35   :  { %v901_v4 = vmul.f32 %v898_v2, %v898_v2  ;;  %v900_v51 = vmul.f32 %v897_v3, %v897_v3 }
 0xc37   :  { %v908_v5 = vsel %vm156_vm3, %v901_v4, 0.0  ;;  %v905_v6 = vsel %vm149_vm2, %v900_v51, 0.0 }
 0xc38   :  { %909 = vadd.xlane.f32.xlu1 %v908_v5  ;;  %906 = vadd.xlane.f32.xlu0 %v905_v6 }
 0xcbd   :  { %v904_v17 = vpop.xlane.xlu0 %903 }
 0xcbe   :  { %v911_v18 = vmul.f32 0.03125, %v904_v17 }
 0xcc0   :  { %v914_v19 = vadd.f32 1e-05, %v911_v18 }
 0xcc1   :  { %v907_v20 = vpop.xlane.xlu0 %906  ;;  %v910_v21 = vpop.xlane.xlu1 %909 }
 0xcc2   :  { %3208 = vrsqrt.f32 %v914_v19  ;;  %v912_v22 = vmul.f32 0.03125, %v907_v20  ;;  %v913_v23 = vmul.f32 0.03125, %v910_v21 }
 0xcc4   :  { %v915_v24 = vadd.f32 1e-05, %v912_v22  ;;  %v916_v25 = vadd.f32 1e-05, %v913_v23 }
 0xcc6   :  { %3210 = vrsqrt.f32 %v915_v24 }
 0xcc7   :  { %3212 = vrsqrt.f32 %v916_v25 }
 0xccf   :  { %v3209_v26 = vpop.eup %3208 }
 0xcd0   :  { %v920_v28 = vmul.f32 %v3209_v26, %v896_v61 }
 0xcd2   :  { %v927_v34 = vmul.f32 %v2751_v30, %v920_v28 }
 0xcd3   :  { %v3211_v31 = vpop.eup %3210 }
 0xcd4   :  { %v3213_v32 = vpop.eup %3212  ;;  %v921_v33 = vmul.f32 %v3211_v31, %v897_v3  ;;  %v934_v39 = vadd.f32 %v2752_v36, %v927_v34 }
 0xcd5   :  { %v922_v35 = vmul.f32 %v3213_v32, %v898_v2 }
 0xcd6   :  { %v928_v37 = vmul.f32 %v2751_v30, %v921_v33 }
 0xcd7   :  { %v929_v38 = vmul.f32 %v2751_v30, %v922_v35 }
 0xcd8   :  { %v935_v40 = vadd.f32 %v2752_v36, %v928_v37 }
 0xcd9   :  { %v936_v41 = vadd.f32 %v2752_v36, %v929_v38  ;;  %v2758_v38 = vld [vmem:[%s4099_s9 + $0x10] ss:$0 sm:$0xff] }
 0xcda   :  { %v937_v7 = vpack.c.bf16 %v935_v40, %v934_v39 }
 0xcdb   :  { %v938_v9 = vpack.c.bf16 %v936_v41, %v936_v41 }
 0xcdc   :  { %2980 = vmatprep.mubr.msk.bf16.mxu0 %vm149_vm2, %v937_v7 }
 0xcdd   :  { %2981 = vmatmul.mubr.msk.bf16.vlgmr.msra.gmra.mxu0 %vm149_vm2, %v938_v9 }
 0xd9d   :  { %v2982_v59 = vpop.f32.mrf.mxu0 }
 0xd9e   :  { %v998_v60 = vadd.f32 %v2982_v59, %v2753_v55 }
 0xd9f   :  { %v989_v61 = vpop.f32.mrf.mxu0 }
 0xda0   :  { %v1008_v62 = vmul.f32 0.044715, %v998_v60  ;;  %v990_v58 = vadd.f32 %v2753_v55, %v989_v61  ;;  %v1005_v23 = vmul.f32 0.5, %v998_v60 }
 0xda1   :  { %v2983_v63 = vpop.f32.mrf.mxu0 }
 0xda2   :  { %v1011_v0 = vmul.f32 %v1008_v62, %v998_v60  ;;  %v1006_v1 = vmul.f32 0.044715, %v990_v58  ;;  %v1003_v24 = vmul.f32 0.5, %v990_v58  ;;  %v2763_v62 = vld [vmem:[%s4100_s3 + $0x30] sm:$0xff] }
 0xda3   :  { %v992_v2 = vpop.f32.mrf.mxu0 }
 0xda4   :  { %v1014_v3 = vmul.f32 %v1011_v0, %v998_v60  ;;  %v1009_v42 = vmul.f32 %v1006_v1, %v990_v58  ;;  %v993_v4 = vadd.f32 %v2753_v55, %v992_v2  ;;  %v2761_v0 = vld [vmem:[%s4100_s3 + $0x20] sm:$0xff]  ;;  %v2762_v1 = vld [vmem:[%s4100_s3 + $0x28] sm:$0xff] }
 0xda5   :  { %v1176_v2 = vpack.c.bf16 %v2762_v1, %v2761_v0 }
 0xda6   :  { %v1017_v51 = vadd.f32 %v1014_v3, %v998_v60  ;;  %v1012_v5 = vmul.f32 %v1009_v42, %v990_v58  ;;  %v1007_v6 = vmul.f32 0.044715, %v993_v4  ;;  %v1004_v25 = vmul.f32 0.5, %v993_v4 }
 0xda8   :  { %v1020_v8 = vmul.f32 0.7978846, %v1017_v51  ;;  %v1015_v11 = vadd.f32 %v1012_v5, %v990_v58  ;;  %v1010_v12 = vmul.f32 %v1007_v6, %v993_v4  ;;  %v2764_v58 = vld [vmem:[%s4100_s3 + $0x38] sm:$0xff] }
 0xda9   :  { %v1177_v63 = vpack.c.bf16 %v2764_v58, %v2763_v62 }
 0xdaa   :  { %v1018_v13 = vmul.f32 0.7978846, %v1015_v11  ;;  %v1013_v14 = vmul.f32 %v1010_v12, %v993_v4  ;;  %3214 = vtanh.f32 %v1020_v8 }
 0xdab   :  { %2996 = vmatprep.subr.bf16.mxu0 %v1177_v63 }
 0xdac   :  { %3216 = vtanh.f32 %v1018_v13  ;;  %v1016_v15 = vadd.f32 %v1013_v14, %v993_v4  ;;  %2997 = vmatpush3.bf16.msra.mxu0 %v1177_v63 }
 0xdad   :  { %2998 = vmatprep.subr.bf16.mxu0 %v1176_v2 }
 0xdae   :  { %v1019_v17 = vmul.f32 0.7978846, %v1016_v15  ;;  %v2759_v15 = vld [vmem:[%s4099_s9 + $0x11] ss:$0 sm:$0xff] }
 0xdb0   :  { %3218 = vtanh.f32 %v1019_v17  ;;  %2999 = vmatpush3.bf16.msra.mxu0 %v1176_v2 }
 0xdb1   :  { %3004 = vmatprep.subr.bf16.mxu0 %v3293_v43 }
 0xdb7   :  { %v3215_v18 = vpop.eup %3214 }
 0xdb8   :  { %v1026_v20 = vadd.f32 1.0, %v3215_v18 }
 0xdb9   :  { %v3217_v19 = vpop.eup %3216 }
 0xdba   :  { %v1024_v21 = vadd.f32 1.0, %v3217_v19  ;;  %v1029_v28 = vmul.f32 %v1026_v20, %v1005_v23 }
 0xdbc   :  { %v1027_v30 = vmul.f32 %v1024_v21, %v1003_v24  ;;  %v1031_v33 = vpack.c.bf16 %v1029_v28, %v1029_v28 }
 0xdbd   :  { %v3219_v22 = vpop.eup %3218 }
 0xdbe   :  { %v1025_v26 = vadd.f32 1.0, %v3219_v22  ;;  %v2760_v22 = vld [vmem:[%s4099_s9 + $0x12] ss:$0 sm:$0xff] }
 0xdc0   :  { %v1028_v31 = vmul.f32 %v1025_v26, %v1004_v25 }
 0xdc2   :  { %v1030_v32 = vpack.c.bf16 %v1028_v31, %v1027_v30 }
 0xdc4   :  { %2992 = vmatprep.mubr.msk.bf16.mxu1 %vm78_vm0, %v1030_v32 }
 0xdc5   :  { %2993 = vmatmul.mubr.msk.bf16.vlgmr.msra.gmra.mxu1 %vm78_vm0, %v1031_v33 }
 0xdc6   :  { %3012 = vmatprep.mubr.msk.bf16.mxu1 %vm3294_vm5, %v3293_v43 }
 0xe85   :  { %v2994_v34 = vpop.f32.mrf.mxu1 }
 0xe86   :  { %v1100_v36 = vadd.f32 %v2994_v34, %v3643_v53  ;;  %v2765_v34 = vld [vmem:[%s4099_s9 + $0x13] ss:$0 sm:$0xff] }
 0xe87   :  { %v1084_v35 = vpop.f32.mrf.mxu1 }
 0xe88   :  { %v1098_v37 = vadd.f32 %v1084_v35, %v3641_v29  ;;  %v3719_v7 = vadd.f32 %v2758_v38, %v1100_v36 }
 0xe89   :  { %v2995_v39 = vpop.f32.mrf.mxu1 }
 0xe8a   :  { %v3717_v40 = vadd.f32 %v2758_v38, %v1098_v37  ;;  %v1122_v29 = vsel %vm156_vm3, %v3719_v7, 0.0 }
 0xe8b   :  { %v1087_v41 = vpop.f32.mrf.mxu1 }
 0xe8c   :  { %v1099_v9 = vadd.f32 %v1087_v41, %v3648_v57  ;;  %v1116_v10 = vsel %vm149_vm2, %v3717_v40, 0.0 }
 0xe8d   :  { %1117 = vadd.xlane.f32.xlu0 %v1116_v10 }
 0xe8e   :  { %v3724_v44 = vadd.f32 %v2758_v38, %v1099_v9 }
 0xe90   :  { %v1119_v53 = vsel %vm149_vm2, %v3724_v44, 0.0 }
 0xe91   :  { %1123 = vadd.xlane.f32.xlu0 %v1122_v29  ;;  %1120 = vadd.xlane.f32.xlu1 %v1119_v53 }
 0xf16   :  { %v1118_v45 = vpop.xlane.xlu0 %1117 }
 0xf17   :  { %v1125_v46 = vmul.f32 0.03125, %v1118_v45 }
 0xf19   :  { %v1128_v47 = vsub.f32 %v3717_v40, %v1125_v46 }
 0xf1a   :  { %v1124_v48 = vpop.xlane.xlu0 %1123  ;;  %v1121_v57 = vpop.xlane.xlu1 %1120 }
 0xf1b   :  { %v1127_v27 = vmul.f32 0.03125, %v1124_v48  ;;  %v1126_v49 = vmul.f32 0.03125, %v1121_v57  ;;  %v1131_v50 = vmul.f32 %v1128_v47, %v1128_v47 }
 0xf1d   :  { %v1130_v54 = vsub.f32 %v3719_v7, %v1127_v27  ;;  %v1129_v56 = vsub.f32 %v3724_v44, %v1126_v49  ;;  %v1134_v52 = vsel %vm149_vm2, %v1131_v50, 0.0 }
 0xf1e   :  { %1135 = vadd.xlane.f32.xlu1 %v1134_v52 }
 0xf1f   :  { %v1133_v55 = vmul.f32 %v1130_v54, %v1130_v54  ;;  %v1132_v59 = vmul.f32 %v1129_v56, %v1129_v56 }
 0xf21   :  { %v1140_v60 = vsel %vm156_vm3, %v1133_v55, 0.0  ;;  %v1137_v61 = vsel %vm149_vm2, %v1132_v59, 0.0 }
 0xf22   :  { %1141 = vadd.xlane.f32.xlu1 %v1140_v60  ;;  %1138 = vadd.xlane.f32.xlu0 %v1137_v61 }
 0xfa7   :  { %v1136_v3 = vpop.xlane.xlu1 %1135 }
 0xfa8   :  { %v1143_v42 = vmul.f32 0.03125, %v1136_v3 }
 0xfaa   :  { %v1146_v4 = vadd.f32 1e-05, %v1143_v42 }
 0xfab   :  { %v1139_v51 = vpop.xlane.xlu0 %1138  ;;  %v1142_v5 = vpop.xlane.xlu1 %1141 }
 0xfac   :  { %3220 = vrsqrt.f32 %v1146_v4  ;;  %v1144_v6 = vmul.f32 0.03125, %v1139_v51  ;;  %v1145_v8 = vmul.f32 0.03125, %v1142_v5 }
 0xfae   :  { %v1147_v11 = vadd.f32 1e-05, %v1144_v6  ;;  %v1148_v12 = vadd.f32 1e-05, %v1145_v8 }
 0xfb0   :  { %3222 = vrsqrt.f32 %v1147_v11 }
 0xfb1   :  { %3224 = vrsqrt.f32 %v1148_v12 }
 0xfb9   :  { %v3221_v13 = vpop.eup %3220 }
 0xfba   :  { %v1152_v14 = vmul.f32 %v3221_v13, %v1128_v47 }
 0xfbc   :  { %v1159_v20 = vmul.f32 %v2759_v15, %v1152_v14 }
 0xfbd   :  { %v3223_v17 = vpop.eup %3222 }
 0xfbe   :  { %v3225_v18 = vpop.eup %3224  ;;  %v1153_v19 = vmul.f32 %v3223_v17, %v1129_v56  ;;  %v1166_v25 = vadd.f32 %v2760_v22, %v1159_v20 }
 0xfbf   :  { %v1154_v21 = vmul.f32 %v3225_v18, %v1130_v54 }
 0xfc0   :  { %v1160_v23 = vmul.f32 %v2759_v15, %v1153_v19 }
 0xfc1   :  { %v1161_v24 = vmul.f32 %v2759_v15, %v1154_v21 }
 0xfc2   :  { %v1167_v26 = vadd.f32 %v2760_v22, %v1160_v23 }
 0xfc3   :  { %v1168_v28 = vadd.f32 %v2760_v22, %v1161_v24 }
 0xfc4   :  { %v1169_v30 = vpack.c.bf16 %v1167_v26, %v1166_v25 }
 0xfc5   :  { %v1170_v31 = vpack.c.bf16 %v1168_v28, %v1168_v28 }
 0xfc6   :  { %3000 = vmatprep.mubr.msk.bf16.mxu0 %vm149_vm2, %v1169_v30 }
 0xfc7   :  { %3001 = vmatmul.mubr.msk.bf16.vlgmr.msra.gmra.mxu0 %vm149_vm2, %v1170_v31 }
 0xfc8   :  { %3006 = vmatprep.mubr.msk.bf16.mxu0 %vm3294_vm5, %v3293_v43 }
0x1087   :  { %v3002_v32 = vpop.f32.mrf.mxu0 }
0x1088   :  { %v1231_v37 = vadd.f32 %v3002_v32, %v2765_v34 }
0x1089   :  { %v1222_v33 = vpop.f32.mrf.mxu0 }
0x108a   :  { %v1223_v38 = vadd.f32 %v2765_v34, %v1222_v33 }
0x108b   :  { %v3003_v35 = vpop.f32.mrf.mxu0 }
0x108d   :  { %v1225_v36 = vpop.f32.mrf.mxu0 }
0x108e   :  { %v1226_v39 = vadd.f32 %v2765_v34, %v1225_v36 }
0x1090   :  { %v3762_v41 = vpack.c.bf16 %v1226_v39, %v1223_v38  ;;  %v1496_v9 = vpack.c.bf16 %v1231_v37, %v1226_v39 }
0x1092   :  { %v1500_v10 = vshll.u32 %v1496_v9, 16  ;;  %1363 = vrot.lane.b32.xlu1 %v3762_v41, %s3296_s26  ;;  %1238 = vrot.lane.b32.xlu0 %v3762_v41, %s3295_s25  ;;  %v1498_v29 = vshrl.u32 %v1496_v9, 16 }
0x1094   :  { %v1502_v53 = vrot.slane %v1500_v10, 1 }
0x1096   :  { %v3768_v45 = vor.u32 %v1502_v53, %v1498_v29  ;;  %1361 = vrot.lane.b32.xlu1 %v3762_v41, %s3297_s27 }
0x1098   :  { %1629 = vrot.lane.b32.xlu0 %v3768_v45, %s3296_s26 }
0x109a   :  { %1504 = vrot.lane.b32.xlu1 %v3768_v45, %s3295_s25 }
0x109e   :  { %1627 = vrot.lane.b32.xlu1 %v3768_v45, %s3297_s27 }
0x1104   :  { %v1239_v46 = vpop.permute.xlu0 %1238  ;;  %v1364_v48 = vpop.permute.xlu1 %1363 }
0x1105   :  { %v1244_v47 = vsel %vm275_vm6, %v1239_v46, 0  ;;  %v1369_v27 = vsel %vm275_vm6, %v1364_v48, 0 }
0x1106   :  { %3005 = vmatpush3.bf16.xpose.msra.mxu0 %v1244_v47 }
0x1107   :  { %3016 = vmatprep.subr.bf16.mxu0 %v3293_v43 }
0x1108   :  { %v1362_v57 = vpop.permute.xlu1 %1361 }
0x110a   :  { %v1630_v54 = vpop.permute.xlu0 %1629 }
0x110b   :  { %v1635_v56 = vsel %vm275_vm6, %v1630_v54, 0 }
0x110c   :  { %v1505_v49 = vpop.permute.xlu1 %1504 }
0x110d   :  { %3007 = vmatmul.mubr.msk.bf16.vlgmr.msra.gmra.mxu0 %vm275_vm6, %v3762_v41  ;;  %v1510_v50 = vsel %vm275_vm6, %v1505_v49, 0 }
0x110e   :  { %3017 = vmatpush3.bf16.xpose.msra.mxu0 %v1369_v27  ;;  %3018 = vmatprep.mubr.msk.bf16.mxu0 %vm3294_vm5, %v3293_v43 }
0x110f   :  { %3028 = vmatprep.subr.bf16.mxu0 %v3293_v43 }
0x1110   :  { %v1628_v52 = vpop.permute.xlu1 %1627 }
0x1115   :  { %3019 = vmatmul.mubr.msk.bf16.vlgmr.msra.gmra.mxu0 %vm275_vm6, %v1362_v57 }
0x1116   :  { %3029 = vmatpush3.bf16.xpose.msra.mxu0 %v1510_v50  ;;  %3030 = vmatprep.mubr.msk.bf16.mxu0 %vm3294_vm5, %v3293_v43 }
0x1117   :  { %3040 = vmatprep.subr.bf16.mxu0 %v3293_v43 }
0x111d   :  { %3031 = vmatmul.mubr.msk.bf16.vlgmr.msra.gmra.mxu0 %vm275_vm6, %v3768_v45 }
0x111e   :  { %3041 = vmatpush3.bf16.xpose.msra.mxu0 %v1635_v56  ;;  %3042 = vmatprep.mubr.msk.bf16.mxu0 %vm3294_vm5, %v3293_v43 }
0x1125   :  { %3043 = vmatmul.mubr.msk.bf16.vlgmr.msra.gmra.mxu0 %vm275_vm6, %v1628_v52 }
0x11cd   :  { %v1280_v55 = vpop.f32.mrf.mxu0 }
0x11ce   :  { %v1287_v59 = vmul.f32 0.25, %v1280_v55 }
0x11cf   :  { %v3008_v60 = vpop.f32.mrf.mxu0 }
0x11d0   :  { %v1289_v61 = vsel %vm325_vm7, %v1287_v59, -inf }
0x11d1   :  { %1290 = vmax.xlane.f32.xlu0 %v1289_v61  ;;  %v1283_v62 = vpop.f32.mrf.mxu0 }
0x11d2   :  { %v1288_v58 = vmul.f32 0.25, %v1283_v62 }
0x11d3   :  { %v3009_v63 = vpop.f32.mrf.mxu0 }
0x11d4   :  { %v1292_v0 = vsel %vm329_vm8, %v1288_v58, -inf }
0x11d5   :  { %1293 = vmax.xlane.f32.xlu1 %v1292_v0  ;;  %v1405_v1 = vpop.f32.mrf.mxu0 }
0x11d6   :  { %v1412_v2 = vmul.f32 0.25, %v1405_v1 }
0x11d7   :  { %v3020_v3 = vpop.f32.mrf.mxu0 }
0x11d8   :  { %v1414_v42 = vsel %vm325_vm7, %v1412_v2, -inf }
0x11d9   :  { %1415 = vmax.xlane.f32.xlu0 %v1414_v42  ;;  %v1408_v4 = vpop.f32.mrf.mxu0 }
0x11da   :  { %v1413_v51 = vmul.f32 0.25, %v1408_v4 }
0x11db   :  { %v3021_v5 = vpop.f32.mrf.mxu0 }
0x11dc   :  { %v1417_v6 = vsel %vm329_vm8, %v1413_v51, -inf }
0x11dd   :  { %1418 = vmax.xlane.f32.xlu0 %v1417_v6  ;;  %v1546_v8 = vpop.f32.mrf.mxu0 }
0x11de   :  { %v1553_v11 = vmul.f32 0.25, %v1546_v8 }
0x11df   :  { %v3032_v12 = vpop.f32.mrf.mxu0 }
0x11e0   :  { %v1555_v13 = vsel %vm325_vm7, %v1553_v11, -inf }
0x11e1   :  { %1556 = vmax.xlane.f32.xlu0 %v1555_v13  ;;  %v1549_v14 = vpop.f32.mrf.mxu0 }
0x11e2   :  { %v1554_v15 = vmul.f32 0.25, %v1549_v14 }
0x11e3   :  { %v3033_v17 = vpop.f32.mrf.mxu0 }
0x11e4   :  { %v1558_v18 = vsel %vm329_vm8, %v1554_v15, -inf }
0x11e5   :  { %1559 = vmax.xlane.f32.xlu1 %v1558_v18  ;;  %v1671_v19 = vpop.f32.mrf.mxu0 }
0x11e6   :  { %v1678_v20 = vmul.f32 0.25, %v1671_v19 }
0x11e7   :  { %v3044_v21 = vpop.f32.mrf.mxu0 }
0x11e8   :  { %v1680_v22 = vsel %vm325_vm7, %v1678_v20, -inf }
0x11e9   :  { %1681 = vmax.xlane.f32.xlu0 %v1680_v22  ;;  %v1674_v23 = vpop.f32.mrf.mxu0 }
0x11ea   :  { %v1679_v24 = vmul.f32 0.25, %v1674_v23 }
0x11eb   :  { %v3045_v25 = vpop.f32.mrf.mxu0 }
0x11ec   :  { %v1683_v26 = vsel %vm329_vm8, %v1679_v24, -inf }
0x11ed   :  { %1684 = vmax.xlane.f32.xlu1 %v1683_v26 }
0x125a   :  { %v1291_v28 = vpop.xlane.xlu0 %1290 }
0x125b   :  { %v1295_v30 = vsub.f32 %v1287_v59, %v1291_v28 }
0x125d   :  { %v1297_v31 = vmul.f32 1.442695, %v1295_v30 }
0x125e   :  { %v1294_v32 = vpop.xlane.xlu1 %1293 }
0x125f   :  { %3226 = vpow2.f32 %v1297_v31  ;;  %v1296_v33 = vsub.f32 %v1288_v58, %v1294_v32 }
0x1261   :  { %v1299_v34 = vmul.f32 1.442695, %v1296_v33 }
0x1262   :  { %v1416_v35 = vpop.xlane.xlu0 %1415 }
0x1263   :  { %3228 = vpow2.f32 %v1299_v34  ;;  %v1420_v36 = vsub.f32 %v1412_v2, %v1416_v35 }
0x1265   :  { %v1422_v37 = vmul.f32 1.442695, %v1420_v36 }
0x1266   :  { %v1419_v38 = vpop.xlane.xlu0 %1418 }
0x1267   :  { %3230 = vpow2.f32 %v1422_v37  ;;  %v1421_v39 = vsub.f32 %v1413_v51, %v1419_v38 }
0x1269   :  { %v1424_v9 = vmul.f32 1.442695, %v1421_v39 }
0x126a   :  { %v1557_v10 = vpop.xlane.xlu0 %1556 }
0x126b   :  { %3232 = vpow2.f32 %v1424_v9  ;;  %v1561_v29 = vsub.f32 %v1553_v11, %v1557_v10 }
0x126c   :  { %v3227_v53 = vpop.eup %3226 }
0x126d   :  { %v1563_v46 = vmul.f32 1.442695, %v1561_v29  ;;  %v1301_v47 = vsel %vm325_vm7, %v3227_v53, 0.0 }
0x126e   :  { %v1560_v48 = vpop.xlane.xlu1 %1559  ;;  %1302 = vadd.xlane.f32.xlu0 %v1301_v47 }
0x126f   :  { %3234 = vpow2.f32 %v1563_v46  ;;  %v1562_v57 = vsub.f32 %v1554_v15, %v1560_v48 }
0x1270   :  { %v3229_v27 = vpop.eup %3228 }
0x1271   :  { %v1565_v49 = vmul.f32 1.442695, %v1562_v57  ;;  %v1304_v50 = vsel %vm329_vm8, %v3229_v27, 0.0 }
0x1272   :  { %1305 = vadd.xlane.f32.xlu1 %v1304_v50  ;;  %v1682_v54 = vpop.xlane.xlu0 %1681 }
0x1273   :  { %3236 = vpow2.f32 %v1565_v49  ;;  %v1686_v56 = vsub.f32 %v1678_v20, %v1682_v54 }
0x1274   :  { %v3231_v52 = vpop.eup %3230 }
0x1275   :  { %v1688_v55 = vmul.f32 1.442695, %v1686_v56  ;;  %v1426_v59 = vsel %vm325_vm7, %v3231_v52, 0.0 }
0x1276   :  { %1427 = vadd.xlane.f32.xlu0 %v1426_v59  ;;  %v1685_v3 = vpop.xlane.xlu1 %1684 }
0x1277   :  { %3238 = vpow2.f32 %v1688_v55  ;;  %v1687_v42 = vsub.f32 %v1679_v24, %v1685_v3 }
0x1278   :  { %v3233_v60 = vpop.eup %3232 }
0x1279   :  { %v1429_v61 = vsel %vm329_vm8, %v3233_v60, 0.0  ;;  %v1690_v4 = vmul.f32 1.442695, %v1687_v42 }
0x127a   :  { %1430 = vadd.xlane.f32.xlu1 %v1429_v61 }
0x127b   :  { %3240 = vpow2.f32 %v1690_v4 }
0x127c   :  { %v3235_v62 = vpop.eup %3234 }
0x127d   :  { %v1567_v58 = vsel %vm325_vm7, %v3235_v62, 0.0 }
0x127e   :  { %1568 = vadd.xlane.f32.xlu0 %v1567_v58  ;;  %v2778_v58 = vld [vmem:[%s4101_s4 + $0x30] sm:$0xff] }
0x1280   :  { %v3237_v63 = vpop.eup %3236 }
0x1281   :  { %v1570_v0 = vsel %vm329_vm8, %v3237_v63, 0.0 }
0x1282   :  { %1571 = vadd.xlane.f32.xlu1 %v1570_v0 }
0x1284   :  { %v3811_v1 = vpop.eup %3238 }
0x1285   :  { %v1692_v2 = vsel %vm325_vm7, %v3811_v1, 0.0 }
0x1286   :  { %1693 = vadd.xlane.f32.xlu0 %v1692_v2  ;;  %v2777_v2 = vld [vmem:[%s4101_s4 + $0x28] sm:$0xff] }
0x1288   :  { %v3241_v51 = vpop.eup %3240 }
0x1289   :  { %v1695_v5 = vsel %vm329_vm8, %v3241_v51, 0.0 }
0x1293   :  { %1437 = vrot.lane.b32.xlu1 %v3762_v41, %s3300_s29 }
0x1297   :  { %1578 = vrot.lane.b32.xlu1 %v3768_v45, %s3298_s28 }
0x129c   :  { %1312 = vrot.lane.b32.xlu0 %v3762_v41, %s3298_s28  ;;  %s3304_s28 = smov 20  }
0x12bb   :  { %1696 = vadd.xlane.f32.xlu1 %v1695_v5 }
0x12cc   :  { %1703 = vrot.lane.b32.xlu1 %v3768_v45, %s3300_s29 }
0x12f7   :  { %v1303_v8 = vpop.xlane.xlu0 %1302 }
0x12fb   :  { %v1306_v6 = vpop.xlane.xlu1 %1305 }
0x12fc   :  { %3242 = vrcp.f32 %v1306_v6 }
0x12fd   :  { %3244 = vrcp.f32 %v1303_v8 }
0x12ff   :  { %v1428_v11 = vpop.xlane.xlu0 %1427 }
0x1303   :  { %v1431_v12 = vpop.xlane.xlu1 %1430 }
0x1304   :  { %3246 = vrcp.f32 %v1431_v12 }
0x1305   :  { %3248 = vrcp.f32 %v1428_v11 }
0x1307   :  { %v1569_v13 = vpop.xlane.xlu0 %1568 }
0x1309   :  { %v3243_v15 = vpop.eup %3242 }
0x130a   :  { %v3245_v17 = vpop.eup %3244  ;;  %v1310_v19 = vmul.f32 %v3243_v15, %v3229_v27 }
0x130b   :  { %v1572_v41 = vpop.xlane.xlu1 %1571  ;;  %v1309_v21 = vmul.f32 %v3245_v17, %v3227_v53 }
0x130c   :  { %3250 = vrcp.f32 %v1572_v41 }
0x130d   :  { %3252 = vrcp.f32 %v1569_v13  ;;  %v1311_v22 = vpack.c.bf16 %v1310_v19, %v1309_v21 }
0x130f   :  { %v1694_v14 = vpop.xlane.xlu0 %1693  ;;  %v1438_v45 = vpop.permute.xlu1 %1437 }
0x1310   :  { %v1443_v24 = vand.u32 %v1438_v45, %v3539_v16  ;;  %3254 = vrcp.f32 %v1694_v14 }
0x1311   :  { %v3247_v23 = vpop.eup %3246 }
0x1312   :  { %v3249_v25 = vpop.eup %3248  ;;  %v1435_v26 = vmul.f32 %v3247_v23, %v3233_v60 }
0x1313   :  { %v1313_v18 = vpop.permute.xlu0 %1312  ;;  %v1579_v28 = vpop.permute.xlu1 %1578  ;;  %v1434_v30 = vmul.f32 %v3249_v25, %v3231_v52 }
0x1314   :  { %v1318_v20 = vand.u32 %v1313_v18, %v3539_v16  ;;  %v1584_v33 = vand.u32 %v1579_v28, %v3539_v16 }
0x1315   :  { %v1436_v31 = vpack.c.bf16 %v1435_v26, %v1434_v30 }
0x1316   :  { %3011 = vmatpush3.bf16.msra.mxu1 %v1318_v20 }
0x1317   :  { %3022 = vmatprep.subr.bf16.mxu1 %v3293_v43 }
0x1319   :  { %3013 = vmatmul.mubr.msk.bf16.vlgmr.msra.gmra.mxu1 %vm325_vm7, %v1311_v22  ;;  %v3251_v32 = vpop.eup %3250 }
0x131a   :  { %3023 = vmatpush3.bf16.msra.mxu1 %v1443_v24  ;;  %3024 = vmatprep.mubr.msk.bf16.mxu1 %vm3294_vm5, %v3293_v43  ;;  %v3253_v34 = vpop.eup %3252  ;;  %v1576_v35 = vmul.f32 %v3251_v32, %v3237_v63  ;;  %v2779_v63 = vld [vmem:[%s4101_s4 + $0x38] sm:$0xff] }
0x131b   :  { %3034 = vmatprep.subr.bf16.mxu1 %v3293_v43  ;;  %v1575_v36 = vmul.f32 %v3253_v34, %v3235_v62  ;;  %v1778_v0 = vpack.c.bf16 %v2779_v63, %v2778_v58 }
0x131d   :  { %v1577_v37 = vpack.c.bf16 %v1576_v35, %v1575_v36  ;;  %v3255_v10 = vpop.eup %3254  ;;  %3052 = vmatprep.subr.bf16.mxu0 %v1778_v0 }
0x131e   :  { %v1700_v53 = vmul.f32 %v3255_v10, %v3811_v1  ;;  %3053 = vmatpush3.bf16.msra.mxu0 %v1778_v0  ;;  %v2776_v1 = vld [vmem:[%s4101_s4 + $0x20] sm:$0xff] }
0x131f   :  { %v1777_v3 = vpack.c.bf16 %v2777_v2, %v2776_v1 }
0x1321   :  { %3025 = vmatmul.mubr.msk.bf16.vlgmr.msra.gmra.mxu1 %vm325_vm7, %v1436_v31  ;;  %3054 = vmatprep.subr.bf16.mxu0 %v1777_v3  ;;  %v2782_v31 = vld [vmem:[%s4099_s9 + $0x14] ss:$0 sm:$0xff] }
0x1322   :  { %3035 = vmatpush3.bf16.msra.mxu1 %v1584_v33  ;;  %3036 = vmatprep.mubr.msk.bf16.mxu1 %vm3294_vm5, %v3293_v43 }
0x1323   :  { %3046 = vmatprep.subr.bf16.mxu1 %v3293_v43  ;;  %3055 = vmatpush3.bf16.msra.mxu0 %v1777_v3 }
0x1329   :  { %3037 = vmatmul.mubr.msk.bf16.vlgmr.msra.gmra.mxu1 %vm325_vm7, %v1577_v37 }
0x132a   :  { %3048 = vmatprep.mubr.msk.bf16.mxu1 %vm3294_vm5, %v3293_v43 }
0x1344   :  { %v1697_v38 = vpop.xlane.xlu1 %1696 }
0x1345   :  { %3256 = vrcp.f32 %v1697_v38 }
0x1348   :  { %v1704_v39 = vpop.permute.xlu1 %1703 }
0x1349   :  { %v1709_v9 = vand.u32 %v1704_v39, %v3539_v16 }
0x134b   :  { %3047 = vmatpush3.bf16.msra.mxu1 %v1709_v9 }
0x1352   :  { %v3257_v29 = vpop.eup %3256 }
0x1353   :  { %v1701_v46 = vmul.f32 %v3257_v29, %v3241_v51 }
0x1355   :  { %v1702_v47 = vpack.c.bf16 %v1701_v46, %v1700_v53 }
0x1357   :  { %3049 = vmatmul.mubr.msk.bf16.vlgmr.msra.gmra.mxu1 %vm325_vm7, %v1702_v47 }
0x13d9   :  { %v1354_v48 = vpop.f32.mrf.mxu1 }
0x13db   :  { %v3014_v57 = vpop.f32.mrf.mxu1 }
0x13dd   :  { %v1357_v27 = vpop.f32.mrf.mxu1 }
0x13df   :  { %v3015_v49 = vpop.f32.mrf.mxu1 }
0x13e1   :  { %v1479_v50 = vpop.f32.mrf.mxu1 }
0x13e3   :  { %v3026_v54 = vpop.f32.mrf.mxu1 }
0x13e5   :  { %v1482_v56 = vpop.f32.mrf.mxu1 }
0x13e6   :  { %v3163_v52 = vpack.i.bf16 %v1479_v50, %v1482_v56 }
0x13e7   :  { %v3027_v55 = vpop.f32.mrf.mxu1 }
0x13e8   :  { %3164 = vrot.lane.b32.xlu1 %v3163_v52, %s3301_s16  ;;  %v2787_v52 = vld [vmem:[%s4102_s5 + $0x30] sm:$0xff]  ;;  %v2788_v55 = vld [vmem:[%s4102_s5 + $0x38] sm:$0xff] }
0x13e9   :  { %v1620_v59 = vpop.f32.mrf.mxu1 }
0x13eb   :  { %v3038_v60 = vpop.f32.mrf.mxu1 }
0x13ec   :  { %v2785_v60 = vld [vmem:[%s4102_s5 + $0x20] sm:$0xff] }
0x13ed   :  { %v1623_v61 = vpop.f32.mrf.mxu1 }
0x13ef   :  { %v3039_v62 = vpop.f32.mrf.mxu1 }
0x1417   :  { %v1745_v42 = vpop.f32.mrf.mxu1 }
0x1419   :  { %v3050_v4 = vpop.f32.mrf.mxu1 }
0x141b   :  { %v1748_v51 = vpop.f32.mrf.mxu1 }
0x141c   :  { %v3158_v5 = vpack.i.bf16 %v1748_v51, %v1745_v42 }
0x141d   :  { %v3051_v6 = vpop.f32.mrf.mxu1 }
0x141e   :  { %3159 = vrot.lane.b32.xlu0 %v3158_v5, %s3301_s16 }
0x145a   :  { %v3165_v8 = vpop.permute.xlu1 %3164 }
0x145b   :  { %v3166_v12 = vunpack.i.l.bf16 %v3165_v8  ;;  %v3167_v14 = vunpack.i.h.bf16 %v3165_v8  ;;  %v2783_v8 = vld [vmem:[%s4099_s9 + $0x15] ss:$0 sm:$0xff] }
0x145d   :  { %v1495_v20 = vsel %vm275_vm6, %v1357_v27, %v3166_v12  ;;  %v1494_v45 = vsel %vm275_vm6, %v1354_v48, %v3167_v14 }
0x1490   :  { %v3160_v11 = vpop.permute.xlu0 %3159 }
0x1491   :  { %v3162_v13 = vunpack.i.h.bf16 %v3160_v11  ;;  %v3161_v41 = vunpack.i.l.bf16 %v3160_v11 }
0x1493   :  { %v1761_v15 = vsel %vm275_vm6, %v1623_v61, %v3162_v13  ;;  %v1760_v17 = vsel %vm275_vm6, %v1620_v59, %v3161_v41  ;;  %v1904_v59 = vpack.c.bf16 %v2788_v55, %v2787_v52  ;;  %v2786_v61 = vld [vmem:[%s4102_s5 + $0x28] sm:$0xff] }
0x1494   :  { %v1765_v18 = vrot.slane %v1761_v15, 7  ;;  %v1764_v19 = vrot.slane %v1760_v17, 7  ;;  %v1903_v62 = vpack.c.bf16 %v2786_v61, %v2785_v60  ;;  %v2784_v15 = vld [vmem:[%s4099_s9 + $0x16] ss:$0 sm:$0xff] }
0x1495   :  { %3060 = vmatprep.subr.bf16.mxu1 %v1904_v59 }
0x1496   :  { %v1766_v21 = vsel %vm136_vm1, %v1764_v19, %v1765_v18  ;;  %v1769_v22 = vsel %vm136_vm1, %v1495_v20, %v1764_v19  ;;  %3061 = vmatpush3.bf16.msra.mxu1 %v1904_v59  ;;  %vm2725_vm1 = vcmask 236544  }
0x1497   :  { %v1771_v23 = vpack.c.bf16 %v1766_v21, %v1766_v21  ;;  %v1770_v24 = vpack.c.bf16 %v1769_v22, %v1494_v45  ;;  %3062 = vmatprep.subr.bf16.mxu1 %v1903_v62 }
0x1499   :  { %3056 = vmatprep.mubr.msk.bf16.mxu0 %vm149_vm2, %v1770_v24  ;;  %v2799_v24 = vld [vmem:[%s4103_s6 + $0x78] sm:$0xff] }
0x149a   :  { %3057 = vmatmul.mubr.msk.bf16.vlgmr.msra.gmra.mxu0 %vm149_vm2, %v1771_v23  ;;  %3063 = vmatpush3.bf16.msra.mxu1 %v1903_v62  ;;  %v2798_v23 = vld [vmem:[%s4103_s6 + $0x70] sm:$0xff] }
0x155a   :  { %v3058_v25 = vpop.f32.mrf.mxu0 }
0x155b   :  { %v1835_v28 = vadd.f32 %v3058_v25, %v3719_v7  ;;  %v2796_v25 = vld [vmem:[%s4103_s6 + $0x60] sm:$0xff] }
0x155c   :  { %v1819_v26 = vpop.f32.mrf.mxu0 }
0x155d   :  { %v1833_v30 = vadd.f32 %v1819_v26, %v3717_v40  ;;  %v3871_v35 = vadd.f32 %v2782_v31, %v1835_v28  ;;  %v2004_v26 = vpack.c.bf16 %v2799_v24, %v2798_v23  ;;  %v2797_v28 = vld [vmem:[%s4103_s6 + $0x68] sm:$0xff] }
0x155e   :  { %v3059_v32 = vpop.f32.mrf.mxu0 }
0x155f   :  { %v3869_v33 = vadd.f32 %v2782_v31, %v1833_v30  ;;  %v1849_v40 = vsel %vm156_vm3, %v3871_v35, 0.0  ;;  %v2003_v30 = vpack.c.bf16 %v2797_v28, %v2796_v25  ;;  %v2795_v32 = vld [vmem:[%s4103_s6 + $0x58] sm:$0xff]  ;;  %3068 = vmatprep.subr.bf16.mxu0 %v2004_v26 }
0x1560   :  { %v1822_v34 = vpop.f32.mrf.mxu0  ;;  %3069 = vmatpush3.bf16.msra.mxu0 %v2004_v26 }
0x1561   :  { %v1834_v36 = vadd.f32 %v1822_v34, %v3724_v44  ;;  %v1843_v37 = vsel %vm149_vm2, %v3869_v33, 0.0  ;;  %3070 = vmatprep.subr.bf16.mxu0 %v2003_v30 }
0x1562   :  { %1844 = vadd.xlane.f32.xlu0 %v1843_v37  ;;  %v2793_v37 = vld [vmem:[%s4103_s6 + $0x48] sm:$0xff] }
0x1563   :  { %v3876_v38 = vadd.f32 %v2782_v31, %v1834_v36  ;;  %v2794_v31 = vld [vmem:[%s4103_s6 + $0x50] sm:$0xff]  ;;  %v2792_v36 = vld [vmem:[%s4103_s6 + $0x40] sm:$0xff] }
0x1564   :  { %v2002_v34 = vpack.c.bf16 %v2795_v32, %v2794_v31  ;;  %3071 = vmatpush3.bf16.msra.mxu0 %v2003_v30  ;;  %v2802_v30 = vld [vmem:[%s4099_s9 + $0x18] ss:$0 sm:$0xff] }
0x1565   :  { %v1846_v7 = vsel %vm149_vm2, %v3876_v38, 0.0 }
0x1566   :  { %1850 = vadd.xlane.f32.xlu0 %v1849_v40  ;;  %1847 = vadd.xlane.f32.xlu1 %v1846_v7  ;;  %v2001_v40 = vpack.c.bf16 %v2793_v37, %v2792_v36  ;;  %v2131_v7 = vld [vmem:[%s4104_s1] sm:$0xff] }
0x1567   :  { %3072 = vmatprep.subr.bf16.mxu0 %v2002_v34 }
0x1568   :  { %3073 = vmatpush3.bf16.msra.mxu0 %v2002_v34 }
0x1569   :  { %3074 = vmatprep.subr.bf16.mxu0 %v2001_v40 }
0x156c   :  { %3075 = vmatpush3.bf16.msra.mxu0 %v2001_v40 }
0x15eb   :  { %v1845_v39 = vpop.xlane.xlu0 %1844 }
0x15ec   :  { %v1852_v9 = vmul.f32 0.03125, %v1845_v39  ;;  %v2132_v39 = vld [vmem:[%s4104_s1 + $0x8] sm:$0x3] }
0x15ee   :  { %v1855_v10 = vsub.f32 %v3869_v33, %v1852_v9  ;;  %v2789_v9 = vld [vmem:[%s4099_s9 + $0x17] ss:$0 sm:$0xff] }
0x15ef   :  { %v1851_v29 = vpop.xlane.xlu0 %1850  ;;  %v1848_v44 = vpop.xlane.xlu1 %1847 }
0x15f0   :  { %v1854_v53 = vmul.f32 0.03125, %v1851_v29  ;;  %v1853_v46 = vmul.f32 0.03125, %v1848_v44  ;;  %v1858_v47 = vmul.f32 %v1855_v10, %v1855_v10 }
0x15f2   :  { %v1857_v48 = vsub.f32 %v3871_v35, %v1854_v53  ;;  %v1856_v57 = vsub.f32 %v3876_v38, %v1853_v46  ;;  %v1861_v27 = vsel %vm149_vm2, %v1858_v47, 0.0 }
0x15f3   :  { %1862 = vadd.xlane.f32.xlu0 %v1861_v27 }
0x15f4   :  { %v1860_v49 = vmul.f32 %v1857_v48, %v1857_v48  ;;  %v1859_v50 = vmul.f32 %v1856_v57, %v1856_v57 }
0x15f6   :  { %v1867_v54 = vsel %vm156_vm3, %v1860_v49, 0.0  ;;  %v1864_v56 = vsel %vm149_vm2, %v1859_v50, 0.0 }
0x15f7   :  { %1868 = vadd.xlane.f32.xlu1 %v1867_v54  ;;  %1865 = vadd.xlane.f32.xlu0 %v1864_v56 }
0x1608   :  { %2139 = vperm.xlu1 %3169, %v2132_v39   ;;  %v2239_v39 = vld [vmem:[%s4105_s7 + $0x18] sm:$0xff] }
0x160d   :  { %2136 = vperm.xlu0 %3168, %v2131_v7  }
0x167c   :  { %v1863_v58 = vpop.xlane.xlu0 %1862 }
0x167d   :  { %v1870_v63 = vmul.f32 0.03125, %v1863_v58 }
0x167f   :  { %v1873_v0 = vadd.f32 1e-05, %v1870_v63 }
0x1680   :  { %v1866_v1 = vpop.xlane.xlu0 %1865  ;;  %v1869_v2 = vpop.xlane.xlu1 %1868 }
0x1681   :  { %3258 = vrsqrt.f32 %v1873_v0  ;;  %v1871_v3 = vmul.f32 0.03125, %v1866_v1  ;;  %v1872_v42 = vmul.f32 0.03125, %v1869_v2 }
0x1683   :  { %v1874_v4 = vadd.f32 1e-05, %v1871_v3  ;;  %v1875_v51 = vadd.f32 1e-05, %v1872_v42 }
0x1685   :  { %3260 = vrsqrt.f32 %v1874_v4 }
0x1686   :  { %3262 = vrsqrt.f32 %v1875_v51 }
0x168e   :  { %v3259_v5 = vpop.eup %3258 }
0x168f   :  { %v1879_v6 = vmul.f32 %v3259_v5, %v1855_v10 }
0x1691   :  { %v1886_v41 = vmul.f32 %v2783_v8, %v1879_v6 }
0x1692   :  { %v3261_v11 = vpop.eup %3260 }
0x1693   :  { %v3263_v12 = vpop.eup %3262  ;;  %v1880_v13 = vmul.f32 %v3261_v11, %v1856_v57  ;;  %v1893_v19 = vadd.f32 %v2784_v15, %v1886_v41 }
0x1694   :  { %v1881_v14 = vmul.f32 %v3263_v12, %v1857_v48 }
0x1695   :  { %v1887_v17 = vmul.f32 %v2783_v8, %v1880_v13 }
0x1696   :  { %v1888_v18 = vmul.f32 %v2783_v8, %v1881_v14 }
0x1697   :  { %v1894_v20 = vadd.f32 %v2784_v15, %v1887_v17  ;;  %v2133_v17 = vlaneseq }
0x1698   :  { %v1895_v45 = vadd.f32 %v2784_v15, %v1888_v18  ;;  %v2125_v15 = vld [vmem:[%s4099_s9 + $0x23] sm:$0x3]  ;;  %v2124_v18 = vld [vmem:[%s4099_s9 + $0x1b] sm:$0xff] }
0x1699   :  { %v1896_v21 = vpack.c.bf16 %v1894_v20, %v1893_v19  ;;  %3080 = vmatprep.subr.msk.mxu1 %vm139_vm4, %v2125_v15  ;;  %v2137_v19 = vpop.permute.xlu0 %2136  ;;  %v2140_v20 = vpop.permute.xlu1 %2139 }
0x169a   :  { %v1897_v22 = vpack.c.bf16 %v1895_v45, %v1895_v45  ;;  %v2134_v45 = vand.u32 127, %v2133_v17 }
0x169b   :  { %3064 = vmatprep.mubr.msk.bf16.mxu1 %vm149_vm2, %v1896_v21 }
0x169c   :  { %3065 = vmatmul.mubr.msk.bf16.vlgmr.msra.gmra.mxu1 %vm149_vm2, %v1897_v22  ;;  %vm2141_vm12 = vcmp.eq.s32.totalorder %v2134_v45, %v2137_v19  ;;  %vm2142_vm13 = vcmp.eq.s32.totalorder %v2134_v45, %v2140_v20 }
0x169d   :  { %3081 = vmatpush3.msk.msra.mxu1 %vm139_vm4, %v2125_v15  ;;  %v2805_v21 = vsel %vm2141_vm12, 1.0, %v3293_v43  ;;  %v2806_v22 = vsel %vm2142_vm13, 1.0, %v3293_v43 }
0x169e   :  { %3082 = vmatprep.subr.mxu1 %v2124_v18  ;;  %3084 = vmatprep.mubr.msk.f32.mxu1 %vm2151_vm11, %v2805_v21 }
0x169f   :  { %3083 = vmatpush3.msra.mxu1 %v2124_v18 }
0x16a0   :  { %3087 = vmatprep.subr.bf16.mxu1 %v3293_v43 }
0x16a4   :  { %3085 = vmatmul.mubr.msk.f32.vlgmr.msra.gmra.mxu1 %vm2151_vm11, %v2806_v22 }
0x16a5   :  { %3091 = vmatprep.mubr.msk.bf16.mxu1 %vm3294_vm5, %v3293_v43 }
0x175c   :  { %v3066_v10 = vpop.f32.mrf.mxu1 }
0x175d   :  { %v1958_v29 = vadd.f32 %v3066_v10, %v2789_v9  ;;  %v2237_v10 = vld [vmem:[%s4105_s7 + $0x8] sm:$0xff] }
0x175e   :  { %v1949_v44 = vpop.f32.mrf.mxu1 }
0x175f   :  { %v1968_v53 = vmul.f32 0.044715, %v1958_v29  ;;  %v1950_v46 = vadd.f32 %v2789_v9, %v1949_v44  ;;  %v1965_v51 = vmul.f32 0.5, %v1958_v29  ;;  %v2126_v44 = vld [vmem:[%s4099_s9 + $0x25] sm:$0x1f] }
0x1760   :  { %v3067_v47 = vpop.f32.mrf.mxu1 }
0x1761   :  { %v1971_v48 = vmul.f32 %v1968_v53, %v1958_v29  ;;  %v1966_v57 = vmul.f32 0.044715, %v1950_v46  ;;  %v1963_v5 = vmul.f32 0.5, %v1950_v46  ;;  %v2148_v53 = vrot.slane %v2126_v44, 3 }
0x1762   :  { %v1952_v27 = vpop.f32.mrf.mxu1 }
0x1763   :  { %v1974_v49 = vmul.f32 %v1971_v48, %v1958_v29  ;;  %v1969_v50 = vmul.f32 %v1966_v57, %v1950_v46  ;;  %v1953_v54 = vadd.f32 %v2789_v9, %v1952_v27  ;;  %v2236_v9 = vld [vmem:[%s4105_s7] sm:$0xff]  ;;  %v2150_v47 = vsel %vm356_vm10, %v2126_v44, %v2148_v53 }
0x1765   :  { %v1977_v56 = vadd.f32 %v1974_v49, %v1958_v29  ;;  %v1972_v52 = vmul.f32 %v1969_v50, %v1950_v46  ;;  %v1967_v55 = vmul.f32 0.044715, %v1953_v54  ;;  %v1964_v6 = vmul.f32 0.5, %v1953_v54 }
0x1766   :  { %v2241_v29 = vpack.c.bf16 %v2237_v10, %v2236_v9  ;;  %v2814_v10 = vld [vmem:[%s4099_s9 + $0x2b] ss:$0 sm:$0xff] }
0x1767   :  { %v1980_v59 = vmul.f32 0.7978846, %v1977_v56  ;;  %v1975_v60 = vadd.f32 %v1972_v52, %v1950_v46  ;;  %v1970_v61 = vmul.f32 %v1967_v55, %v1953_v54  ;;  %v3086_v46 = vpop.f32.mrf.mxu1 }
0x1768   :  { %v3986_v48 = vadd.f32 %v3086_v46, %v2148_v53 }
0x1769   :  { %v1978_v62 = vmul.f32 0.7978846, %v1975_v60  ;;  %v1973_v58 = vmul.f32 %v1970_v61, %v1953_v54  ;;  %3264 = vtanh.f32 %v1980_v59  ;;  %v2227_v57 = vpop.f32.mrf.mxu1 }
0x176a   :  { %v3988_v27 = vadd.f32 %v2227_v57, %v2150_v47 }
0x176b   :  { %3266 = vtanh.f32 %v1978_v62  ;;  %v1976_v63 = vadd.f32 %v1973_v58, %v1953_v54 }
0x176c   :  { %v2240_v49 = vpack.c.bf16 %v3986_v48, %v3988_v27 }
0x176d   :  { %v1979_v0 = vmul.f32 0.7978846, %v1976_v63 }
0x176f   :  { %3268 = vtanh.f32 %v1979_v0 }
0x1776   :  { %v3265_v1 = vpop.eup %3264 }
0x1777   :  { %v1986_v3 = vadd.f32 1.0, %v3265_v1 }
0x1778   :  { %v3267_v2 = vpop.eup %3266 }
0x1779   :  { %v1984_v42 = vadd.f32 1.0, %v3267_v2  ;;  %v1989_v11 = vmul.f32 %v1986_v3, %v1965_v51 }
0x177b   :  { %v1987_v12 = vmul.f32 %v1984_v42, %v1963_v5  ;;  %v1991_v14 = vpack.c.bf16 %v1989_v11, %v1989_v11  ;;  %v2810_v42 = vld [vmem:[%s4099_s9 + $0x2a] ss:$0 sm:$0xff] }
0x177c   :  { %v3269_v4 = vpop.eup %3268 }
0x177d   :  { %v1985_v8 = vadd.f32 1.0, %v3269_v4 }
0x177f   :  { %v1988_v13 = vmul.f32 %v1985_v8, %v1964_v6 }
0x1781   :  { %v1990_v41 = vpack.c.bf16 %v1988_v13, %v1987_v12 }
0x1783   :  { %3076 = vmatprep.mubr.msk.bf16.mxu0 %vm78_vm0, %v1990_v41 }
0x1784   :  { %3077 = vmatmul.mubr.msk.bf16.vlgmr.msra.gmra.mxu0 %vm78_vm0, %v1991_v14  ;;  %vm2722_vm0 = vcmask 162816  }
0x1844   :  { %v3078_v23 = vpop.f32.mrf.mxu0 }
0x1845   :  { %v2061_v25 = vadd.f32 %v3078_v23, %v3871_v35 }
0x1846   :  { %v2045_v24 = vpop.f32.mrf.mxu0 }
0x1847   :  { %v2059_v26 = vadd.f32 %v2045_v24, %v3869_v33  ;;  %v2068_v37 = vadd.f32 %v2802_v30, %v2061_v25  ;;  %v2238_v33 = vld [vmem:[%s4105_s7 + $0x10] sm:$0xff] }
0x1848   :  { %v3079_v28 = vpop.f32.mrf.mxu0 }
0x1849   :  { %v2066_v31 = vadd.f32 %v2802_v30, %v2059_v26  ;;  %v2077_v7 = vsel %vm156_vm3, %v2068_v37, 0.0  ;;  %v2803_v26 = vld [vmem:[%s4099_s9 + $0x19] ss:$0 sm:$0xff] }
0x184a   :  { %v2048_v32 = vpop.f32.mrf.mxu0 }
0x184b   :  { %v2060_v34 = vadd.f32 %v2048_v32, %v3876_v38  ;;  %v2071_v36 = vsel %vm149_vm2, %v2066_v31, 0.0  ;;  %v2242_v38 = vpack.c.bf16 %v2239_v39, %v2238_v33  ;;  %v2804_v32 = vld [vmem:[%s4099_s9 + $0x1a] ss:$0 sm:$0xff] }
0x184c   :  { %2072 = vadd.xlane.f32.xlu1 %v2071_v36 }
0x184d   :  { %v2067_v40 = vadd.f32 %v2802_v30, %v2060_v34  ;;  %3088 = vmatpush3.bf16.msra.mxu1 %v2242_v38 }
0x184e   :  { %3089 = vmatprep.subr.bf16.mxu1 %v3293_v43 }
0x184f   :  { %v2074_v35 = vsel %vm149_vm2, %v2067_v40, 0.0 }
0x1850   :  { %2078 = vadd.xlane.f32.xlu1 %v2077_v7  ;;  %2075 = vadd.xlane.f32.xlu0 %v2074_v35 }
0x1851   :  { %3090 = vmatpush3.bf16.msra.mxu1 %v2241_v29 }
0x1852   :  { %3103 = vmatprep.subr.bf16.mxu1 %v3293_v43 }
0x1854   :  { %3092 = vmatmul.mubr.msk.bf16.vlgmr.msra.gmra.mxu1 %vm149_vm2, %v2240_v49 }
0x1855   :  { %3105 = vmatprep.mubr.msk.bf16.mxu1 %vm3294_vm5, %v3293_v43 }
0x1866   :  { %2295 = vrot.lane.b32.xlu0 %v2241_v29, %s3295_s25 }
0x18d5   :  { %v2073_v50 = vpop.xlane.xlu1 %2072 }
0x18d6   :  { %v2080_v54 = vmul.f32 0.03125, %v2073_v50 }
0x18d8   :  { %v2083_v59 = vsub.f32 %v2066_v31, %v2080_v54 }
0x18d9   :  { %v2079_v56 = vpop.xlane.xlu1 %2078  ;;  %v2076_v52 = vpop.xlane.xlu0 %2075 }
0x18da   :  { %v2082_v55 = vmul.f32 0.03125, %v2079_v56  ;;  %v2081_v61 = vmul.f32 0.03125, %v2076_v52  ;;  %v2086_v0 = vmul.f32 %v2083_v59, %v2083_v59 }
0x18dc   :  { %v2085_v60 = vsub.f32 %v2068_v37, %v2082_v55  ;;  %v2084_v58 = vsub.f32 %v2067_v40, %v2081_v61  ;;  %v2089_v1 = vsel %vm149_vm2, %v2086_v0, 0.0 }
0x18dd   :  { %v2296_v22 = vpop.permute.xlu0 %2295 }
0x18de   :  { %v2088_v62 = vmul.f32 %v2085_v60, %v2085_v60  ;;  %v2087_v2 = vmul.f32 %v2084_v58, %v2084_v58 }
0x18e0   :  { %v2095_v63 = vsel %vm156_vm3, %v2088_v62, 0.0  ;;  %v2092_v3 = vsel %vm149_vm2, %v2087_v2, 0.0 }
0x18e1   :  { %2096 = vadd.xlane.f32.xlu1 %v2095_v63 }
0x18e5   :  { %2090 = vadd.xlane.f32.xlu1 %v2089_v1 }
0x18e9   :  { %2093 = vadd.xlane.f32.xlu1 %v2092_v3 }
0x18fa   :  { %2297 = vrot.lane.b32.xlu1 %v2242_v38, %s3295_s25 }
0x1914   :  { %v2284_v4 = vpop.f32.mrf.mxu1 }
0x1915   :  { %v4002_v5 = vadd.f32 %v2810_v42, %v2284_v4 }
0x1916   :  { %v3093_v51 = vpop.f32.mrf.mxu1 }
0x1918   :  { %v2287_v6 = vpop.f32.mrf.mxu1 }
0x1919   :  { %v2288_v8 = vadd.f32 %v2810_v42, %v2287_v6 }
0x191a   :  { %v3094_v11 = vpop.f32.mrf.mxu1 }
0x191b   :  { %v4005_v12 = vpack.c.bf16 %v2288_v8, %v4002_v5 }
0x191d   :  { %v2491_v61 = vshll.u32 %v4005_v12, 16 }
0x191f   :  { %v2493_v63 = vrot.slane %v2491_v61, 3 }
0x196a   :  { %v2097_v13 = vpop.xlane.xlu1 %2096 }
0x196b   :  { %v2100_v41 = vmul.f32 0.03125, %v2097_v13 }
0x196d   :  { %v2103_v14 = vadd.f32 1e-05, %v2100_v41  ;;  %v2815_v41 = vld [vmem:[%s4099_s9 + $0x2c] ss:$0 sm:$0xff] }
0x196e   :  { %v2091_v15 = vpop.xlane.xlu1 %2090 }
0x196f   :  { %v2098_v17 = vmul.f32 0.03125, %v2091_v15  ;;  %3270 = vrsqrt.f32 %v2103_v14 }
0x1971   :  { %v2101_v18 = vadd.f32 1e-05, %v2098_v17 }
0x1972   :  { %v2094_v19 = vpop.xlane.xlu1 %2093 }
0x1973   :  { %3272 = vrsqrt.f32 %v2101_v18  ;;  %v2099_v20 = vmul.f32 0.03125, %v2094_v19 }
0x1975   :  { %v2102_v45 = vadd.f32 1e-05, %v2099_v20 }
0x1976   :  { %v2298_v21 = vpop.permute.xlu1 %2297 }
0x1977   :  { %3274 = vrsqrt.f32 %v2102_v45  ;;  %3095 = vmatprep.subr.bf16.mxu0 %v2298_v21 }
0x1978   :  { %3096 = vmatpush3.bf16.msra.mxu0 %v2298_v21 }
0x1979   :  { %3097 = vmatprep.subr.bf16.mxu0 %v2296_v22 }
0x197c   :  { %3098 = vmatpush3.bf16.msra.mxu0 %v2296_v22  ;;  %v3271_v23 = vpop.eup %3270 }
0x197d   :  { %3109 = vmatprep.subr.bf16.mxu0 %v3293_v43  ;;  %v2109_v25 = vmul.f32 %v3271_v23, %v2085_v60  ;;  %v2488_v60 = vshrl.u32 %v4005_v12, 16 }
0x197f   :  { %v2116_v31 = vmul.f32 %v2803_v26, %v2109_v25 }
0x1980   :  { %v3273_v24 = vpop.eup %3272 }
0x1981   :  { %v2107_v28 = vmul.f32 %v3273_v24, %v2083_v59  ;;  %v2123_v40 = vadd.f32 %v2804_v32, %v2116_v31  ;;  %v2373_v59 = vpack.c.bf16 %v4002_v5, %v4002_v5 }
0x1983   :  { %v2114_v36 = vmul.f32 %v2803_v26, %v2107_v28  ;;  %v2292_v39 = vpack.c.bf16 %v2123_v40, %v2123_v40 }
0x1984   :  { %v3275_v30 = vpop.eup %3274 }
0x1985   :  { %v2108_v34 = vmul.f32 %v3275_v30, %v2084_v58  ;;  %v2121_v7 = vadd.f32 %v2804_v32, %v2114_v36  ;;  %v2490_v58 = vrot.slane %v2488_v60, 2 }
0x1987   :  { %v2115_v37 = vmul.f32 %v2803_v26, %v2108_v34  ;;  %v2494_v0 = vor.u32 %v2493_v63, %v2490_v58 }
0x1989   :  { %v2122_v35 = vadd.f32 %v2804_v32, %v2115_v37 }
0x198b   :  { %v2291_v33 = vpack.c.bf16 %v2122_v35, %v2121_v7 }
0x198d   :  { %3099 = vmatprep.mubr.msk.bf16.mxu0 %vm149_vm2, %v2291_v33 }
0x198e   :  { %3100 = vmatmul.mubr.msk.bf16.vlgmr.msra.gmra.mxu0 %vm149_vm2, %v2292_v39 }
0x198f   :  { %3111 = vmatprep.mubr.msk.bf16.mxu0 %vm3294_vm5, %v3293_v43 }
0x1a4e   :  { %v3101_v38 = vpop.f32.mrf.mxu0 }
0x1a4f   :  { %v2361_v53 = vadd.f32 %v3101_v38, %v2814_v10 }
0x1a50   :  { %v4018_v9 = vpop.f32.mrf.mxu0 }
0x1a51   :  { %v2359_v46 = vadd.f32 %v2814_v10, %v4018_v9 }
0x1a52   :  { %v3102_v29 = vpop.f32.mrf.mxu0 }
0x1a54   :  { %v2344_v44 = vpop.f32.mrf.mxu0 }
0x1a55   :  { %v2360_v47 = vadd.f32 %v2814_v10, %v2344_v44 }
0x1a57   :  { %v2374_v57 = vpack.c.bf16 %v2360_v47, %v2359_v46  ;;  %v2486_v49 = vpack.c.bf16 %v2361_v53, %v2360_v47 }
0x1a59   :  { %v2498_v50 = vshll.u32 %v2486_v49, 16  ;;  %v2379_v54 = vsel %vm149_vm2, %v2374_v57, 0  ;;  %v2496_v56 = vshrl.u32 %v2486_v49, 16  ;;  %v2630_v57 = vld [vmem:[%s4106_s8 + $0x10] sm:$0xff]  ;;  %v2631_v49 = vld [vmem:[%s4106_s8 + $0x18] sm:$0xff] }
0x1a5a   :  { %3104 = vmatpush3.bf16.xpose.msra.mxu1 %v2379_v54  ;;  %v2628_v54 = vld [vmem:[%s4106_s8] sm:$0xff] }
0x1a5b   :  { %v2500_v52 = vrot.slane %v2498_v50, 1  ;;  %3115 = vmatprep.subr.bf16.mxu1 %v3293_v43  ;;  %v2633_v50 = vpack.c.bf16 %v2631_v49, %v2630_v57 }
0x1a5d   :  { %v2501_v55 = vor.u32 %v2500_v52, %v2496_v56  ;;  %v2629_v56 = vld [vmem:[%s4106_s8 + $0x8] sm:$0xff] }
0x1a5e   :  { %v2632_v52 = vpack.c.bf16 %v2629_v56, %v2628_v54 }
0x1a5f   :  { %v2506_v62 = vsel %vm149_vm2, %v2501_v55, 0 }
0x1a61   :  { %3106 = vmatmul.mubr.msk.bf16.vlgmr.msra.gmra.mxu1 %vm149_vm2, %v2373_v59 }
0x1a62   :  { %3116 = vmatpush3.bf16.xpose.msra.mxu1 %v2506_v62  ;;  %3117 = vmatprep.mubr.msk.bf16.mxu1 %vm3294_vm5, %v3293_v43 }
0x1a63   :  { %3127 = vmatprep.subr.bf16.mxu1 %v3293_v43 }
0x1a69   :  { %3118 = vmatmul.mubr.msk.bf16.vlgmr.msra.gmra.mxu1 %vm149_vm2, %v2494_v0 }
0x1a6a   :  { %3131 = vmatprep.mubr.msk.bf16.mxu1 %vm3294_vm5, %v3293_v43  ;;  %3128 = vmatpush3.bf16.msra.mxu1 %v2633_v50 }
0x1a6b   :  { %3129 = vmatprep.subr.bf16.mxu1 %v3293_v43 }
0x1a6e   :  { %3130 = vmatpush3.bf16.msra.mxu1 %v2632_v52 }
0x1b21   :  { %v2415_v1 = vpop.f32.mrf.mxu1 }
0x1b22   :  { %v2421_v2 = vmul.f32 0.17677669, %v2415_v1 }
0x1b23   :  { %v3107_v3 = vpop.f32.mrf.mxu1 }
0x1b24   :  { %v2423_v42 = vsel %vm2422_vm14, %v2421_v2, -inf }
0x1b25   :  { %2424 = vmax.xlane.f32.xlu1 %v2423_v42  ;;  %v2418_v4 = vpop.f32.mrf.mxu1 }
0x1b26   :  { %v2820_v4 = vld [vmem:[%s4099_s9 + $0x2d] ss:$0 sm:$0xff]  ;;  %s3303_s9 = smov 10  }
0x1b27   :  { %v3108_v51 = vpop.f32.mrf.mxu1 }
0x1b29   :  { %v2542_v5 = vpop.f32.mrf.mxu1 }
0x1b2a   :  { %v2548_v6 = vmul.f32 0.17677669, %v2542_v5 }
0x1b2b   :  { %v3119_v8 = vpop.f32.mrf.mxu1 }
0x1b2c   :  { %v2549_v11 = vsel %vm2422_vm14, %v2548_v6, -inf }
0x1b2d   :  { %2550 = vmax.xlane.f32.xlu0 %v2549_v11  ;;  %v2545_v12 = vpop.f32.mrf.mxu1 }
0x1b2f   :  { %v3120_v13 = vpop.f32.mrf.mxu1 }
0x1b36   :  { %2367 = vrot.lane.b32.xlu1 %v2815_v41, %s3302_s11 }
0x1bae   :  { %v2425_v14 = vpop.xlane.xlu1 %2424 }
0x1baf   :  { %v2426_v15 = vsub.f32 %v2421_v2, %v2425_v14 }
0x1bb1   :  { %v2427_v17 = vmul.f32 1.442695, %v2426_v15 }
0x1bb2   :  { %v2368_v18 = vpop.permute.xlu1 %2367 }
0x1bb3   :  { %3276 = vpow2.f32 %v2427_v17  ;;  %v2371_v19 = vadd.f32 %v2368_v18, %v2344_v44  ;;  %v2372_v20 = vadd.f32 %v3101_v38, %v2368_v18  ;;  %v2370_v36 = vadd.f32 %v2368_v18, %v4018_v9 }
0x1bb5   :  { %v2561_v45 = vpack.c.bf16 %v2372_v20, %v2371_v19  ;;  %v2435_v37 = vpack.c.bf16 %v2371_v19, %v2370_v36 }
0x1bb6   :  { %v2551_v21 = vpop.xlane.xlu0 %2550 }
0x1bb7   :  { %v2565_v22 = vshll.u32 %v2561_v45, 16  ;;  %v2552_v23 = vsub.f32 %v2548_v6, %v2551_v21  ;;  %v2563_v24 = vshrl.u32 %v2561_v45, 16 }
0x1bb9   :  { %v2567_v25 = vrot.slane %v2565_v22, 1  ;;  %v2553_v26 = vmul.f32 1.442695, %v2552_v23 }
0x1bbb   :  { %3278 = vpow2.f32 %v2553_v26  ;;  %v2568_v28 = vor.u32 %v2567_v25, %v2563_v24 }
0x1bbd   :  { %2569 = vrot.lane.b32.xlu1 %v2568_v28, %s3295_s25 }
0x1bc0   :  { %v3277_v30 = vpop.eup %3276 }
0x1bc1   :  { %v2429_v31 = vsel %vm2422_vm14, %v3277_v30, 0.0 }
0x1bc2   :  { %2430 = vadd.xlane.f32.xlu0 %v2429_v31 }
0x1bc8   :  { %v3279_v32 = vpop.eup %3278 }
0x1bc9   :  { %v2555_v34 = vsel %vm2422_vm14, %v3279_v32, 0.0 }
0x1bca   :  { %2556 = vadd.xlane.f32.xlu0 %v2555_v34 }
0x1be0   :  { %2437 = vrot.lane.b32.xlu0 %v2435_v37, %s3295_s25 }
0x1c2f   :  { %v2570_v38 = vpop.permute.xlu1 %2569 }
0x1c30   :  { %v2575_v44 = vand.u32 %v2570_v38, %v3539_v16 }
0x1c4b   :  { %v2431_v40 = vpop.xlane.xlu0 %2430 }
0x1c4c   :  { %3280 = vrcp.f32 %v2431_v40 }
0x1c53   :  { %v2557_v7 = vpop.xlane.xlu0 %2556 }
0x1c54   :  { %3282 = vrcp.f32 %v2557_v7 }
0x1c57   :  { %v2438_v35 = vpop.permute.xlu0 %2437 }
0x1c58   :  { %v2443_v33 = vand.u32 %v2438_v35, %v3539_v16 }
0x1c59   :  { %v3281_v39 = vpop.eup %3280 }
0x1c5a   :  { %3110 = vmatpush3.bf16.msra.mxu0 %v2443_v33  ;;  %v2433_v10 = vmul.f32 %v3281_v39, %v3277_v30 }
0x1c5b   :  { %3121 = vmatprep.subr.bf16.mxu0 %v3293_v43 }
0x1c5c   :  { %v2434_v29 = vpack.c.bf16 %v2433_v10, %v2433_v10 }
0x1c5e   :  { %3112 = vmatmul.mubr.msk.bf16.vlgmr.msra.gmra.mxu0 %vm325_vm7, %v2434_v29 }
0x1c5f   :  { %3122 = vmatpush3.bf16.msra.mxu0 %v2575_v44  ;;  %3123 = vmatprep.mubr.msk.bf16.mxu0 %vm3294_vm5, %v3293_v43 }
0x1c61   :  { %v3283_v9 = vpop.eup %3282 }
0x1c62   :  { %v4054_v53 = vmul.f32 %v3283_v9, %v3279_v32 }
0x1c64   :  { %v2560_v46 = vpack.c.bf16 %v4054_v53, %v4054_v53  ;;  %v2618_v47 = vrot.slane %v4054_v53, 3 }
0x1c66   :  { %3124 = vmatmul.mubr.msk.bf16.vlgmr.msra.gmra.mxu0 %vm325_vm7, %v2560_v46  ;;  %v2620_v16 = vsel %vm356_vm10, %v2433_v10, %v2618_v47 }
0x1d1e   :  { %v2479_v55 = vpop.f32.mrf.mxu0 }
0x1d20   :  { %v3113_v59 = vpop.f32.mrf.mxu0 }
0x1d22   :  { %v2482_v60 = vpop.f32.mrf.mxu0 }
0x1d24   :  { %v3114_v61 = vpop.f32.mrf.mxu0 }
0x1d26   :  { %v2611_v62 = vpop.f32.mrf.mxu0 }
0x1d27   :  { %v2622_v58 = vrot.slane %v2611_v62, 3 }
0x1d28   :  { %v3125_v63 = vpop.f32.mrf.mxu0 }
0x1d29   :  { %v2624_v0 = vsel %vm356_vm10, %v2479_v55, %v2622_v58  ;;  %v2626_v43 = vadd.f32 %v2622_v58, %v3986_v48 }
0x1d2a   :  { %v2625_v1 = vadd.f32 %v2624_v0, %v3988_v27  ;;  %v2614_v2 = vpop.f32.mrf.mxu0 }
0x1d2c   :  { %v2627_v3 = vpack.c.bf16 %v2626_v43, %v2625_v1  ;;  %v3126_v42 = vpop.f32.mrf.mxu0 }
0x1d2e   :  { %3132 = vmatmul.mubr.msk.bf16.vlgmr.msra.gmra.mxu1 %vm149_vm2, %v2627_v3 }
0x1dee   :  { %v2675_v51 = vpop.f32.mrf.mxu1 }
0x1def   :  { %v2676_v5 = vadd.f32 %v2820_v4, %v2675_v51 }
0x1df0   :  { %v3133_v6 = vpop.f32.mrf.mxu1 }
0x1df1   :  { %v2682_v8 = vsel %vm2151_vm11, %v2676_v5, -inf }
0x1df2   :  { %2683 = vmax.xlane.f32.xlu1 %v2682_v8  ;;  %v2678_v11 = vpop.f32.mrf.mxu1 }
0x1df3   :  { %v2679_v48 = vadd.f32 %v2820_v4, %v2678_v11 }
0x1df4   :  { %v3134_v12 = vpop.f32.mrf.mxu1 }
0x1df5   :  { %v2686_v27 = vsel %vm2685_vm15, %v2679_v48, -inf }
0x1df6   :  { %2687 = vmax.xlane.f32.xlu0 %v2686_v27 }
0x1e7b   :  { %v2684_v13 = vpop.xlane.xlu1 %2683 }
0x1e7c   :  { %v2689_v41 = vsub.f32 %v2676_v5, %v2684_v13 }
0x1e7e   :  { %v2691_v14 = vmul.f32 1.442695, %v2689_v41 }
0x1e7f   :  { %v2688_v15 = vpop.xlane.xlu0 %2687 }
0x1e80   :  { %3284 = vpow2.f32 %v2691_v14  ;;  %v2690_v17 = vsub.f32 %v2679_v48, %v2688_v15 }
0x1e82   :  { %v2693_v18 = vmul.f32 1.442695, %v2690_v17 }
0x1e84   :  { %3286 = vpow2.f32 %v2693_v18 }
0x1e8d   :  { %v3285_v19 = vpop.eup %3284 }
0x1e8e   :  { %v2695_v20 = vsel %vm2151_vm11, %v3285_v19, 0.0 }
0x1e8f   :  { %2696 = vadd.xlane.f32.xlu1 %v2695_v20 }
0x1e91   :  { %v3287_v45 = vpop.eup %3286 }
0x1e92   :  { %v2698_v21 = vsel %vm2685_vm15, %v3287_v45, 0.0 }
0x1e93   :  { %2699 = vadd.xlane.f32.xlu1 %v2698_v21 }
0x1f18   :  { %v2697_v22 = vpop.xlane.xlu1 %2696 }
0x1f19   :  { %3288 = vrcp.f32 %v2697_v22 }
0x1f1c   :  { %v2700_v23 = vpop.xlane.xlu1 %2699 }
0x1f1d   :  { %3290 = vrcp.f32 %v2700_v23 }
0x1f26   :  { %v3289_v24 = vpop.eup %3288 }
0x1f27   :  { %v2702_v25 = vmul.f32 %v3289_v24, %v3285_v19 }
0x1f29   :  { %2707 = vrot.lane.b32.xlu1 %v2702_v25, %s3303_s9 }
0x1f2a   :  { %v3291_v26 = vpop.eup %3290 }
0x1f2b   :  { %v2704_v28 = vmul.f32 %v3291_v26, %v3287_v45 }
0x1f2d   :  { %2714 = vrot.lane.b32.xlu1 %v2620_v16, %s3304_s28  ;;  %2709 = vrot.lane.b32.xlu0 %v2704_v28, %s3303_s9 }
0x1f31   :  { %2716 = vrot.lane.b32.xlu1 %v2618_v47, %s3304_s28 }
0x1f9b   :  { %v2708_v30 = vpop.permute.xlu1 %2707 }
0x1f9c   :  { %v2720_v31 = vsel %vm2151_vm11, %v2676_v5, %v2708_v30 }
0x1f9f   :  { %v2715_v32 = vpop.permute.xlu1 %2714  ;;  %v2710_v34 = vpop.permute.xlu0 %2709 }
0x1fa0   :  { %v2723_v36 = vsel %vm2722_vm0, %v2720_v31, %v2715_v32  ;;  %v2721_v40 = vsel %vm2151_vm11, %v2679_v48, %v2710_v34 }
0x1fa1   :  { %v2726_v37 = vsel %vm2725_vm1, %v2723_v36, 0.0 }
0x1fa2   :  { %2728 = vst [vmem:[%s4107_s10] sm:$0xff] %v2726_v37 }
0x1fa3   :  { %v2717_v7 = vpop.permute.xlu1 %2716 }
0x1fa4   :  { %v2724_v35 = vsel %vm2722_vm0, %v2721_v40, %v2717_v7 }
0x1fa5   :  { %v2727_v33 = vsel %vm2725_vm1, %v2724_v35, 0.0 }
0x1fa6   :  { %2729 = vst [vmem:[%s4107_s10 + $0x8] sm:$0x3] %v2727_v33 }

</bundles_post_ra>
